<compile_context>
chip_gen: v6e
topology: v6e:2x2x1
jax: 0.10.0
libtpu: 0.0.40
codegen_flags: <defaults>
</compile_context>

<pallas_src>
import jax
import jax.numpy as jnp
from jax import lax
from jax.experimental import pallas as pl
from jax.experimental.pallas import tpu as pltpu

# ----------------------------- synthetic config ------------------------------
B = 2            # batch
L = 8            # sequence length
D_MODEL = 32     # stand-in for mamba-130m hidden_size (768) at small scale
D_STATE = 16
D_CONV = 4
EXPAND = 2
HEADDIM = 16                       # synthetic headdim so that nheads > 1
D_INNER = EXPAND * D_MODEL         # 64
NHEADS = D_INNER // HEADDIM        # 4
NGROUPS = 1
D_XBC = D_INNER + 2 * NGROUPS * D_STATE          # 96
D_MLP = 4 * D_MODEL                # 128
NUM_CYCLES = 1                     # -> 6 blocks per sub-model
NUM_BLOCKS = 6 * NUM_CYCLES
NUM_EXPERTS = 5
NUM_LABELS = 4
VOCAB = 64
RMS_EPS = 1e-6                     # RMSNorm eps of the module
GATED_NORM_EPS = 1e-5              # mamba_ssm RMSNormGated default eps
TAU = 1.0                          # gumbel-softmax temperature

# fused in_proj lane layout:  [ z(64) | x(64) | B(16) | C(16) | dt_exp(64) ]
Z_OFF = 0
X_OFF = D_INNER                       # 64
B_OFF = 2 * D_INNER                   # 128
C_OFF = 2 * D_INNER + D_STATE         # 144
DT_OFF = 2 * D_INNER + 2 * D_STATE    # 160
CAT_W = DT_OFF + D_INNER              # 224

# canonical ordering of the stacked per-block weights fed to the kernel
PARAM_NAMES = (
    "norm1_w", "w_cat", "b_cat", "D", "ssm_norm_w", "out_proj",
    "norm2_w", "mlp_w1", "mlp_b1", "mlp_w2", "mlp_b2",
)


# ------------------------------ in-kernel math --------------------------------
def _silu(x):
    return x * jax.nn.sigmoid(x)


def _softplus(x):
    # torch F.softplus (beta=1, threshold=20).  log(1+exp) instead of log1p:
    # abs deviation < 2e-9 and only for x < -20; negligible at these scales.
    return jnp.where(x > 20.0, x, jnp.log(1.0 + jnp.exp(x)))


def _erf(x):
    # Abramowitz & Stegun 7.1.26 (|err| ~ 1.5e-7 ~ f32 eps) -> matches torch's
    # exact (erf) nn.GELU.  Kept per the review caveat about exact parity; it
    # runs once per block on a [1, 128] tile so the VPU cost is negligible.
    a1, a2, a3, a4, a5 = 0.254829592, -0.284496736, 1.421413741, -1.453152027, 1.061405429
    p = 0.3275911
    sgn = jnp.where(x >= 0.0, 1.0, -1.0)
    ax = jnp.abs(x)
    t = 1.0 / (1.0 + p * ax)
    poly = ((((a5 * t + a4) * t + a3) * t + a2) * t + a1) * t
    return sgn * (1.0 - poly * jnp.exp(-ax * ax))


def _gelu_exact(x):
    return 0.5 * x * (1.0 + _erf(x * 0.7071067811865476))


def _rmsnorm(x, w, eps):
    # module's RMSNorm: weight * x / sqrt(sum(x^2) + eps)   (sum, NOT mean --
    # this matches the custom RMSNorm in the spec), done as one rsqrt-multiply.
    return w * x * lax.rsqrt(jnp.sum(x * x, axis=-1, keepdims=True) + eps)


# --------- the single Pallas kernel: routed expert blocks + classifier ---------
def _routed_expert_kernel(idx_ref,                # [B] int32 scalar prefetch (only drives index_maps)
                          pooled_ref,             # [1, 1, D_MODEL]
                          nrm1_ref, wcat_ref, bcat_ref, d_ref, gnorm_ref, outp_ref,
                          nrm2_ref, w1_ref, b1_ref, w2_ref, b2_ref,
                          fcw_ref, fcb_ref,
                          out_ref):               # [1, 1, NUM_LABELS]
    del idx_ref
    x = pooled_ref[0]                                              # [1, D] f32

    # 6 MambaBlocks of the routed expert, statically unrolled; the BlockSpec
    # index_maps already DMA'd only the selected expert's weight slab.
    for blk in range(NUM_BLOCKS):
        # --- RMSNorm -> Mamba2 single-token step (zero conv / SSM state) ---
        xn = _rmsnorm(x, nrm1_ref[0, blk], RMS_EPS)
        # one lane-dense fused in_proj; conv last-tap scale + dt_bias folded in
        proj = jnp.dot(xn.astype(jnp.bfloat16), wcat_ref[0, blk],
                       preferred_element_type=jnp.float32) + bcat_ref[0, blk]  # [1, 224]
        z = proj[:, Z_OFF:X_OFF]                                   # [1, 64]
        xbc = _silu(proj[:, X_OFF:DT_OFF])                         # conv(last tap)+bias+SiLU
        xr = xbc[:, :D_INNER]                                      # [1, 64]
        br = xbc[:, D_INNER:D_INNER + D_STATE]                     # [1, 16]
        cr = xbc[:, D_INNER + D_STATE:]                            # [1, 16]
        dt = _softplus(proj[:, DT_OFF:])                           # [1, 64] (head-expanded)

        # single step from zero state: h = dt*(B (x) x); y = C.h + D*x
        # (A never enters: exp(dt*A) only multiplies the zero initial state)
        cb = jnp.sum(br * cr, axis=-1, keepdims=True)              # [1, 1]  (C.B, ngroups=1)
        y = (dt * cb + d_ref[0, blk]) * xr                         # [1, 64]

        # gated RMSNorm (RMSNormGated, norm_before_gate=False) + out_proj
        y = y * _silu(z)
        y = y * lax.rsqrt(jnp.mean(y * y, axis=-1, keepdims=True) + GATED_NORM_EPS)
        y = y * gnorm_ref[0, blk]
        x = x + jnp.dot(y.astype(jnp.bfloat16), outp_ref[0, blk],
                        preferred_element_type=jnp.float32)

        # --- RMSNorm -> MLP (Linear -> exact GELU -> Linear) ---
        xn2 = _rmsnorm(x, nrm2_ref[0, blk], RMS_EPS)
        h = jnp.dot(xn2.astype(jnp.bfloat16), w1_ref[0, blk],
                    preferred_element_type=jnp.float32) + b1_ref[0, blk]
        h = _gelu_exact(h)
        x = x + jnp.dot(h.astype(jnp.bfloat16), w2_ref[0, blk],
                        preferred_element_type=jnp.float32) + b2_ref[0, blk]

    # hard top-1 gate  =>  ensemble output == routed expert output; classifier
    # epilogue runs here so the [B, D] activations never round-trip HBM.
    out_ref[0] = jnp.dot(x, fcw_ref[...], preferred_element_type=jnp.float32) + fcb_ref[...]


def _grid_semantics():
    # v7x has two TensorCores per chip: CORE_PARALLEL shards the (independent)
    # batch-row grid axis across them.  On single-TC v5e/v6e plain PARALLEL /
    # ARBITRARY are codegen-neutral, so PARALLEL is the safe default.
    try:
        kind = jax.devices()[0].device_kind.lower()
    except Exception:
        kind = ""
    if ("v7" in kind) or ("7x" in kind):
        return (pltpu.CORE_PARALLEL,)
    return (pltpu.PARALLEL,)


def routed_experts_classify(expert_idx, pooled, blocks, fc):
    nb = pooled.shape[0]
    pooled3 = pooled.reshape(nb, 1, D_MODEL)        # keep blocked batch axis out of the last two dims
    weights = [blocks[name] for name in PARAM_NAMES]

    def w_spec(arr):
        # data-dependent expert selection: block index along the expert axis is
        # the routed expert id read from the scalar-prefetch ref.
        return pl.BlockSpec((1,) + arr.shape[1:],
                            lambda b, idx_ref: (idx_ref[b], 0, 0, 0))

    in_specs = [pl.BlockSpec((1, 1, D_MODEL), lambda b, idx_ref: (b, 0, 0))]
    in_specs += [w_spec(a) for a in weights]
    in_specs += [pl.BlockSpec(fc["wT"].shape, lambda b, idx_ref: (0, 0)),
                 pl.BlockSpec(fc["b"].shape, lambda b, idx_ref: (0, 0))]

    out = pl.pallas_call(
        _routed_expert_kernel,
        out_shape=jax.ShapeDtypeStruct((nb, 1, NUM_LABELS), jnp.float32),
        grid_spec=pltpu.PrefetchScalarGridSpec(
            num_scalar_prefetch=1,
            grid=(nb,),
            in_specs=in_specs,
            out_specs=pl.BlockSpec((1, 1, NUM_LABELS), lambda b, idx_ref: (b, 0, 0)),
        ),
        compiler_params=pltpu.CompilerParams(dimension_semantics=_grid_semantics()),
    )(expert_idx, pooled3, *weights, fc["wT"], fc["b"])
    return out.reshape(nb, NUM_LABELS)


# ------------------------------ parameter setup --------------------------------
def _normal(key, shape, scale=0.02):
    return scale * jax.random.normal(key, shape, jnp.float32)


def _init_one_block(key):
    ks = jax.random.split(key, 10)
    d_in_proj = 2 * D_INNER + 2 * NGROUPS * D_STATE + NHEADS
    in_proj_w = _normal(ks[0], (d_in_proj, D_MODEL))                  # torch layout [out, in]
    wz = in_proj_w[:D_INNER].T                                        # [D, 64]
    wx = in_proj_w[D_INNER:2 * D_INNER].T                             # [D, 64]
    wb = in_proj_w[2 * D_INNER:2 * D_INNER + D_STATE].T               # [D, 16]
    wc = in_proj_w[2 * D_INNER + D_STATE:2 * D_INNER + 2 * D_STATE].T # [D, 16]
    wdt = in_proj_w[2 * D_INNER + 2 * D_STATE:].T                     # [D, NHEADS]

    conv_w = _normal(ks[1], (D_XBC, D_CONV), 0.2)                     # depthwise conv weight
    conv_b = _normal(ks[2], (D_XBC,))
    cw_last = conv_w[:, -1]                                           # only tap reached at t=0

    dt_bias = _normal(ks[3], (NHEADS,), 0.5)
    d_param = _normal(ks[4], (NHEADS,), 1.0)
    out_proj_w = _normal(ks[5], (D_MODEL, D_INNER))
    mlp_w1 = _normal(ks[6], (D_MLP, D_MODEL))
    mlp_w2 = _normal(ks[7], (D_MODEL, D_MLP))

    # Fuse in_proj (z|x|B|C|dt) into ONE lane-dense [D, 224] matmul.
    # The depthwise-conv last-tap scale is folded into the x/B/C columns and
    # dt_bias / conv bias into the fused bias vector; dt is head-expanded.
    w_cat = jnp.concatenate(
        [wz,
         wx * cw_last[None, :D_INNER],
         wb * cw_last[None, D_INNER:D_INNER + D_STATE],
         wc * cw_last[None, D_INNER + D_STATE:],
         jnp.repeat(wdt, HEADDIM, axis=1)], axis=1)                   # [D, 224]
    b_cat = jnp.concatenate(
        [jnp.zeros((D_INNER,), jnp.float32),                          # z: no bias
         conv_b,                                                      # conv bias on x|B|C
         jnp.repeat(dt_bias, HEADDIM)], axis=0)[None, :]              # [1, 224]

    return dict(
        norm1_w=jnp.ones((1, D_MODEL), jnp.float32),
        w_cat=w_cat.astype(jnp.bfloat16),                             # matmul weights -> bf16
        b_cat=b_cat,                                                  # elementwise stays f32
        # A_log omitted: with seq_len == 1 and zero initial SSM state, A never
        # reaches the output (exp(dt*A) only multiplies the zero state).
        D=jnp.repeat(d_param, HEADDIM)[None, :],                      # [1, D_INNER]
        ssm_norm_w=jnp.ones((1, D_INNER), jnp.float32),
        out_proj=out_proj_w.T.astype(jnp.bfloat16),                   # [D_INNER, D]
        norm2_w=jnp.ones((1, D_MODEL), jnp.float32),
        mlp_w1=mlp_w1.T.astype(jnp.bfloat16),                         # [D, 4D]
        mlp_b1=_normal(ks[8], (1, D_MLP)),
        mlp_w2=mlp_w2.T.astype(jnp.bfloat16),                         # [4D, D]
        mlp_b2=_normal(ks[9], (1, D_MODEL)),
    )


def _stack_dicts(dicts):
    return {k: jnp.stack([d[k] for d in dicts], axis=0) for k in dicts[0]}


def init_params(key):
    k_emb, k_sub, k_gate, k_fc = jax.random.split(key, 4)
    sub_keys = jax.random.split(k_sub, NUM_EXPERTS * NUM_BLOCKS)
    experts = []
    for e in range(NUM_EXPERTS):
        blks = [_init_one_block(sub_keys[e * NUM_BLOCKS + b]) for b in range(NUM_BLOCKS)]
        experts.append(_stack_dicts(blks))                 # values: [NB, ...]
    blocks_stacked = _stack_dicts(experts)                 # values: [E, NB, ...]

    kg1, kg2 = jax.random.split(k_gate)
    kf1, kf2 = jax.random.split(k_fc)
    return dict(
        embed_table=_normal(k_emb, (VOCAB, D_MODEL), 1.0),
        blocks=blocks_stacked,
        gate=dict(wT=_normal(kg1, (NUM_EXPERTS, D_MODEL)).T, b=_normal(kg2, (1, NUM_EXPERTS))),
        fc=dict(wT=_normal(kf1, (NUM_LABELS, D_MODEL)).T, b=_normal(kf2, (1, NUM_LABELS))),
    )


# --------------------------------- forward -------------------------------------
@jax.jit
def gamba5_forward(params, input_ids, attention_mask, gumbel_noise):
    # TODO(synk): the pretrained 'state-spaces/mamba-130m-hf' LM backbone is not
    # reimplemented; a deterministic embedding lookup stands in for hidden_states[-1].
    embeddings = params["embed_table"][input_ids]                     # [B, L, D]

    # masked mean pool -- computed ONCE and shared by the gate and all experts
    # (every SubModel pools the same embeddings identically).
    mask = attention_mask.astype(jnp.float32)
    pooled = jnp.sum(mask[:, :, None] * embeddings, axis=1) / (
        jnp.sum(mask, axis=1, keepdims=True) + 1e-8)                  # [B, D]

    # GatingNetwork: Linear + hard gumbel-softmax.  hard=True makes the forward
    # value an exact one-hot of argmax((logits + gumbel)/tau); jnp.argmax uses
    # the same first-occurrence tie-break as torch .max().  These tiny ops fuse
    # with the embedding gather in XLA and their result drives the data-
    # dependent (routed) weight DMA of the single Pallas kernel below.
    logits = pooled @ params["gate"]["wT"] + params["gate"]["b"]      # [B, E]
    expert_idx = jnp.argmax((logits + gumbel_noise) / TAU, axis=-1).astype(jnp.int32)

    # ONE pallas_call: routed expert's 6 MambaBlocks + classifier, per batch row.
    return routed_experts_classify(expert_idx, pooled, params["blocks"], params["fc"])


# ----------------------------------- main ---------------------------------------
if __name__ == "__main__":
    key = jax.random.PRNGKey(0)
    k_par, k_ids, k_gum = jax.random.split(key, 3)

    params = init_params(k_par)

    input_ids = jax.random.randint(k_ids, (B, L), 0, VOCAB, dtype=jnp.int32)
    lengths = jnp.array([L, L - 3], dtype=jnp.int32)
    attention_mask = (jnp.arange(L)[None, :] < lengths[:, None]).astype(jnp.float32)

    # deterministic Gumbel(0,1) noise for F.gumbel_softmax
    u = jax.random.uniform(k_gum, (B, NUM_EXPERTS), minval=1e-9, maxval=1.0)
    gumbel_noise = -jnp.log(-jnp.log(u))

    logits = gamba5_forward(params, input_ids, attention_mask, gumbel_noise)
    jax.block_until_ready(logits)
    assert logits.shape == (B, NUM_LABELS)
    print("KERNEL_OK")
</pallas_src>

<mosaic_0001>
module attributes {stable_mosaic.version = 11 : i64} {
  func.func @_routed_expert_kernel(%arg0: i32, %arg1: memref<2xi32, #tpu.memory_space<smem>>, %arg2: memref<1x1x32xf32, #tpu.memory_space<vmem>>, %arg3: memref<1x6x1x32xf32, #tpu.memory_space<vmem>>, %arg4: memref<1x6x32x224xbf16, #tpu.memory_space<vmem>>, %arg5: memref<1x6x1x224xf32, #tpu.memory_space<vmem>>, %arg6: memref<1x6x1x64xf32, #tpu.memory_space<vmem>>, %arg7: memref<1x6x1x64xf32, #tpu.memory_space<vmem>>, %arg8: memref<1x6x64x32xbf16, #tpu.memory_space<vmem>>, %arg9: memref<1x6x1x32xf32, #tpu.memory_space<vmem>>, %arg10: memref<1x6x32x128xbf16, #tpu.memory_space<vmem>>, %arg11: memref<1x6x1x128xf32, #tpu.memory_space<vmem>>, %arg12: memref<1x6x128x32xbf16, #tpu.memory_space<vmem>>, %arg13: memref<1x6x1x32xf32, #tpu.memory_space<vmem>>, %arg14: memref<32x4xf32, #tpu.memory_space<vmem>>, %arg15: memref<1x4xf32, #tpu.memory_space<vmem>>, %arg16: memref<1x1x4xf32, #tpu.memory_space<vmem>>) attributes {dimension_semantics = [#tpu.dimension_semantics<parallel>], iteration_bounds = array<i64: 2>, scalar_prefetch = 1 : i64, scratch_operands = 0 : i64, tpu.core_type = #tpu.core_type<tc>, window_params = [{transform_indices = @transform_0, window_bounds = array<i64: 1, 1, 32>}, {transform_indices = @transform_1, window_bounds = array<i64: 1, 6, 1, 32>}, {transform_indices = @transform_2, window_bounds = array<i64: 1, 6, 32, 224>}, {transform_indices = @transform_3, window_bounds = array<i64: 1, 6, 1, 224>}, {transform_indices = @transform_4, window_bounds = array<i64: 1, 6, 1, 64>}, {transform_indices = @transform_5, window_bounds = array<i64: 1, 6, 1, 64>}, {transform_indices = @transform_6, window_bounds = array<i64: 1, 6, 64, 32>}, {transform_indices = @transform_7, window_bounds = array<i64: 1, 6, 1, 32>}, {transform_indices = @transform_8, window_bounds = array<i64: 1, 6, 32, 128>}, {transform_indices = @transform_9, window_bounds = array<i64: 1, 6, 1, 128>}, {transform_indices = @transform_10, window_bounds = array<i64: 1, 6, 128, 32>}, {transform_indices = @transform_11, window_bounds = array<i64: 1, 6, 1, 32>}, {pipeline_mode = #tpu.pipeline_mode<synchronous>, transform_indices = @transform_12, window_bounds = array<i64: 32, 4>}, {pipeline_mode = #tpu.pipeline_mode<synchronous>, transform_indices = @transform_13, window_bounds = array<i64: 1, 4>}, {transform_indices = @transform_14, window_bounds = array<i64: 1, 1, 4>}]} {
    %c0 = arith.constant 0 : index
    %c0_0 = arith.constant 0 : index
    %c0_1 = arith.constant 0 : index
    %0 = vector.load %arg2[%c0, %c0_0, %c0_1] : memref<1x1x32xf32, #tpu.memory_space<vmem>>, vector<1x1x32xf32>
    %1 = vector.shape_cast %0 : vector<1x1x32xf32> to vector<1x32xf32>
    %c0_2 = arith.constant 0 : index
    %c0_3 = arith.constant 0 : index
    %c0_4 = arith.constant 0 : index
    %c0_5 = arith.constant 0 : index
    %2 = vector.load %arg3[%c0_2, %c0_3, %c0_4, %c0_5] : memref<1x6x1x32xf32, #tpu.memory_space<vmem>>, vector<1x1x1x32xf32>
    %3 = vector.shape_cast %2 : vector<1x1x1x32xf32> to vector<1x32xf32>
    %4 = arith.mulf %3, %1 : vector<1x32xf32>
    %5 = arith.mulf %1, %1 : vector<1x32xf32>
    %cst = arith.constant dense<0.000000e+00> : vector<1xf32>
    %6 = vector.multi_reduction <add>, %5, %cst [1] : vector<1x32xf32> to vector<1xf32>
    %7 = vector.shape_cast %6 : vector<1xf32> to vector<1x1xf32>
    %cst_6 = arith.constant 9.99999997E-7 : f32
    %8 = vector.broadcast %cst_6 : f32 to vector<1x1xf32>
    %9 = arith.addf %7, %8 : vector<1x1xf32>
    %10 = math.rsqrt %9 : vector<1x1xf32>
    %11 = vector.broadcast %10 : vector<1x1xf32> to vector<1x32xf32>
    %12 = arith.mulf %4, %11 : vector<1x32xf32>
    %13 = arith.truncf %12 : vector<1x32xf32> to vector<1x32xbf16>
    %c0_7 = arith.constant 0 : index
    %c0_8 = arith.constant 0 : index
    %c0_9 = arith.constant 0 : index
    %c0_10 = arith.constant 0 : index
    %14 = vector.load %arg4[%c0_7, %c0_8, %c0_9, %c0_10] : memref<1x6x32x224xbf16, #tpu.memory_space<vmem>>, vector<1x1x32x224xbf16>
    %15 = vector.shape_cast %14 : vector<1x1x32x224xbf16> to vector<32x224xbf16>
    %cst_11 = arith.constant dense<0.000000e+00> : vector<1x224xf32>
    %16 = tpu.matmul %13, %15, %cst_11 {dimension_numbers = #tpu.dot_dimension_numbers<[1], [0], [0], [1], [0, 0, 1, 1], [], []>} : vector<1x32xbf16>, vector<32x224xbf16>, vector<1x224xf32> -> vector<1x224xf32>
    %c0_12 = arith.constant 0 : index
    %c0_13 = arith.constant 0 : index
    %c0_14 = arith.constant 0 : index
    %c0_15 = arith.constant 0 : index
    %17 = vector.load %arg5[%c0_12, %c0_13, %c0_14, %c0_15] : memref<1x6x1x224xf32, #tpu.memory_space<vmem>>, vector<1x1x1x224xf32>
    %18 = vector.shape_cast %17 : vector<1x1x1x224xf32> to vector<1x224xf32>
    %19 = arith.addf %16, %18 : vector<1x224xf32>
    %20 = vector.extract_strided_slice %19 {offsets = [0, 0], sizes = [1, 64], strides = [1, 1]} : vector<1x224xf32> to vector<1x64xf32>
    %21 = vector.extract_strided_slice %19 {offsets = [0, 64], sizes = [1, 96], strides = [1, 1]} : vector<1x224xf32> to vector<1x96xf32>
    %22 = arith.negf %21 : vector<1x96xf32>
    %23 = math.exp %22 : vector<1x96xf32>
    %cst_16 = arith.constant 1.000000e+00 : f32
    %24 = vector.broadcast %cst_16 : f32 to vector<1x96xf32>
    %25 = arith.addf %24, %23 : vector<1x96xf32>
    %26 = arith.divf %24, %25 : vector<1x96xf32>
    %27 = arith.mulf %21, %26 : vector<1x96xf32>
    %28 = vector.extract_strided_slice %27 {offsets = [0, 0], sizes = [1, 64], strides = [1, 1]} : vector<1x96xf32> to vector<1x64xf32>
    %29 = vector.extract_strided_slice %27 {offsets = [0, 64], sizes = [1, 16], strides = [1, 1]} : vector<1x96xf32> to vector<1x16xf32>
    %30 = vector.extract_strided_slice %27 {offsets = [0, 80], sizes = [1, 16], strides = [1, 1]} : vector<1x96xf32> to vector<1x16xf32>
    %31 = vector.extract_strided_slice %19 {offsets = [0, 160], sizes = [1, 64], strides = [1, 1]} : vector<1x224xf32> to vector<1x64xf32>
    %cst_17 = arith.constant 2.000000e+01 : f32
    %32 = vector.broadcast %cst_17 : f32 to vector<1x64xf32>
    %33 = arith.cmpf ogt, %31, %32 : vector<1x64xf32>
    %34 = math.exp %31 : vector<1x64xf32>
    %cst_18 = arith.constant 1.000000e+00 : f32
    %35 = vector.broadcast %cst_18 : f32 to vector<1x64xf32>
    %36 = arith.addf %35, %34 : vector<1x64xf32>
    %37 = math.log %36 : vector<1x64xf32>
    %38 = arith.select %33, %31, %37 : vector<1x64xi1>, vector<1x64xf32>
    %39 = arith.mulf %29, %30 : vector<1x16xf32>
    %cst_19 = arith.constant dense<0.000000e+00> : vector<1xf32>
    %40 = vector.multi_reduction <add>, %39, %cst_19 [1] : vector<1x16xf32> to vector<1xf32>
    %41 = vector.shape_cast %40 : vector<1xf32> to vector<1x1xf32>
    %42 = vector.broadcast %41 : vector<1x1xf32> to vector<1x64xf32>
    %43 = arith.mulf %38, %42 : vector<1x64xf32>
    %c0_20 = arith.constant 0 : index
    %c0_21 = arith.constant 0 : index
    %c0_22 = arith.constant 0 : index
    %c0_23 = arith.constant 0 : index
    %44 = vector.load %arg6[%c0_20, %c0_21, %c0_22, %c0_23] : memref<1x6x1x64xf32, #tpu.memory_space<vmem>>, vector<1x1x1x64xf32>
    %45 = vector.shape_cast %44 : vector<1x1x1x64xf32> to vector<1x64xf32>
    %46 = arith.addf %43, %45 : vector<1x64xf32>
    %47 = arith.mulf %46, %28 : vector<1x64xf32>
    %48 = arith.negf %20 : vector<1x64xf32>
    %49 = math.exp %48 : vector<1x64xf32>
    %cst_24 = arith.constant 1.000000e+00 : f32
    %50 = vector.broadcast %cst_24 : f32 to vector<1x64xf32>
    %51 = arith.addf %50, %49 : vector<1x64xf32>
    %52 = arith.divf %50, %51 : vector<1x64xf32>
    %53 = arith.mulf %20, %52 : vector<1x64xf32>
    %54 = arith.mulf %47, %53 : vector<1x64xf32>
    %55 = arith.mulf %54, %54 : vector<1x64xf32>
    %cst_25 = arith.constant dense<0.000000e+00> : vector<1xf32>
    %56 = vector.multi_reduction <add>, %55, %cst_25 [1] : vector<1x64xf32> to vector<1xf32>
    %57 = vector.shape_cast %56 : vector<1xf32> to vector<1x1xf32>
    %cst_26 = arith.constant 6.400000e+01 : f32
    %58 = vector.broadcast %cst_26 : f32 to vector<1x1xf32>
    %59 = arith.divf %57, %58 : vector<1x1xf32>
    %cst_27 = arith.constant 9.99999974E-6 : f32
    %60 = vector.broadcast %cst_27 : f32 to vector<1x1xf32>
    %61 = arith.addf %59, %60 : vector<1x1xf32>
    %62 = math.rsqrt %61 : vector<1x1xf32>
    %63 = vector.broadcast %62 : vector<1x1xf32> to vector<1x64xf32>
    %64 = arith.mulf %54, %63 : vector<1x64xf32>
    %c0_28 = arith.constant 0 : index
    %c0_29 = arith.constant 0 : index
    %c0_30 = arith.constant 0 : index
    %c0_31 = arith.constant 0 : index
    %65 = vector.load %arg7[%c0_28, %c0_29, %c0_30, %c0_31] : memref<1x6x1x64xf32, #tpu.memory_space<vmem>>, vector<1x1x1x64xf32>
    %66 = vector.shape_cast %65 : vector<1x1x1x64xf32> to vector<1x64xf32>
    %67 = arith.mulf %64, %66 : vector<1x64xf32>
    %68 = arith.truncf %67 : vector<1x64xf32> to vector<1x64xbf16>
    %c0_32 = arith.constant 0 : index
    %c0_33 = arith.constant 0 : index
    %c0_34 = arith.constant 0 : index
    %c0_35 = arith.constant 0 : index
    %69 = vector.load %arg8[%c0_32, %c0_33, %c0_34, %c0_35] : memref<1x6x64x32xbf16, #tpu.memory_space<vmem>>, vector<1x1x64x32xbf16>
    %70 = vector.shape_cast %69 : vector<1x1x64x32xbf16> to vector<64x32xbf16>
    %cst_36 = arith.constant dense<0.000000e+00> : vector<1x32xf32>
    %71 = tpu.matmul %68, %70, %cst_36 {dimension_numbers = #tpu.dot_dimension_numbers<[1], [0], [0], [1], [0, 0, 1, 1], [], []>} : vector<1x64xbf16>, vector<64x32xbf16>, vector<1x32xf32> -> vector<1x32xf32>
    %72 = arith.addf %1, %71 : vector<1x32xf32>
    %c0_37 = arith.constant 0 : index
    %c0_38 = arith.constant 0 : index
    %c0_39 = arith.constant 0 : index
    %c0_40 = arith.constant 0 : index
    %73 = vector.load %arg9[%c0_37, %c0_38, %c0_39, %c0_40] : memref<1x6x1x32xf32, #tpu.memory_space<vmem>>, vector<1x1x1x32xf32>
    %74 = vector.shape_cast %73 : vector<1x1x1x32xf32> to vector<1x32xf32>
    %75 = arith.mulf %74, %72 : vector<1x32xf32>
    %76 = arith.mulf %72, %72 : vector<1x32xf32>
    %cst_41 = arith.constant dense<0.000000e+00> : vector<1xf32>
    %77 = vector.multi_reduction <add>, %76, %cst_41 [1] : vector<1x32xf32> to vector<1xf32>
    %78 = vector.shape_cast %77 : vector<1xf32> to vector<1x1xf32>
    %cst_42 = arith.constant 9.99999997E-7 : f32
    %79 = vector.broadcast %cst_42 : f32 to vector<1x1xf32>
    %80 = arith.addf %78, %79 : vector<1x1xf32>
    %81 = math.rsqrt %80 : vector<1x1xf32>
    %82 = vector.broadcast %81 : vector<1x1xf32> to vector<1x32xf32>
    %83 = arith.mulf %75, %82 : vector<1x32xf32>
    %84 = arith.truncf %83 : vector<1x32xf32> to vector<1x32xbf16>
    %c0_43 = arith.constant 0 : index
    %c0_44 = arith.constant 0 : index
    %c0_45 = arith.constant 0 : index
    %c0_46 = arith.constant 0 : index
    %85 = vector.load %arg10[%c0_43, %c0_44, %c0_45, %c0_46] : memref<1x6x32x128xbf16, #tpu.memory_space<vmem>>, vector<1x1x32x128xbf16>
    %86 = vector.shape_cast %85 : vector<1x1x32x128xbf16> to vector<32x128xbf16>
    %cst_47 = arith.constant dense<0.000000e+00> : vector<1x128xf32>
    %87 = tpu.matmul %84, %86, %cst_47 {dimension_numbers = #tpu.dot_dimension_numbers<[1], [0], [0], [1], [0, 0, 1, 1], [], []>} : vector<1x32xbf16>, vector<32x128xbf16>, vector<1x128xf32> -> vector<1x128xf32>
    %c0_48 = arith.constant 0 : index
    %c0_49 = arith.constant 0 : index
    %c0_50 = arith.constant 0 : index
    %c0_51 = arith.constant 0 : index
    %88 = vector.load %arg11[%c0_48, %c0_49, %c0_50, %c0_51] : memref<1x6x1x128xf32, #tpu.memory_space<vmem>>, vector<1x1x1x128xf32>
    %89 = vector.shape_cast %88 : vector<1x1x1x128xf32> to vector<1x128xf32>
    %90 = arith.addf %87, %89 : vector<1x128xf32>
    %cst_52 = arith.constant 5.000000e-01 : f32
    %91 = vector.broadcast %cst_52 : f32 to vector<1x128xf32>
    %92 = arith.mulf %91, %90 : vector<1x128xf32>
    %cst_53 = arith.constant 0.707106769 : f32
    %93 = vector.broadcast %cst_53 : f32 to vector<1x128xf32>
    %94 = arith.mulf %90, %93 : vector<1x128xf32>
    %cst_54 = arith.constant 0.000000e+00 : f32
    %95 = vector.broadcast %cst_54 : f32 to vector<1x128xf32>
    %96 = arith.cmpf oge, %94, %95 : vector<1x128xf32>
    %cst_55 = arith.constant 1.000000e+00 : f32
    %cst_56 = arith.constant -1.000000e+00 : f32
    %97 = vector.broadcast %cst_55 : f32 to vector<1x128xf32>
    %98 = vector.broadcast %cst_56 : f32 to vector<1x128xf32>
    %99 = arith.select %96, %97, %98 : vector<1x128xi1>, vector<1x128xf32>
    %100 = math.absf %94 : vector<1x128xf32>
    %cst_57 = arith.constant 0.327591091 : f32
    %101 = vector.broadcast %cst_57 : f32 to vector<1x128xf32>
    %102 = arith.mulf %101, %100 : vector<1x128xf32>
    %cst_58 = arith.constant 1.000000e+00 : f32
    %103 = vector.broadcast %cst_58 : f32 to vector<1x128xf32>
    %104 = arith.addf %103, %102 : vector<1x128xf32>
    %cst_59 = arith.constant 1.000000e+00 : f32
    %105 = vector.broadcast %cst_59 : f32 to vector<1x128xf32>
    %106 = arith.divf %105, %104 : vector<1x128xf32>
    %cst_60 = arith.constant 1.06140542 : f32
    %107 = vector.broadcast %cst_60 : f32 to vector<1x128xf32>
    %108 = arith.mulf %107, %106 : vector<1x128xf32>
    %cst_61 = arith.constant -1.45315206 : f32
    %109 = vector.broadcast %cst_61 : f32 to vector<1x128xf32>
    %110 = arith.addf %108, %109 : vector<1x128xf32>
    %111 = arith.mulf %110, %106 : vector<1x128xf32>
    %cst_62 = arith.constant 1.42141378 : f32
    %112 = vector.broadcast %cst_62 : f32 to vector<1x128xf32>
    %113 = arith.addf %111, %112 : vector<1x128xf32>
    %114 = arith.mulf %113, %106 : vector<1x128xf32>
    %cst_63 = arith.constant -0.284496725 : f32
    %115 = vector.broadcast %cst_63 : f32 to vector<1x128xf32>
    %116 = arith.addf %114, %115 : vector<1x128xf32>
    %117 = arith.mulf %116, %106 : vector<1x128xf32>
    %cst_64 = arith.constant 0.254829586 : f32
    %118 = vector.broadcast %cst_64 : f32 to vector<1x128xf32>
    %119 = arith.addf %117, %118 : vector<1x128xf32>
    %120 = arith.mulf %119, %106 : vector<1x128xf32>
    %cst_65 = arith.constant 0.000000e+00 : f32
    %121 = vector.broadcast %cst_65 : f32 to vector<1x128xf32>
    %122 = arith.subf %121, %100 : vector<1x128xf32>
    %123 = arith.mulf %122, %100 : vector<1x128xf32>
    %124 = math.exp %123 : vector<1x128xf32>
    %125 = arith.mulf %120, %124 : vector<1x128xf32>
    %cst_66 = arith.constant 1.000000e+00 : f32
    %126 = vector.broadcast %cst_66 : f32 to vector<1x128xf32>
    %127 = arith.subf %126, %125 : vector<1x128xf32>
    %128 = arith.mulf %99, %127 : vector<1x128xf32>
    %cst_67 = arith.constant 1.000000e+00 : f32
    %129 = vector.broadcast %cst_67 : f32 to vector<1x128xf32>
    %130 = arith.addf %129, %128 : vector<1x128xf32>
    %131 = arith.mulf %92, %130 : vector<1x128xf32>
    %132 = arith.truncf %131 : vector<1x128xf32> to vector<1x128xbf16>
    %c0_68 = arith.constant 0 : index
    %c0_69 = arith.constant 0 : index
    %c0_70 = arith.constant 0 : index
    %c0_71 = arith.constant 0 : index
    %133 = vector.load %arg12[%c0_68, %c0_69, %c0_70, %c0_71] : memref<1x6x128x32xbf16, #tpu.memory_space<vmem>>, vector<1x1x128x32xbf16>
    %134 = vector.shape_cast %133 : vector<1x1x128x32xbf16> to vector<128x32xbf16>
    %cst_72 = arith.constant dense<0.000000e+00> : vector<1x32xf32>
    %135 = tpu.matmul %132, %134, %cst_72 {dimension_numbers = #tpu.dot_dimension_numbers<[1], [0], [0], [1], [0, 0, 1, 1], [], []>} : vector<1x128xbf16>, vector<128x32xbf16>, vector<1x32xf32> -> vector<1x32xf32>
    %136 = arith.addf %72, %135 : vector<1x32xf32>
    %c0_73 = arith.constant 0 : index
    %c0_74 = arith.constant 0 : index
    %c0_75 = arith.constant 0 : index
    %c0_76 = arith.constant 0 : index
    %137 = vector.load %arg13[%c0_73, %c0_74, %c0_75, %c0_76] : memref<1x6x1x32xf32, #tpu.memory_space<vmem>>, vector<1x1x1x32xf32>
    %138 = vector.shape_cast %137 : vector<1x1x1x32xf32> to vector<1x32xf32>
    %139 = arith.addf %136, %138 : vector<1x32xf32>
    %c0_77 = arith.constant 0 : index
    %c1 = arith.constant 1 : index
    %c0_78 = arith.constant 0 : index
    %c0_79 = arith.constant 0 : index
    %140 = vector.load %arg3[%c0_77, %c1, %c0_78, %c0_79] : memref<1x6x1x32xf32, #tpu.memory_space<vmem>>, vector<1x1x1x32xf32>
    %141 = vector.shape_cast %140 : vector<1x1x1x32xf32> to vector<1x32xf32>
    %142 = arith.mulf %141, %139 : vector<1x32xf32>
    %143 = arith.mulf %139, %139 : vector<1x32xf32>
    %cst_80 = arith.constant dense<0.000000e+00> : vector<1xf32>
    %144 = vector.multi_reduction <add>, %143, %cst_80 [1] : vector<1x32xf32> to vector<1xf32>
    %145 = vector.shape_cast %144 : vector<1xf32> to vector<1x1xf32>
    %cst_81 = arith.constant 9.99999997E-7 : f32
    %146 = vector.broadcast %cst_81 : f32 to vector<1x1xf32>
    %147 = arith.addf %145, %146 : vector<1x1xf32>
    %148 = math.rsqrt %147 : vector<1x1xf32>
    %149 = vector.broadcast %148 : vector<1x1xf32> to vector<1x32xf32>
    %150 = arith.mulf %142, %149 : vector<1x32xf32>
    %151 = arith.truncf %150 : vector<1x32xf32> to vector<1x32xbf16>
    %c0_82 = arith.constant 0 : index
    %c1_83 = arith.constant 1 : index
    %c0_84 = arith.constant 0 : index
    %c0_85 = arith.constant 0 : index
    %152 = vector.load %arg4[%c0_82, %c1_83, %c0_84, %c0_85] : memref<1x6x32x224xbf16, #tpu.memory_space<vmem>>, vector<1x1x32x224xbf16>
    %153 = vector.shape_cast %152 : vector<1x1x32x224xbf16> to vector<32x224xbf16>
    %cst_86 = arith.constant dense<0.000000e+00> : vector<1x224xf32>
    %154 = tpu.matmul %151, %153, %cst_86 {dimension_numbers = #tpu.dot_dimension_numbers<[1], [0], [0], [1], [0, 0, 1, 1], [], []>} : vector<1x32xbf16>, vector<32x224xbf16>, vector<1x224xf32> -> vector<1x224xf32>
    %c0_87 = arith.constant 0 : index
    %c1_88 = arith.constant 1 : index
    %c0_89 = arith.constant 0 : index
    %c0_90 = arith.constant 0 : index
    %155 = vector.load %arg5[%c0_87, %c1_88, %c0_89, %c0_90] : memref<1x6x1x224xf32, #tpu.memory_space<vmem>>, vector<1x1x1x224xf32>
    %156 = vector.shape_cast %155 : vector<1x1x1x224xf32> to vector<1x224xf32>
    %157 = arith.addf %154, %156 : vector<1x224xf32>
    %158 = vector.extract_strided_slice %157 {offsets = [0, 0], sizes = [1, 64], strides = [1, 1]} : vector<1x224xf32> to vector<1x64xf32>
    %159 = vector.extract_strided_slice %157 {offsets = [0, 64], sizes = [1, 96], strides = [1, 1]} : vector<1x224xf32> to vector<1x96xf32>
    %160 = arith.negf %159 : vector<1x96xf32>
    %161 = math.exp %160 : vector<1x96xf32>
    %cst_91 = arith.constant 1.000000e+00 : f32
    %162 = vector.broadcast %cst_91 : f32 to vector<1x96xf32>
    %163 = arith.addf %162, %161 : vector<1x96xf32>
    %164 = arith.divf %162, %163 : vector<1x96xf32>
    %165 = arith.mulf %159, %164 : vector<1x96xf32>
    %166 = vector.extract_strided_slice %165 {offsets = [0, 0], sizes = [1, 64], strides = [1, 1]} : vector<1x96xf32> to vector<1x64xf32>
    %167 = vector.extract_strided_slice %165 {offsets = [0, 64], sizes = [1, 16], strides = [1, 1]} : vector<1x96xf32> to vector<1x16xf32>
    %168 = vector.extract_strided_slice %165 {offsets = [0, 80], sizes = [1, 16], strides = [1, 1]} : vector<1x96xf32> to vector<1x16xf32>
    %169 = vector.extract_strided_slice %157 {offsets = [0, 160], sizes = [1, 64], strides = [1, 1]} : vector<1x224xf32> to vector<1x64xf32>
    %cst_92 = arith.constant 2.000000e+01 : f32
    %170 = vector.broadcast %cst_92 : f32 to vector<1x64xf32>
    %171 = arith.cmpf ogt, %169, %170 : vector<1x64xf32>
    %172 = math.exp %169 : vector<1x64xf32>
    %cst_93 = arith.constant 1.000000e+00 : f32
    %173 = vector.broadcast %cst_93 : f32 to vector<1x64xf32>
    %174 = arith.addf %173, %172 : vector<1x64xf32>
    %175 = math.log %174 : vector<1x64xf32>
    %176 = arith.select %171, %169, %175 : vector<1x64xi1>, vector<1x64xf32>
    %177 = arith.mulf %167, %168 : vector<1x16xf32>
    %cst_94 = arith.constant dense<0.000000e+00> : vector<1xf32>
    %178 = vector.multi_reduction <add>, %177, %cst_94 [1] : vector<1x16xf32> to vector<1xf32>
    %179 = vector.shape_cast %178 : vector<1xf32> to vector<1x1xf32>
    %180 = vector.broadcast %179 : vector<1x1xf32> to vector<1x64xf32>
    %181 = arith.mulf %176, %180 : vector<1x64xf32>
    %c0_95 = arith.constant 0 : index
    %c1_96 = arith.constant 1 : index
    %c0_97 = arith.constant 0 : index
    %c0_98 = arith.constant 0 : index
    %182 = vector.load %arg6[%c0_95, %c1_96, %c0_97, %c0_98] : memref<1x6x1x64xf32, #tpu.memory_space<vmem>>, vector<1x1x1x64xf32>
    %183 = vector.shape_cast %182 : vector<1x1x1x64xf32> to vector<1x64xf32>
    %184 = arith.addf %181, %183 : vector<1x64xf32>
    %185 = arith.mulf %184, %166 : vector<1x64xf32>
    %186 = arith.negf %158 : vector<1x64xf32>
    %187 = math.exp %186 : vector<1x64xf32>
    %cst_99 = arith.constant 1.000000e+00 : f32
    %188 = vector.broadcast %cst_99 : f32 to vector<1x64xf32>
    %189 = arith.addf %188, %187 : vector<1x64xf32>
    %190 = arith.divf %188, %189 : vector<1x64xf32>
    %191 = arith.mulf %158, %190 : vector<1x64xf32>
    %192 = arith.mulf %185, %191 : vector<1x64xf32>
    %193 = arith.mulf %192, %192 : vector<1x64xf32>
    %cst_100 = arith.constant dense<0.000000e+00> : vector<1xf32>
    %194 = vector.multi_reduction <add>, %193, %cst_100 [1] : vector<1x64xf32> to vector<1xf32>
    %195 = vector.shape_cast %194 : vector<1xf32> to vector<1x1xf32>
    %cst_101 = arith.constant 6.400000e+01 : f32
    %196 = vector.broadcast %cst_101 : f32 to vector<1x1xf32>
    %197 = arith.divf %195, %196 : vector<1x1xf32>
    %cst_102 = arith.constant 9.99999974E-6 : f32
    %198 = vector.broadcast %cst_102 : f32 to vector<1x1xf32>
    %199 = arith.addf %197, %198 : vector<1x1xf32>
    %200 = math.rsqrt %199 : vector<1x1xf32>
    %201 = vector.broadcast %200 : vector<1x1xf32> to vector<1x64xf32>
    %202 = arith.mulf %192, %201 : vector<1x64xf32>
    %c0_103 = arith.constant 0 : index
    %c1_104 = arith.constant 1 : index
    %c0_105 = arith.constant 0 : index
    %c0_106 = arith.constant 0 : index
    %203 = vector.load %arg7[%c0_103, %c1_104, %c0_105, %c0_106] : memref<1x6x1x64xf32, #tpu.memory_space<vmem>>, vector<1x1x1x64xf32>
    %204 = vector.shape_cast %203 : vector<1x1x1x64xf32> to vector<1x64xf32>
    %205 = arith.mulf %202, %204 : vector<1x64xf32>
    %206 = arith.truncf %205 : vector<1x64xf32> to vector<1x64xbf16>
    %c0_107 = arith.constant 0 : index
    %c1_108 = arith.constant 1 : index
    %c0_109 = arith.constant 0 : index
    %c0_110 = arith.constant 0 : index
    %207 = vector.load %arg8[%c0_107, %c1_108, %c0_109, %c0_110] : memref<1x6x64x32xbf16, #tpu.memory_space<vmem>>, vector<1x1x64x32xbf16>
    %208 = vector.shape_cast %207 : vector<1x1x64x32xbf16> to vector<64x32xbf16>
    %cst_111 = arith.constant dense<0.000000e+00> : vector<1x32xf32>
    %209 = tpu.matmul %206, %208, %cst_111 {dimension_numbers = #tpu.dot_dimension_numbers<[1], [0], [0], [1], [0, 0, 1, 1], [], []>} : vector<1x64xbf16>, vector<64x32xbf16>, vector<1x32xf32> -> vector<1x32xf32>
    %210 = arith.addf %139, %209 : vector<1x32xf32>
    %c0_112 = arith.constant 0 : index
    %c1_113 = arith.constant 1 : index
    %c0_114 = arith.constant 0 : index
    %c0_115 = arith.constant 0 : index
    %211 = vector.load %arg9[%c0_112, %c1_113, %c0_114, %c0_115] : memref<1x6x1x32xf32, #tpu.memory_space<vmem>>, vector<1x1x1x32xf32>
    %212 = vector.shape_cast %211 : vector<1x1x1x32xf32> to vector<1x32xf32>
    %213 = arith.mulf %212, %210 : vector<1x32xf32>
    %214 = arith.mulf %210, %210 : vector<1x32xf32>
    %cst_116 = arith.constant dense<0.000000e+00> : vector<1xf32>
    %215 = vector.multi_reduction <add>, %214, %cst_116 [1] : vector<1x32xf32> to vector<1xf32>
    %216 = vector.shape_cast %215 : vector<1xf32> to vector<1x1xf32>
    %cst_117 = arith.constant 9.99999997E-7 : f32
    %217 = vector.broadcast %cst_117 : f32 to vector<1x1xf32>
    %218 = arith.addf %216, %217 : vector<1x1xf32>
    %219 = math.rsqrt %218 : vector<1x1xf32>
    %220 = vector.broadcast %219 : vector<1x1xf32> to vector<1x32xf32>
    %221 = arith.mulf %213, %220 : vector<1x32xf32>
    %222 = arith.truncf %221 : vector<1x32xf32> to vector<1x32xbf16>
    %c0_118 = arith.constant 0 : index
    %c1_119 = arith.constant 1 : index
    %c0_120 = arith.constant 0 : index
    %c0_121 = arith.constant 0 : index
    %223 = vector.load %arg10[%c0_118, %c1_119, %c0_120, %c0_121] : memref<1x6x32x128xbf16, #tpu.memory_space<vmem>>, vector<1x1x32x128xbf16>
    %224 = vector.shape_cast %223 : vector<1x1x32x128xbf16> to vector<32x128xbf16>
    %cst_122 = arith.constant dense<0.000000e+00> : vector<1x128xf32>
    %225 = tpu.matmul %222, %224, %cst_122 {dimension_numbers = #tpu.dot_dimension_numbers<[1], [0], [0], [1], [0, 0, 1, 1], [], []>} : vector<1x32xbf16>, vector<32x128xbf16>, vector<1x128xf32> -> vector<1x128xf32>
    %c0_123 = arith.constant 0 : index
    %c1_124 = arith.constant 1 : index
    %c0_125 = arith.constant 0 : index
    %c0_126 = arith.constant 0 : index
    %226 = vector.load %arg11[%c0_123, %c1_124, %c0_125, %c0_126] : memref<1x6x1x128xf32, #tpu.memory_space<vmem>>, vector<1x1x1x128xf32>
    %227 = vector.shape_cast %226 : vector<1x1x1x128xf32> to vector<1x128xf32>
    %228 = arith.addf %225, %227 : vector<1x128xf32>
    %cst_127 = arith.constant 5.000000e-01 : f32
    %229 = vector.broadcast %cst_127 : f32 to vector<1x128xf32>
    %230 = arith.mulf %229, %228 : vector<1x128xf32>
    %cst_128 = arith.constant 0.707106769 : f32
    %231 = vector.broadcast %cst_128 : f32 to vector<1x128xf32>
    %232 = arith.mulf %228, %231 : vector<1x128xf32>
    %cst_129 = arith.constant 0.000000e+00 : f32
    %233 = vector.broadcast %cst_129 : f32 to vector<1x128xf32>
    %234 = arith.cmpf oge, %232, %233 : vector<1x128xf32>
    %cst_130 = arith.constant 1.000000e+00 : f32
    %cst_131 = arith.constant -1.000000e+00 : f32
    %235 = vector.broadcast %cst_130 : f32 to vector<1x128xf32>
    %236 = vector.broadcast %cst_131 : f32 to vector<1x128xf32>
    %237 = arith.select %234, %235, %236 : vector<1x128xi1>, vector<1x128xf32>
    %238 = math.absf %232 : vector<1x128xf32>
    %cst_132 = arith.constant 0.327591091 : f32
    %239 = vector.broadcast %cst_132 : f32 to vector<1x128xf32>
    %240 = arith.mulf %239, %238 : vector<1x128xf32>
    %cst_133 = arith.constant 1.000000e+00 : f32
    %241 = vector.broadcast %cst_133 : f32 to vector<1x128xf32>
    %242 = arith.addf %241, %240 : vector<1x128xf32>
    %cst_134 = arith.constant 1.000000e+00 : f32
    %243 = vector.broadcast %cst_134 : f32 to vector<1x128xf32>
    %244 = arith.divf %243, %242 : vector<1x128xf32>
    %cst_135 = arith.constant 1.06140542 : f32
    %245 = vector.broadcast %cst_135 : f32 to vector<1x128xf32>
    %246 = arith.mulf %245, %244 : vector<1x128xf32>
    %cst_136 = arith.constant -1.45315206 : f32
    %247 = vector.broadcast %cst_136 : f32 to vector<1x128xf32>
    %248 = arith.addf %246, %247 : vector<1x128xf32>
    %249 = arith.mulf %248, %244 : vector<1x128xf32>
    %cst_137 = arith.constant 1.42141378 : f32
    %250 = vector.broadcast %cst_137 : f32 to vector<1x128xf32>
    %251 = arith.addf %249, %250 : vector<1x128xf32>
    %252 = arith.mulf %251, %244 : vector<1x128xf32>
    %cst_138 = arith.constant -0.284496725 : f32
    %253 = vector.broadcast %cst_138 : f32 to vector<1x128xf32>
    %254 = arith.addf %252, %253 : vector<1x128xf32>
    %255 = arith.mulf %254, %244 : vector<1x128xf32>
    %cst_139 = arith.constant 0.254829586 : f32
    %256 = vector.broadcast %cst_139 : f32 to vector<1x128xf32>
    %257 = arith.addf %255, %256 : vector<1x128xf32>
    %258 = arith.mulf %257, %244 : vector<1x128xf32>
    %cst_140 = arith.constant 0.000000e+00 : f32
    %259 = vector.broadcast %cst_140 : f32 to vector<1x128xf32>
    %260 = arith.subf %259, %238 : vector<1x128xf32>
    %261 = arith.mulf %260, %238 : vector<1x128xf32>
    %262 = math.exp %261 : vector<1x128xf32>
    %263 = arith.mulf %258, %262 : vector<1x128xf32>
    %cst_141 = arith.constant 1.000000e+00 : f32
    %264 = vector.broadcast %cst_141 : f32 to vector<1x128xf32>
    %265 = arith.subf %264, %263 : vector<1x128xf32>
    %266 = arith.mulf %237, %265 : vector<1x128xf32>
    %cst_142 = arith.constant 1.000000e+00 : f32
    %267 = vector.broadcast %cst_142 : f32 to vector<1x128xf32>
    %268 = arith.addf %267, %266 : vector<1x128xf32>
    %269 = arith.mulf %230, %268 : vector<1x128xf32>
    %270 = arith.truncf %269 : vector<1x128xf32> to vector<1x128xbf16>
    %c0_143 = arith.constant 0 : index
    %c1_144 = arith.constant 1 : index
    %c0_145 = arith.constant 0 : index
    %c0_146 = arith.constant 0 : index
    %271 = vector.load %arg12[%c0_143, %c1_144, %c0_145, %c0_146] : memref<1x6x128x32xbf16, #tpu.memory_space<vmem>>, vector<1x1x128x32xbf16>
    %272 = vector.shape_cast %271 : vector<1x1x128x32xbf16> to vector<128x32xbf16>
    %cst_147 = arith.constant dense<0.000000e+00> : vector<1x32xf32>
    %273 = tpu.matmul %270, %272, %cst_147 {dimension_numbers = #tpu.dot_dimension_numbers<[1], [0], [0], [1], [0, 0, 1, 1], [], []>} : vector<1x128xbf16>, vector<128x32xbf16>, vector<1x32xf32> -> vector<1x32xf32>
    %274 = arith.addf %210, %273 : vector<1x32xf32>
    %c0_148 = arith.constant 0 : index
    %c1_149 = arith.constant 1 : index
    %c0_150 = arith.constant 0 : index
    %c0_151 = arith.constant 0 : index
    %275 = vector.load %arg13[%c0_148, %c1_149, %c0_150, %c0_151] : memref<1x6x1x32xf32, #tpu.memory_space<vmem>>, vector<1x1x1x32xf32>
    %276 = vector.shape_cast %275 : vector<1x1x1x32xf32> to vector<1x32xf32>
    %277 = arith.addf %274, %276 : vector<1x32xf32>
    %c0_152 = arith.constant 0 : index
    %c2 = arith.constant 2 : index
    %c0_153 = arith.constant 0 : index
    %c0_154 = arith.constant 0 : index
    %278 = vector.load %arg3[%c0_152, %c2, %c0_153, %c0_154] : memref<1x6x1x32xf32, #tpu.memory_space<vmem>>, vector<1x1x1x32xf32>
    %279 = vector.shape_cast %278 : vector<1x1x1x32xf32> to vector<1x32xf32>
    %280 = arith.mulf %279, %277 : vector<1x32xf32>
    %281 = arith.mulf %277, %277 : vector<1x32xf32>
    %cst_155 = arith.constant dense<0.000000e+00> : vector<1xf32>
    %282 = vector.multi_reduction <add>, %281, %cst_155 [1] : vector<1x32xf32> to vector<1xf32>
    %283 = vector.shape_cast %282 : vector<1xf32> to vector<1x1xf32>
    %cst_156 = arith.constant 9.99999997E-7 : f32
    %284 = vector.broadcast %cst_156 : f32 to vector<1x1xf32>
    %285 = arith.addf %283, %284 : vector<1x1xf32>
    %286 = math.rsqrt %285 : vector<1x1xf32>
    %287 = vector.broadcast %286 : vector<1x1xf32> to vector<1x32xf32>
    %288 = arith.mulf %280, %287 : vector<1x32xf32>
    %289 = arith.truncf %288 : vector<1x32xf32> to vector<1x32xbf16>
    %c0_157 = arith.constant 0 : index
    %c2_158 = arith.constant 2 : index
    %c0_159 = arith.constant 0 : index
    %c0_160 = arith.constant 0 : index
    %290 = vector.load %arg4[%c0_157, %c2_158, %c0_159, %c0_160] : memref<1x6x32x224xbf16, #tpu.memory_space<vmem>>, vector<1x1x32x224xbf16>
    %291 = vector.shape_cast %290 : vector<1x1x32x224xbf16> to vector<32x224xbf16>
    %cst_161 = arith.constant dense<0.000000e+00> : vector<1x224xf32>
    %292 = tpu.matmul %289, %291, %cst_161 {dimension_numbers = #tpu.dot_dimension_numbers<[1], [0], [0], [1], [0, 0, 1, 1], [], []>} : vector<1x32xbf16>, vector<32x224xbf16>, vector<1x224xf32> -> vector<1x224xf32>
    %c0_162 = arith.constant 0 : index
    %c2_163 = arith.constant 2 : index
    %c0_164 = arith.constant 0 : index
    %c0_165 = arith.constant 0 : index
    %293 = vector.load %arg5[%c0_162, %c2_163, %c0_164, %c0_165] : memref<1x6x1x224xf32, #tpu.memory_space<vmem>>, vector<1x1x1x224xf32>
    %294 = vector.shape_cast %293 : vector<1x1x1x224xf32> to vector<1x224xf32>
    %295 = arith.addf %292, %294 : vector<1x224xf32>
    %296 = vector.extract_strided_slice %295 {offsets = [0, 0], sizes = [1, 64], strides = [1, 1]} : vector<1x224xf32> to vector<1x64xf32>
    %297 = vector.extract_strided_slice %295 {offsets = [0, 64], sizes = [1, 96], strides = [1, 1]} : vector<1x224xf32> to vector<1x96xf32>
    %298 = arith.negf %297 : vector<1x96xf32>
    %299 = math.exp %298 : vector<1x96xf32>
    %cst_166 = arith.constant 1.000000e+00 : f32
    %300 = vector.broadcast %cst_166 : f32 to vector<1x96xf32>
    %301 = arith.addf %300, %299 : vector<1x96xf32>
    %302 = arith.divf %300, %301 : vector<1x96xf32>
    %303 = arith.mulf %297, %302 : vector<1x96xf32>
    %304 = vector.extract_strided_slice %303 {offsets = [0, 0], sizes = [1, 64], strides = [1, 1]} : vector<1x96xf32> to vector<1x64xf32>
    %305 = vector.extract_strided_slice %303 {offsets = [0, 64], sizes = [1, 16], strides = [1, 1]} : vector<1x96xf32> to vector<1x16xf32>
    %306 = vector.extract_strided_slice %303 {offsets = [0, 80], sizes = [1, 16], strides = [1, 1]} : vector<1x96xf32> to vector<1x16xf32>
    %307 = vector.extract_strided_slice %295 {offsets = [0, 160], sizes = [1, 64], strides = [1, 1]} : vector<1x224xf32> to vector<1x64xf32>
    %cst_167 = arith.constant 2.000000e+01 : f32
    %308 = vector.broadcast %cst_167 : f32 to vector<1x64xf32>
    %309 = arith.cmpf ogt, %307, %308 : vector<1x64xf32>
    %310 = math.exp %307 : vector<1x64xf32>
    %cst_168 = arith.constant 1.000000e+00 : f32
    %311 = vector.broadcast %cst_168 : f32 to vector<1x64xf32>
    %312 = arith.addf %311, %310 : vector<1x64xf32>
    %313 = math.log %312 : vector<1x64xf32>
    %314 = arith.select %309, %307, %313 : vector<1x64xi1>, vector<1x64xf32>
    %315 = arith.mulf %305, %306 : vector<1x16xf32>
    %cst_169 = arith.constant dense<0.000000e+00> : vector<1xf32>
    %316 = vector.multi_reduction <add>, %315, %cst_169 [1] : vector<1x16xf32> to vector<1xf32>
    %317 = vector.shape_cast %316 : vector<1xf32> to vector<1x1xf32>
    %318 = vector.broadcast %317 : vector<1x1xf32> to vector<1x64xf32>
    %319 = arith.mulf %314, %318 : vector<1x64xf32>
    %c0_170 = arith.constant 0 : index
    %c2_171 = arith.constant 2 : index
    %c0_172 = arith.constant 0 : index
    %c0_173 = arith.constant 0 : index
    %320 = vector.load %arg6[%c0_170, %c2_171, %c0_172, %c0_173] : memref<1x6x1x64xf32, #tpu.memory_space<vmem>>, vector<1x1x1x64xf32>
    %321 = vector.shape_cast %320 : vector<1x1x1x64xf32> to vector<1x64xf32>
    %322 = arith.addf %319, %321 : vector<1x64xf32>
    %323 = arith.mulf %322, %304 : vector<1x64xf32>
    %324 = arith.negf %296 : vector<1x64xf32>
    %325 = math.exp %324 : vector<1x64xf32>
    %cst_174 = arith.constant 1.000000e+00 : f32
    %326 = vector.broadcast %cst_174 : f32 to vector<1x64xf32>
    %327 = arith.addf %326, %325 : vector<1x64xf32>
    %328 = arith.divf %326, %327 : vector<1x64xf32>
    %329 = arith.mulf %296, %328 : vector<1x64xf32>
    %330 = arith.mulf %323, %329 : vector<1x64xf32>
    %331 = arith.mulf %330, %330 : vector<1x64xf32>
    %cst_175 = arith.constant dense<0.000000e+00> : vector<1xf32>
    %332 = vector.multi_reduction <add>, %331, %cst_175 [1] : vector<1x64xf32> to vector<1xf32>
    %333 = vector.shape_cast %332 : vector<1xf32> to vector<1x1xf32>
    %cst_176 = arith.constant 6.400000e+01 : f32
    %334 = vector.broadcast %cst_176 : f32 to vector<1x1xf32>
    %335 = arith.divf %333, %334 : vector<1x1xf32>
    %cst_177 = arith.constant 9.99999974E-6 : f32
    %336 = vector.broadcast %cst_177 : f32 to vector<1x1xf32>
    %337 = arith.addf %335, %336 : vector<1x1xf32>
    %338 = math.rsqrt %337 : vector<1x1xf32>
    %339 = vector.broadcast %338 : vector<1x1xf32> to vector<1x64xf32>
    %340 = arith.mulf %330, %339 : vector<1x64xf32>
    %c0_178 = arith.constant 0 : index
    %c2_179 = arith.constant 2 : index
    %c0_180 = arith.constant 0 : index
    %c0_181 = arith.constant 0 : index
    %341 = vector.load %arg7[%c0_178, %c2_179, %c0_180, %c0_181] : memref<1x6x1x64xf32, #tpu.memory_space<vmem>>, vector<1x1x1x64xf32>
    %342 = vector.shape_cast %341 : vector<1x1x1x64xf32> to vector<1x64xf32>
    %343 = arith.mulf %340, %342 : vector<1x64xf32>
    %344 = arith.truncf %343 : vector<1x64xf32> to vector<1x64xbf16>
    %c0_182 = arith.constant 0 : index
    %c2_183 = arith.constant 2 : index
    %c0_184 = arith.constant 0 : index
    %c0_185 = arith.constant 0 : index
    %345 = vector.load %arg8[%c0_182, %c2_183, %c0_184, %c0_185] : memref<1x6x64x32xbf16, #tpu.memory_space<vmem>>, vector<1x1x64x32xbf16>
    %346 = vector.shape_cast %345 : vector<1x1x64x32xbf16> to vector<64x32xbf16>
    %cst_186 = arith.constant dense<0.000000e+00> : vector<1x32xf32>
    %347 = tpu.matmul %344, %346, %cst_186 {dimension_numbers = #tpu.dot_dimension_numbers<[1], [0], [0], [1], [0, 0, 1, 1], [], []>} : vector<1x64xbf16>, vector<64x32xbf16>, vector<1x32xf32> -> vector<1x32xf32>
    %348 = arith.addf %277, %347 : vector<1x32xf32>
    %c0_187 = arith.constant 0 : index
    %c2_188 = arith.constant 2 : index
    %c0_189 = arith.constant 0 : index
    %c0_190 = arith.constant 0 : index
    %349 = vector.load %arg9[%c0_187, %c2_188, %c0_189, %c0_190] : memref<1x6x1x32xf32, #tpu.memory_space<vmem>>, vector<1x1x1x32xf32>
    %350 = vector.shape_cast %349 : vector<1x1x1x32xf32> to vector<1x32xf32>
    %351 = arith.mulf %350, %348 : vector<1x32xf32>
    %352 = arith.mulf %348, %348 : vector<1x32xf32>
    %cst_191 = arith.constant dense<0.000000e+00> : vector<1xf32>
    %353 = vector.multi_reduction <add>, %352, %cst_191 [1] : vector<1x32xf32> to vector<1xf32>
    %354 = vector.shape_cast %353 : vector<1xf32> to vector<1x1xf32>
    %cst_192 = arith.constant 9.99999997E-7 : f32
    %355 = vector.broadcast %cst_192 : f32 to vector<1x1xf32>
    %356 = arith.addf %354, %355 : vector<1x1xf32>
    %357 = math.rsqrt %356 : vector<1x1xf32>
    %358 = vector.broadcast %357 : vector<1x1xf32> to vector<1x32xf32>
    %359 = arith.mulf %351, %358 : vector<1x32xf32>
    %360 = arith.truncf %359 : vector<1x32xf32> to vector<1x32xbf16>
    %c0_193 = arith.constant 0 : index
    %c2_194 = arith.constant 2 : index
    %c0_195 = arith.constant 0 : index
    %c0_196 = arith.constant 0 : index
    %361 = vector.load %arg10[%c0_193, %c2_194, %c0_195, %c0_196] : memref<1x6x32x128xbf16, #tpu.memory_space<vmem>>, vector<1x1x32x128xbf16>
    %362 = vector.shape_cast %361 : vector<1x1x32x128xbf16> to vector<32x128xbf16>
    %cst_197 = arith.constant dense<0.000000e+00> : vector<1x128xf32>
    %363 = tpu.matmul %360, %362, %cst_197 {dimension_numbers = #tpu.dot_dimension_numbers<[1], [0], [0], [1], [0, 0, 1, 1], [], []>} : vector<1x32xbf16>, vector<32x128xbf16>, vector<1x128xf32> -> vector<1x128xf32>
    %c0_198 = arith.constant 0 : index
    %c2_199 = arith.constant 2 : index
    %c0_200 = arith.constant 0 : index
    %c0_201 = arith.constant 0 : index
    %364 = vector.load %arg11[%c0_198, %c2_199, %c0_200, %c0_201] : memref<1x6x1x128xf32, #tpu.memory_space<vmem>>, vector<1x1x1x128xf32>
    %365 = vector.shape_cast %364 : vector<1x1x1x128xf32> to vector<1x128xf32>
    %366 = arith.addf %363, %365 : vector<1x128xf32>
    %cst_202 = arith.constant 5.000000e-01 : f32
    %367 = vector.broadcast %cst_202 : f32 to vector<1x128xf32>
    %368 = arith.mulf %367, %366 : vector<1x128xf32>
    %cst_203 = arith.constant 0.707106769 : f32
    %369 = vector.broadcast %cst_203 : f32 to vector<1x128xf32>
    %370 = arith.mulf %366, %369 : vector<1x128xf32>
    %cst_204 = arith.constant 0.000000e+00 : f32
    %371 = vector.broadcast %cst_204 : f32 to vector<1x128xf32>
    %372 = arith.cmpf oge, %370, %371 : vector<1x128xf32>
    %cst_205 = arith.constant 1.000000e+00 : f32
    %cst_206 = arith.constant -1.000000e+00 : f32
    %373 = vector.broadcast %cst_205 : f32 to vector<1x128xf32>
    %374 = vector.broadcast %cst_206 : f32 to vector<1x128xf32>
    %375 = arith.select %372, %373, %374 : vector<1x128xi1>, vector<1x128xf32>
    %376 = math.absf %370 : vector<1x128xf32>
    %cst_207 = arith.constant 0.327591091 : f32
    %377 = vector.broadcast %cst_207 : f32 to vector<1x128xf32>
    %378 = arith.mulf %377, %376 : vector<1x128xf32>
    %cst_208 = arith.constant 1.000000e+00 : f32
    %379 = vector.broadcast %cst_208 : f32 to vector<1x128xf32>
    %380 = arith.addf %379, %378 : vector<1x128xf32>
    %cst_209 = arith.constant 1.000000e+00 : f32
    %381 = vector.broadcast %cst_209 : f32 to vector<1x128xf32>
    %382 = arith.divf %381, %380 : vector<1x128xf32>
    %cst_210 = arith.constant 1.06140542 : f32
    %383 = vector.broadcast %cst_210 : f32 to vector<1x128xf32>
    %384 = arith.mulf %383, %382 : vector<1x128xf32>
    %cst_211 = arith.constant -1.45315206 : f32
    %385 = vector.broadcast %cst_211 : f32 to vector<1x128xf32>
    %386 = arith.addf %384, %385 : vector<1x128xf32>
    %387 = arith.mulf %386, %382 : vector<1x128xf32>
    %cst_212 = arith.constant 1.42141378 : f32
    %388 = vector.broadcast %cst_212 : f32 to vector<1x128xf32>
    %389 = arith.addf %387, %388 : vector<1x128xf32>
    %390 = arith.mulf %389, %382 : vector<1x128xf32>
    %cst_213 = arith.constant -0.284496725 : f32
    %391 = vector.broadcast %cst_213 : f32 to vector<1x128xf32>
    %392 = arith.addf %390, %391 : vector<1x128xf32>
    %393 = arith.mulf %392, %382 : vector<1x128xf32>
    %cst_214 = arith.constant 0.254829586 : f32
    %394 = vector.broadcast %cst_214 : f32 to vector<1x128xf32>
    %395 = arith.addf %393, %394 : vector<1x128xf32>
    %396 = arith.mulf %395, %382 : vector<1x128xf32>
    %cst_215 = arith.constant 0.000000e+00 : f32
    %397 = vector.broadcast %cst_215 : f32 to vector<1x128xf32>
    %398 = arith.subf %397, %376 : vector<1x128xf32>
    %399 = arith.mulf %398, %376 : vector<1x128xf32>
    %400 = math.exp %399 : vector<1x128xf32>
    %401 = arith.mulf %396, %400 : vector<1x128xf32>
    %cst_216 = arith.constant 1.000000e+00 : f32
    %402 = vector.broadcast %cst_216 : f32 to vector<1x128xf32>
    %403 = arith.subf %402, %401 : vector<1x128xf32>
    %404 = arith.mulf %375, %403 : vector<1x128xf32>
    %cst_217 = arith.constant 1.000000e+00 : f32
    %405 = vector.broadcast %cst_217 : f32 to vector<1x128xf32>
    %406 = arith.addf %405, %404 : vector<1x128xf32>
    %407 = arith.mulf %368, %406 : vector<1x128xf32>
    %408 = arith.truncf %407 : vector<1x128xf32> to vector<1x128xbf16>
    %c0_218 = arith.constant 0 : index
    %c2_219 = arith.constant 2 : index
    %c0_220 = arith.constant 0 : index
    %c0_221 = arith.constant 0 : index
    %409 = vector.load %arg12[%c0_218, %c2_219, %c0_220, %c0_221] : memref<1x6x128x32xbf16, #tpu.memory_space<vmem>>, vector<1x1x128x32xbf16>
    %410 = vector.shape_cast %409 : vector<1x1x128x32xbf16> to vector<128x32xbf16>
    %cst_222 = arith.constant dense<0.000000e+00> : vector<1x32xf32>
    %411 = tpu.matmul %408, %410, %cst_222 {dimension_numbers = #tpu.dot_dimension_numbers<[1], [0], [0], [1], [0, 0, 1, 1], [], []>} : vector<1x128xbf16>, vector<128x32xbf16>, vector<1x32xf32> -> vector<1x32xf32>
    %412 = arith.addf %348, %411 : vector<1x32xf32>
    %c0_223 = arith.constant 0 : index
    %c2_224 = arith.constant 2 : index
    %c0_225 = arith.constant 0 : index
    %c0_226 = arith.constant 0 : index
    %413 = vector.load %arg13[%c0_223, %c2_224, %c0_225, %c0_226] : memref<1x6x1x32xf32, #tpu.memory_space<vmem>>, vector<1x1x1x32xf32>
    %414 = vector.shape_cast %413 : vector<1x1x1x32xf32> to vector<1x32xf32>
    %415 = arith.addf %412, %414 : vector<1x32xf32>
    %c0_227 = arith.constant 0 : index
    %c3 = arith.constant 3 : index
    %c0_228 = arith.constant 0 : index
    %c0_229 = arith.constant 0 : index
    %416 = vector.load %arg3[%c0_227, %c3, %c0_228, %c0_229] : memref<1x6x1x32xf32, #tpu.memory_space<vmem>>, vector<1x1x1x32xf32>
    %417 = vector.shape_cast %416 : vector<1x1x1x32xf32> to vector<1x32xf32>
    %418 = arith.mulf %417, %415 : vector<1x32xf32>
    %419 = arith.mulf %415, %415 : vector<1x32xf32>
    %cst_230 = arith.constant dense<0.000000e+00> : vector<1xf32>
    %420 = vector.multi_reduction <add>, %419, %cst_230 [1] : vector<1x32xf32> to vector<1xf32>
    %421 = vector.shape_cast %420 : vector<1xf32> to vector<1x1xf32>
    %cst_231 = arith.constant 9.99999997E-7 : f32
    %422 = vector.broadcast %cst_231 : f32 to vector<1x1xf32>
    %423 = arith.addf %421, %422 : vector<1x1xf32>
    %424 = math.rsqrt %423 : vector<1x1xf32>
    %425 = vector.broadcast %424 : vector<1x1xf32> to vector<1x32xf32>
    %426 = arith.mulf %418, %425 : vector<1x32xf32>
    %427 = arith.truncf %426 : vector<1x32xf32> to vector<1x32xbf16>
    %c0_232 = arith.constant 0 : index
    %c3_233 = arith.constant 3 : index
    %c0_234 = arith.constant 0 : index
    %c0_235 = arith.constant 0 : index
    %428 = vector.load %arg4[%c0_232, %c3_233, %c0_234, %c0_235] : memref<1x6x32x224xbf16, #tpu.memory_space<vmem>>, vector<1x1x32x224xbf16>
    %429 = vector.shape_cast %428 : vector<1x1x32x224xbf16> to vector<32x224xbf16>
    %cst_236 = arith.constant dense<0.000000e+00> : vector<1x224xf32>
    %430 = tpu.matmul %427, %429, %cst_236 {dimension_numbers = #tpu.dot_dimension_numbers<[1], [0], [0], [1], [0, 0, 1, 1], [], []>} : vector<1x32xbf16>, vector<32x224xbf16>, vector<1x224xf32> -> vector<1x224xf32>
    %c0_237 = arith.constant 0 : index
    %c3_238 = arith.constant 3 : index
    %c0_239 = arith.constant 0 : index
    %c0_240 = arith.constant 0 : index
    %431 = vector.load %arg5[%c0_237, %c3_238, %c0_239, %c0_240] : memref<1x6x1x224xf32, #tpu.memory_space<vmem>>, vector<1x1x1x224xf32>
    %432 = vector.shape_cast %431 : vector<1x1x1x224xf32> to vector<1x224xf32>
    %433 = arith.addf %430, %432 : vector<1x224xf32>
    %434 = vector.extract_strided_slice %433 {offsets = [0, 0], sizes = [1, 64], strides = [1, 1]} : vector<1x224xf32> to vector<1x64xf32>
    %435 = vector.extract_strided_slice %433 {offsets = [0, 64], sizes = [1, 96], strides = [1, 1]} : vector<1x224xf32> to vector<1x96xf32>
    %436 = arith.negf %435 : vector<1x96xf32>
    %437 = math.exp %436 : vector<1x96xf32>
    %cst_241 = arith.constant 1.000000e+00 : f32
    %438 = vector.broadcast %cst_241 : f32 to vector<1x96xf32>
    %439 = arith.addf %438, %437 : vector<1x96xf32>
    %440 = arith.divf %438, %439 : vector<1x96xf32>
    %441 = arith.mulf %435, %440 : vector<1x96xf32>
    %442 = vector.extract_strided_slice %441 {offsets = [0, 0], sizes = [1, 64], strides = [1, 1]} : vector<1x96xf32> to vector<1x64xf32>
    %443 = vector.extract_strided_slice %441 {offsets = [0, 64], sizes = [1, 16], strides = [1, 1]} : vector<1x96xf32> to vector<1x16xf32>
    %444 = vector.extract_strided_slice %441 {offsets = [0, 80], sizes = [1, 16], strides = [1, 1]} : vector<1x96xf32> to vector<1x16xf32>
    %445 = vector.extract_strided_slice %433 {offsets = [0, 160], sizes = [1, 64], strides = [1, 1]} : vector<1x224xf32> to vector<1x64xf32>
    %cst_242 = arith.constant 2.000000e+01 : f32
    %446 = vector.broadcast %cst_242 : f32 to vector<1x64xf32>
    %447 = arith.cmpf ogt, %445, %446 : vector<1x64xf32>
    %448 = math.exp %445 : vector<1x64xf32>
    %cst_243 = arith.constant 1.000000e+00 : f32
    %449 = vector.broadcast %cst_243 : f32 to vector<1x64xf32>
    %450 = arith.addf %449, %448 : vector<1x64xf32>
    %451 = math.log %450 : vector<1x64xf32>
    %452 = arith.select %447, %445, %451 : vector<1x64xi1>, vector<1x64xf32>
    %453 = arith.mulf %443, %444 : vector<1x16xf32>
    %cst_244 = arith.constant dense<0.000000e+00> : vector<1xf32>
    %454 = vector.multi_reduction <add>, %453, %cst_244 [1] : vector<1x16xf32> to vector<1xf32>
    %455 = vector.shape_cast %454 : vector<1xf32> to vector<1x1xf32>
    %456 = vector.broadcast %455 : vector<1x1xf32> to vector<1x64xf32>
    %457 = arith.mulf %452, %456 : vector<1x64xf32>
    %c0_245 = arith.constant 0 : index
    %c3_246 = arith.constant 3 : index
    %c0_247 = arith.constant 0 : index
    %c0_248 = arith.constant 0 : index
    %458 = vector.load %arg6[%c0_245, %c3_246, %c0_247, %c0_248] : memref<1x6x1x64xf32, #tpu.memory_space<vmem>>, vector<1x1x1x64xf32>
    %459 = vector.shape_cast %458 : vector<1x1x1x64xf32> to vector<1x64xf32>
    %460 = arith.addf %457, %459 : vector<1x64xf32>
    %461 = arith.mulf %460, %442 : vector<1x64xf32>
    %462 = arith.negf %434 : vector<1x64xf32>
    %463 = math.exp %462 : vector<1x64xf32>
    %cst_249 = arith.constant 1.000000e+00 : f32
    %464 = vector.broadcast %cst_249 : f32 to vector<1x64xf32>
    %465 = arith.addf %464, %463 : vector<1x64xf32>
    %466 = arith.divf %464, %465 : vector<1x64xf32>
    %467 = arith.mulf %434, %466 : vector<1x64xf32>
    %468 = arith.mulf %461, %467 : vector<1x64xf32>
    %469 = arith.mulf %468, %468 : vector<1x64xf32>
    %cst_250 = arith.constant dense<0.000000e+00> : vector<1xf32>
    %470 = vector.multi_reduction <add>, %469, %cst_250 [1] : vector<1x64xf32> to vector<1xf32>
    %471 = vector.shape_cast %470 : vector<1xf32> to vector<1x1xf32>
    %cst_251 = arith.constant 6.400000e+01 : f32
    %472 = vector.broadcast %cst_251 : f32 to vector<1x1xf32>
    %473 = arith.divf %471, %472 : vector<1x1xf32>
    %cst_252 = arith.constant 9.99999974E-6 : f32
    %474 = vector.broadcast %cst_252 : f32 to vector<1x1xf32>
    %475 = arith.addf %473, %474 : vector<1x1xf32>
    %476 = math.rsqrt %475 : vector<1x1xf32>
    %477 = vector.broadcast %476 : vector<1x1xf32> to vector<1x64xf32>
    %478 = arith.mulf %468, %477 : vector<1x64xf32>
    %c0_253 = arith.constant 0 : index
    %c3_254 = arith.constant 3 : index
    %c0_255 = arith.constant 0 : index
    %c0_256 = arith.constant 0 : index
    %479 = vector.load %arg7[%c0_253, %c3_254, %c0_255, %c0_256] : memref<1x6x1x64xf32, #tpu.memory_space<vmem>>, vector<1x1x1x64xf32>
    %480 = vector.shape_cast %479 : vector<1x1x1x64xf32> to vector<1x64xf32>
    %481 = arith.mulf %478, %480 : vector<1x64xf32>
    %482 = arith.truncf %481 : vector<1x64xf32> to vector<1x64xbf16>
    %c0_257 = arith.constant 0 : index
    %c3_258 = arith.constant 3 : index
    %c0_259 = arith.constant 0 : index
    %c0_260 = arith.constant 0 : index
    %483 = vector.load %arg8[%c0_257, %c3_258, %c0_259, %c0_260] : memref<1x6x64x32xbf16, #tpu.memory_space<vmem>>, vector<1x1x64x32xbf16>
    %484 = vector.shape_cast %483 : vector<1x1x64x32xbf16> to vector<64x32xbf16>
    %cst_261 = arith.constant dense<0.000000e+00> : vector<1x32xf32>
    %485 = tpu.matmul %482, %484, %cst_261 {dimension_numbers = #tpu.dot_dimension_numbers<[1], [0], [0], [1], [0, 0, 1, 1], [], []>} : vector<1x64xbf16>, vector<64x32xbf16>, vector<1x32xf32> -> vector<1x32xf32>
    %486 = arith.addf %415, %485 : vector<1x32xf32>
    %c0_262 = arith.constant 0 : index
    %c3_263 = arith.constant 3 : index
    %c0_264 = arith.constant 0 : index
    %c0_265 = arith.constant 0 : index
    %487 = vector.load %arg9[%c0_262, %c3_263, %c0_264, %c0_265] : memref<1x6x1x32xf32, #tpu.memory_space<vmem>>, vector<1x1x1x32xf32>
    %488 = vector.shape_cast %487 : vector<1x1x1x32xf32> to vector<1x32xf32>
    %489 = arith.mulf %488, %486 : vector<1x32xf32>
    %490 = arith.mulf %486, %486 : vector<1x32xf32>
    %cst_266 = arith.constant dense<0.000000e+00> : vector<1xf32>
    %491 = vector.multi_reduction <add>, %490, %cst_266 [1] : vector<1x32xf32> to vector<1xf32>
    %492 = vector.shape_cast %491 : vector<1xf32> to vector<1x1xf32>
    %cst_267 = arith.constant 9.99999997E-7 : f32
    %493 = vector.broadcast %cst_267 : f32 to vector<1x1xf32>
    %494 = arith.addf %492, %493 : vector<1x1xf32>
    %495 = math.rsqrt %494 : vector<1x1xf32>
    %496 = vector.broadcast %495 : vector<1x1xf32> to vector<1x32xf32>
    %497 = arith.mulf %489, %496 : vector<1x32xf32>
    %498 = arith.truncf %497 : vector<1x32xf32> to vector<1x32xbf16>
    %c0_268 = arith.constant 0 : index
    %c3_269 = arith.constant 3 : index
    %c0_270 = arith.constant 0 : index
    %c0_271 = arith.constant 0 : index
    %499 = vector.load %arg10[%c0_268, %c3_269, %c0_270, %c0_271] : memref<1x6x32x128xbf16, #tpu.memory_space<vmem>>, vector<1x1x32x128xbf16>
    %500 = vector.shape_cast %499 : vector<1x1x32x128xbf16> to vector<32x128xbf16>
    %cst_272 = arith.constant dense<0.000000e+00> : vector<1x128xf32>
    %501 = tpu.matmul %498, %500, %cst_272 {dimension_numbers = #tpu.dot_dimension_numbers<[1], [0], [0], [1], [0, 0, 1, 1], [], []>} : vector<1x32xbf16>, vector<32x128xbf16>, vector<1x128xf32> -> vector<1x128xf32>
    %c0_273 = arith.constant 0 : index
    %c3_274 = arith.constant 3 : index
    %c0_275 = arith.constant 0 : index
    %c0_276 = arith.constant 0 : index
    %502 = vector.load %arg11[%c0_273, %c3_274, %c0_275, %c0_276] : memref<1x6x1x128xf32, #tpu.memory_space<vmem>>, vector<1x1x1x128xf32>
    %503 = vector.shape_cast %502 : vector<1x1x1x128xf32> to vector<1x128xf32>
    %504 = arith.addf %501, %503 : vector<1x128xf32>
    %cst_277 = arith.constant 5.000000e-01 : f32
    %505 = vector.broadcast %cst_277 : f32 to vector<1x128xf32>
    %506 = arith.mulf %505, %504 : vector<1x128xf32>
    %cst_278 = arith.constant 0.707106769 : f32
    %507 = vector.broadcast %cst_278 : f32 to vector<1x128xf32>
    %508 = arith.mulf %504, %507 : vector<1x128xf32>
    %cst_279 = arith.constant 0.000000e+00 : f32
    %509 = vector.broadcast %cst_279 : f32 to vector<1x128xf32>
    %510 = arith.cmpf oge, %508, %509 : vector<1x128xf32>
    %cst_280 = arith.constant 1.000000e+00 : f32
    %cst_281 = arith.constant -1.000000e+00 : f32
    %511 = vector.broadcast %cst_280 : f32 to vector<1x128xf32>
    %512 = vector.broadcast %cst_281 : f32 to vector<1x128xf32>
    %513 = arith.select %510, %511, %512 : vector<1x128xi1>, vector<1x128xf32>
    %514 = math.absf %508 : vector<1x128xf32>
    %cst_282 = arith.constant 0.327591091 : f32
    %515 = vector.broadcast %cst_282 : f32 to vector<1x128xf32>
    %516 = arith.mulf %515, %514 : vector<1x128xf32>
    %cst_283 = arith.constant 1.000000e+00 : f32
    %517 = vector.broadcast %cst_283 : f32 to vector<1x128xf32>
    %518 = arith.addf %517, %516 : vector<1x128xf32>
    %cst_284 = arith.constant 1.000000e+00 : f32
    %519 = vector.broadcast %cst_284 : f32 to vector<1x128xf32>
    %520 = arith.divf %519, %518 : vector<1x128xf32>
    %cst_285 = arith.constant 1.06140542 : f32
    %521 = vector.broadcast %cst_285 : f32 to vector<1x128xf32>
    %522 = arith.mulf %521, %520 : vector<1x128xf32>
    %cst_286 = arith.constant -1.45315206 : f32
    %523 = vector.broadcast %cst_286 : f32 to vector<1x128xf32>
    %524 = arith.addf %522, %523 : vector<1x128xf32>
    %525 = arith.mulf %524, %520 : vector<1x128xf32>
    %cst_287 = arith.constant 1.42141378 : f32
    %526 = vector.broadcast %cst_287 : f32 to vector<1x128xf32>
    %527 = arith.addf %525, %526 : vector<1x128xf32>
    %528 = arith.mulf %527, %520 : vector<1x128xf32>
    %cst_288 = arith.constant -0.284496725 : f32
    %529 = vector.broadcast %cst_288 : f32 to vector<1x128xf32>
    %530 = arith.addf %528, %529 : vector<1x128xf32>
    %531 = arith.mulf %530, %520 : vector<1x128xf32>
    %cst_289 = arith.constant 0.254829586 : f32
    %532 = vector.broadcast %cst_289 : f32 to vector<1x128xf32>
    %533 = arith.addf %531, %532 : vector<1x128xf32>
    %534 = arith.mulf %533, %520 : vector<1x128xf32>
    %cst_290 = arith.constant 0.000000e+00 : f32
    %535 = vector.broadcast %cst_290 : f32 to vector<1x128xf32>
    %536 = arith.subf %535, %514 : vector<1x128xf32>
    %537 = arith.mulf %536, %514 : vector<1x128xf32>
    %538 = math.exp %537 : vector<1x128xf32>
    %539 = arith.mulf %534, %538 : vector<1x128xf32>
    %cst_291 = arith.constant 1.000000e+00 : f32
    %540 = vector.broadcast %cst_291 : f32 to vector<1x128xf32>
    %541 = arith.subf %540, %539 : vector<1x128xf32>
    %542 = arith.mulf %513, %541 : vector<1x128xf32>
    %cst_292 = arith.constant 1.000000e+00 : f32
    %543 = vector.broadcast %cst_292 : f32 to vector<1x128xf32>
    %544 = arith.addf %543, %542 : vector<1x128xf32>
    %545 = arith.mulf %506, %544 : vector<1x128xf32>
    %546 = arith.truncf %545 : vector<1x128xf32> to vector<1x128xbf16>
    %c0_293 = arith.constant 0 : index
    %c3_294 = arith.constant 3 : index
    %c0_295 = arith.constant 0 : index
    %c0_296 = arith.constant 0 : index
    %547 = vector.load %arg12[%c0_293, %c3_294, %c0_295, %c0_296] : memref<1x6x128x32xbf16, #tpu.memory_space<vmem>>, vector<1x1x128x32xbf16>
    %548 = vector.shape_cast %547 : vector<1x1x128x32xbf16> to vector<128x32xbf16>
    %cst_297 = arith.constant dense<0.000000e+00> : vector<1x32xf32>
    %549 = tpu.matmul %546, %548, %cst_297 {dimension_numbers = #tpu.dot_dimension_numbers<[1], [0], [0], [1], [0, 0, 1, 1], [], []>} : vector<1x128xbf16>, vector<128x32xbf16>, vector<1x32xf32> -> vector<1x32xf32>
    %550 = arith.addf %486, %549 : vector<1x32xf32>
    %c0_298 = arith.constant 0 : index
    %c3_299 = arith.constant 3 : index
    %c0_300 = arith.constant 0 : index
    %c0_301 = arith.constant 0 : index
    %551 = vector.load %arg13[%c0_298, %c3_299, %c0_300, %c0_301] : memref<1x6x1x32xf32, #tpu.memory_space<vmem>>, vector<1x1x1x32xf32>
    %552 = vector.shape_cast %551 : vector<1x1x1x32xf32> to vector<1x32xf32>
    %553 = arith.addf %550, %552 : vector<1x32xf32>
    %c0_302 = arith.constant 0 : index
    %c4 = arith.constant 4 : index
    %c0_303 = arith.constant 0 : index
    %c0_304 = arith.constant 0 : index
    %554 = vector.load %arg3[%c0_302, %c4, %c0_303, %c0_304] : memref<1x6x1x32xf32, #tpu.memory_space<vmem>>, vector<1x1x1x32xf32>
    %555 = vector.shape_cast %554 : vector<1x1x1x32xf32> to vector<1x32xf32>
    %556 = arith.mulf %555, %553 : vector<1x32xf32>
    %557 = arith.mulf %553, %553 : vector<1x32xf32>
    %cst_305 = arith.constant dense<0.000000e+00> : vector<1xf32>
    %558 = vector.multi_reduction <add>, %557, %cst_305 [1] : vector<1x32xf32> to vector<1xf32>
    %559 = vector.shape_cast %558 : vector<1xf32> to vector<1x1xf32>
    %cst_306 = arith.constant 9.99999997E-7 : f32
    %560 = vector.broadcast %cst_306 : f32 to vector<1x1xf32>
    %561 = arith.addf %559, %560 : vector<1x1xf32>
    %562 = math.rsqrt %561 : vector<1x1xf32>
    %563 = vector.broadcast %562 : vector<1x1xf32> to vector<1x32xf32>
    %564 = arith.mulf %556, %563 : vector<1x32xf32>
    %565 = arith.truncf %564 : vector<1x32xf32> to vector<1x32xbf16>
    %c0_307 = arith.constant 0 : index
    %c4_308 = arith.constant 4 : index
    %c0_309 = arith.constant 0 : index
    %c0_310 = arith.constant 0 : index
    %566 = vector.load %arg4[%c0_307, %c4_308, %c0_309, %c0_310] : memref<1x6x32x224xbf16, #tpu.memory_space<vmem>>, vector<1x1x32x224xbf16>
    %567 = vector.shape_cast %566 : vector<1x1x32x224xbf16> to vector<32x224xbf16>
    %cst_311 = arith.constant dense<0.000000e+00> : vector<1x224xf32>
    %568 = tpu.matmul %565, %567, %cst_311 {dimension_numbers = #tpu.dot_dimension_numbers<[1], [0], [0], [1], [0, 0, 1, 1], [], []>} : vector<1x32xbf16>, vector<32x224xbf16>, vector<1x224xf32> -> vector<1x224xf32>
    %c0_312 = arith.constant 0 : index
    %c4_313 = arith.constant 4 : index
    %c0_314 = arith.constant 0 : index
    %c0_315 = arith.constant 0 : index
    %569 = vector.load %arg5[%c0_312, %c4_313, %c0_314, %c0_315] : memref<1x6x1x224xf32, #tpu.memory_space<vmem>>, vector<1x1x1x224xf32>
    %570 = vector.shape_cast %569 : vector<1x1x1x224xf32> to vector<1x224xf32>
    %571 = arith.addf %568, %570 : vector<1x224xf32>
    %572 = vector.extract_strided_slice %571 {offsets = [0, 0], sizes = [1, 64], strides = [1, 1]} : vector<1x224xf32> to vector<1x64xf32>
    %573 = vector.extract_strided_slice %571 {offsets = [0, 64], sizes = [1, 96], strides = [1, 1]} : vector<1x224xf32> to vector<1x96xf32>
    %574 = arith.negf %573 : vector<1x96xf32>
    %575 = math.exp %574 : vector<1x96xf32>
    %cst_316 = arith.constant 1.000000e+00 : f32
    %576 = vector.broadcast %cst_316 : f32 to vector<1x96xf32>
    %577 = arith.addf %576, %575 : vector<1x96xf32>
    %578 = arith.divf %576, %577 : vector<1x96xf32>
    %579 = arith.mulf %573, %578 : vector<1x96xf32>
    %580 = vector.extract_strided_slice %579 {offsets = [0, 0], sizes = [1, 64], strides = [1, 1]} : vector<1x96xf32> to vector<1x64xf32>
    %581 = vector.extract_strided_slice %579 {offsets = [0, 64], sizes = [1, 16], strides = [1, 1]} : vector<1x96xf32> to vector<1x16xf32>
    %582 = vector.extract_strided_slice %579 {offsets = [0, 80], sizes = [1, 16], strides = [1, 1]} : vector<1x96xf32> to vector<1x16xf32>
    %583 = vector.extract_strided_slice %571 {offsets = [0, 160], sizes = [1, 64], strides = [1, 1]} : vector<1x224xf32> to vector<1x64xf32>
    %cst_317 = arith.constant 2.000000e+01 : f32
    %584 = vector.broadcast %cst_317 : f32 to vector<1x64xf32>
    %585 = arith.cmpf ogt, %583, %584 : vector<1x64xf32>
    %586 = math.exp %583 : vector<1x64xf32>
    %cst_318 = arith.constant 1.000000e+00 : f32
    %587 = vector.broadcast %cst_318 : f32 to vector<1x64xf32>
    %588 = arith.addf %587, %586 : vector<1x64xf32>
    %589 = math.log %588 : vector<1x64xf32>
    %590 = arith.select %585, %583, %589 : vector<1x64xi1>, vector<1x64xf32>
    %591 = arith.mulf %581, %582 : vector<1x16xf32>
    %cst_319 = arith.constant dense<0.000000e+00> : vector<1xf32>
    %592 = vector.multi_reduction <add>, %591, %cst_319 [1] : vector<1x16xf32> to vector<1xf32>
    %593 = vector.shape_cast %592 : vector<1xf32> to vector<1x1xf32>
    %594 = vector.broadcast %593 : vector<1x1xf32> to vector<1x64xf32>
    %595 = arith.mulf %590, %594 : vector<1x64xf32>
    %c0_320 = arith.constant 0 : index
    %c4_321 = arith.constant 4 : index
    %c0_322 = arith.constant 0 : index
    %c0_323 = arith.constant 0 : index
    %596 = vector.load %arg6[%c0_320, %c4_321, %c0_322, %c0_323] : memref<1x6x1x64xf32, #tpu.memory_space<vmem>>, vector<1x1x1x64xf32>
    %597 = vector.shape_cast %596 : vector<1x1x1x64xf32> to vector<1x64xf32>
    %598 = arith.addf %595, %597 : vector<1x64xf32>
    %599 = arith.mulf %598, %580 : vector<1x64xf32>
    %600 = arith.negf %572 : vector<1x64xf32>
    %601 = math.exp %600 : vector<1x64xf32>
    %cst_324 = arith.constant 1.000000e+00 : f32
    %602 = vector.broadcast %cst_324 : f32 to vector<1x64xf32>
    %603 = arith.addf %602, %601 : vector<1x64xf32>
    %604 = arith.divf %602, %603 : vector<1x64xf32>
    %605 = arith.mulf %572, %604 : vector<1x64xf32>
    %606 = arith.mulf %599, %605 : vector<1x64xf32>
    %607 = arith.mulf %606, %606 : vector<1x64xf32>
    %cst_325 = arith.constant dense<0.000000e+00> : vector<1xf32>
    %608 = vector.multi_reduction <add>, %607, %cst_325 [1] : vector<1x64xf32> to vector<1xf32>
    %609 = vector.shape_cast %608 : vector<1xf32> to vector<1x1xf32>
    %cst_326 = arith.constant 6.400000e+01 : f32
    %610 = vector.broadcast %cst_326 : f32 to vector<1x1xf32>
    %611 = arith.divf %609, %610 : vector<1x1xf32>
    %cst_327 = arith.constant 9.99999974E-6 : f32
    %612 = vector.broadcast %cst_327 : f32 to vector<1x1xf32>
    %613 = arith.addf %611, %612 : vector<1x1xf32>
    %614 = math.rsqrt %613 : vector<1x1xf32>
    %615 = vector.broadcast %614 : vector<1x1xf32> to vector<1x64xf32>
    %616 = arith.mulf %606, %615 : vector<1x64xf32>
    %c0_328 = arith.constant 0 : index
    %c4_329 = arith.constant 4 : index
    %c0_330 = arith.constant 0 : index
    %c0_331 = arith.constant 0 : index
    %617 = vector.load %arg7[%c0_328, %c4_329, %c0_330, %c0_331] : memref<1x6x1x64xf32, #tpu.memory_space<vmem>>, vector<1x1x1x64xf32>
    %618 = vector.shape_cast %617 : vector<1x1x1x64xf32> to vector<1x64xf32>
    %619 = arith.mulf %616, %618 : vector<1x64xf32>
    %620 = arith.truncf %619 : vector<1x64xf32> to vector<1x64xbf16>
    %c0_332 = arith.constant 0 : index
    %c4_333 = arith.constant 4 : index
    %c0_334 = arith.constant 0 : index
    %c0_335 = arith.constant 0 : index
    %621 = vector.load %arg8[%c0_332, %c4_333, %c0_334, %c0_335] : memref<1x6x64x32xbf16, #tpu.memory_space<vmem>>, vector<1x1x64x32xbf16>
    %622 = vector.shape_cast %621 : vector<1x1x64x32xbf16> to vector<64x32xbf16>
    %cst_336 = arith.constant dense<0.000000e+00> : vector<1x32xf32>
    %623 = tpu.matmul %620, %622, %cst_336 {dimension_numbers = #tpu.dot_dimension_numbers<[1], [0], [0], [1], [0, 0, 1, 1], [], []>} : vector<1x64xbf16>, vector<64x32xbf16>, vector<1x32xf32> -> vector<1x32xf32>
    %624 = arith.addf %553, %623 : vector<1x32xf32>
    %c0_337 = arith.constant 0 : index
    %c4_338 = arith.constant 4 : index
    %c0_339 = arith.constant 0 : index
    %c0_340 = arith.constant 0 : index
    %625 = vector.load %arg9[%c0_337, %c4_338, %c0_339, %c0_340] : memref<1x6x1x32xf32, #tpu.memory_space<vmem>>, vector<1x1x1x32xf32>
    %626 = vector.shape_cast %625 : vector<1x1x1x32xf32> to vector<1x32xf32>
    %627 = arith.mulf %626, %624 : vector<1x32xf32>
    %628 = arith.mulf %624, %624 : vector<1x32xf32>
    %cst_341 = arith.constant dense<0.000000e+00> : vector<1xf32>
    %629 = vector.multi_reduction <add>, %628, %cst_341 [1] : vector<1x32xf32> to vector<1xf32>
    %630 = vector.shape_cast %629 : vector<1xf32> to vector<1x1xf32>
    %cst_342 = arith.constant 9.99999997E-7 : f32
    %631 = vector.broadcast %cst_342 : f32 to vector<1x1xf32>
    %632 = arith.addf %630, %631 : vector<1x1xf32>
    %633 = math.rsqrt %632 : vector<1x1xf32>
    %634 = vector.broadcast %633 : vector<1x1xf32> to vector<1x32xf32>
    %635 = arith.mulf %627, %634 : vector<1x32xf32>
    %636 = arith.truncf %635 : vector<1x32xf32> to vector<1x32xbf16>
    %c0_343 = arith.constant 0 : index
    %c4_344 = arith.constant 4 : index
    %c0_345 = arith.constant 0 : index
    %c0_346 = arith.constant 0 : index
    %637 = vector.load %arg10[%c0_343, %c4_344, %c0_345, %c0_346] : memref<1x6x32x128xbf16, #tpu.memory_space<vmem>>, vector<1x1x32x128xbf16>
    %638 = vector.shape_cast %637 : vector<1x1x32x128xbf16> to vector<32x128xbf16>
    %cst_347 = arith.constant dense<0.000000e+00> : vector<1x128xf32>
    %639 = tpu.matmul %636, %638, %cst_347 {dimension_numbers = #tpu.dot_dimension_numbers<[1], [0], [0], [1], [0, 0, 1, 1], [], []>} : vector<1x32xbf16>, vector<32x128xbf16>, vector<1x128xf32> -> vector<1x128xf32>
    %c0_348 = arith.constant 0 : index
    %c4_349 = arith.constant 4 : index
    %c0_350 = arith.constant 0 : index
    %c0_351 = arith.constant 0 : index
    %640 = vector.load %arg11[%c0_348, %c4_349, %c0_350, %c0_351] : memref<1x6x1x128xf32, #tpu.memory_space<vmem>>, vector<1x1x1x128xf32>
    %641 = vector.shape_cast %640 : vector<1x1x1x128xf32> to vector<1x128xf32>
    %642 = arith.addf %639, %641 : vector<1x128xf32>
    %cst_352 = arith.constant 5.000000e-01 : f32
    %643 = vector.broadcast %cst_352 : f32 to vector<1x128xf32>
    %644 = arith.mulf %643, %642 : vector<1x128xf32>
    %cst_353 = arith.constant 0.707106769 : f32
    %645 = vector.broadcast %cst_353 : f32 to vector<1x128xf32>
    %646 = arith.mulf %642, %645 : vector<1x128xf32>
    %cst_354 = arith.constant 0.000000e+00 : f32
    %647 = vector.broadcast %cst_354 : f32 to vector<1x128xf32>
    %648 = arith.cmpf oge, %646, %647 : vector<1x128xf32>
    %cst_355 = arith.constant 1.000000e+00 : f32
    %cst_356 = arith.constant -1.000000e+00 : f32
    %649 = vector.broadcast %cst_355 : f32 to vector<1x128xf32>
    %650 = vector.broadcast %cst_356 : f32 to vector<1x128xf32>
    %651 = arith.select %648, %649, %650 : vector<1x128xi1>, vector<1x128xf32>
    %652 = math.absf %646 : vector<1x128xf32>
    %cst_357 = arith.constant 0.327591091 : f32
    %653 = vector.broadcast %cst_357 : f32 to vector<1x128xf32>
    %654 = arith.mulf %653, %652 : vector<1x128xf32>
    %cst_358 = arith.constant 1.000000e+00 : f32
    %655 = vector.broadcast %cst_358 : f32 to vector<1x128xf32>
    %656 = arith.addf %655, %654 : vector<1x128xf32>
    %cst_359 = arith.constant 1.000000e+00 : f32
    %657 = vector.broadcast %cst_359 : f32 to vector<1x128xf32>
    %658 = arith.divf %657, %656 : vector<1x128xf32>
    %cst_360 = arith.constant 1.06140542 : f32
    %659 = vector.broadcast %cst_360 : f32 to vector<1x128xf32>
    %660 = arith.mulf %659, %658 : vector<1x128xf32>
    %cst_361 = arith.constant -1.45315206 : f32
    %661 = vector.broadcast %cst_361 : f32 to vector<1x128xf32>
    %662 = arith.addf %660, %661 : vector<1x128xf32>
    %663 = arith.mulf %662, %658 : vector<1x128xf32>
    %cst_362 = arith.constant 1.42141378 : f32
    %664 = vector.broadcast %cst_362 : f32 to vector<1x128xf32>
    %665 = arith.addf %663, %664 : vector<1x128xf32>
    %666 = arith.mulf %665, %658 : vector<1x128xf32>
    %cst_363 = arith.constant -0.284496725 : f32
    %667 = vector.broadcast %cst_363 : f32 to vector<1x128xf32>
    %668 = arith.addf %666, %667 : vector<1x128xf32>
    %669 = arith.mulf %668, %658 : vector<1x128xf32>
    %cst_364 = arith.constant 0.254829586 : f32
    %670 = vector.broadcast %cst_364 : f32 to vector<1x128xf32>
    %671 = arith.addf %669, %670 : vector<1x128xf32>
    %672 = arith.mulf %671, %658 : vector<1x128xf32>
    %cst_365 = arith.constant 0.000000e+00 : f32
    %673 = vector.broadcast %cst_365 : f32 to vector<1x128xf32>
    %674 = arith.subf %673, %652 : vector<1x128xf32>
    %675 = arith.mulf %674, %652 : vector<1x128xf32>
    %676 = math.exp %675 : vector<1x128xf32>
    %677 = arith.mulf %672, %676 : vector<1x128xf32>
    %cst_366 = arith.constant 1.000000e+00 : f32
    %678 = vector.broadcast %cst_366 : f32 to vector<1x128xf32>
    %679 = arith.subf %678, %677 : vector<1x128xf32>
    %680 = arith.mulf %651, %679 : vector<1x128xf32>
    %cst_367 = arith.constant 1.000000e+00 : f32
    %681 = vector.broadcast %cst_367 : f32 to vector<1x128xf32>
    %682 = arith.addf %681, %680 : vector<1x128xf32>
    %683 = arith.mulf %644, %682 : vector<1x128xf32>
    %684 = arith.truncf %683 : vector<1x128xf32> to vector<1x128xbf16>
    %c0_368 = arith.constant 0 : index
    %c4_369 = arith.constant 4 : index
    %c0_370 = arith.constant 0 : index
    %c0_371 = arith.constant 0 : index
    %685 = vector.load %arg12[%c0_368, %c4_369, %c0_370, %c0_371] : memref<1x6x128x32xbf16, #tpu.memory_space<vmem>>, vector<1x1x128x32xbf16>
    %686 = vector.shape_cast %685 : vector<1x1x128x32xbf16> to vector<128x32xbf16>
    %cst_372 = arith.constant dense<0.000000e+00> : vector<1x32xf32>
    %687 = tpu.matmul %684, %686, %cst_372 {dimension_numbers = #tpu.dot_dimension_numbers<[1], [0], [0], [1], [0, 0, 1, 1], [], []>} : vector<1x128xbf16>, vector<128x32xbf16>, vector<1x32xf32> -> vector<1x32xf32>
    %688 = arith.addf %624, %687 : vector<1x32xf32>
    %c0_373 = arith.constant 0 : index
    %c4_374 = arith.constant 4 : index
    %c0_375 = arith.constant 0 : index
    %c0_376 = arith.constant 0 : index
    %689 = vector.load %arg13[%c0_373, %c4_374, %c0_375, %c0_376] : memref<1x6x1x32xf32, #tpu.memory_space<vmem>>, vector<1x1x1x32xf32>
    %690 = vector.shape_cast %689 : vector<1x1x1x32xf32> to vector<1x32xf32>
    %691 = arith.addf %688, %690 : vector<1x32xf32>
    %c0_377 = arith.constant 0 : index
    %c5 = arith.constant 5 : index
    %c0_378 = arith.constant 0 : index
    %c0_379 = arith.constant 0 : index
    %692 = vector.load %arg3[%c0_377, %c5, %c0_378, %c0_379] : memref<1x6x1x32xf32, #tpu.memory_space<vmem>>, vector<1x1x1x32xf32>
    %693 = vector.shape_cast %692 : vector<1x1x1x32xf32> to vector<1x32xf32>
    %694 = arith.mulf %693, %691 : vector<1x32xf32>
    %695 = arith.mulf %691, %691 : vector<1x32xf32>
    %cst_380 = arith.constant dense<0.000000e+00> : vector<1xf32>
    %696 = vector.multi_reduction <add>, %695, %cst_380 [1] : vector<1x32xf32> to vector<1xf32>
    %697 = vector.shape_cast %696 : vector<1xf32> to vector<1x1xf32>
    %cst_381 = arith.constant 9.99999997E-7 : f32
    %698 = vector.broadcast %cst_381 : f32 to vector<1x1xf32>
    %699 = arith.addf %697, %698 : vector<1x1xf32>
    %700 = math.rsqrt %699 : vector<1x1xf32>
    %701 = vector.broadcast %700 : vector<1x1xf32> to vector<1x32xf32>
    %702 = arith.mulf %694, %701 : vector<1x32xf32>
    %703 = arith.truncf %702 : vector<1x32xf32> to vector<1x32xbf16>
    %c0_382 = arith.constant 0 : index
    %c5_383 = arith.constant 5 : index
    %c0_384 = arith.constant 0 : index
    %c0_385 = arith.constant 0 : index
    %704 = vector.load %arg4[%c0_382, %c5_383, %c0_384, %c0_385] : memref<1x6x32x224xbf16, #tpu.memory_space<vmem>>, vector<1x1x32x224xbf16>
    %705 = vector.shape_cast %704 : vector<1x1x32x224xbf16> to vector<32x224xbf16>
    %cst_386 = arith.constant dense<0.000000e+00> : vector<1x224xf32>
    %706 = tpu.matmul %703, %705, %cst_386 {dimension_numbers = #tpu.dot_dimension_numbers<[1], [0], [0], [1], [0, 0, 1, 1], [], []>} : vector<1x32xbf16>, vector<32x224xbf16>, vector<1x224xf32> -> vector<1x224xf32>
    %c0_387 = arith.constant 0 : index
    %c5_388 = arith.constant 5 : index
    %c0_389 = arith.constant 0 : index
    %c0_390 = arith.constant 0 : index
    %707 = vector.load %arg5[%c0_387, %c5_388, %c0_389, %c0_390] : memref<1x6x1x224xf32, #tpu.memory_space<vmem>>, vector<1x1x1x224xf32>
    %708 = vector.shape_cast %707 : vector<1x1x1x224xf32> to vector<1x224xf32>
    %709 = arith.addf %706, %708 : vector<1x224xf32>
    %710 = vector.extract_strided_slice %709 {offsets = [0, 0], sizes = [1, 64], strides = [1, 1]} : vector<1x224xf32> to vector<1x64xf32>
    %711 = vector.extract_strided_slice %709 {offsets = [0, 64], sizes = [1, 96], strides = [1, 1]} : vector<1x224xf32> to vector<1x96xf32>
    %712 = arith.negf %711 : vector<1x96xf32>
    %713 = math.exp %712 : vector<1x96xf32>
    %cst_391 = arith.constant 1.000000e+00 : f32
    %714 = vector.broadcast %cst_391 : f32 to vector<1x96xf32>
    %715 = arith.addf %714, %713 : vector<1x96xf32>
    %716 = arith.divf %714, %715 : vector<1x96xf32>
    %717 = arith.mulf %711, %716 : vector<1x96xf32>
    %718 = vector.extract_strided_slice %717 {offsets = [0, 0], sizes = [1, 64], strides = [1, 1]} : vector<1x96xf32> to vector<1x64xf32>
    %719 = vector.extract_strided_slice %717 {offsets = [0, 64], sizes = [1, 16], strides = [1, 1]} : vector<1x96xf32> to vector<1x16xf32>
    %720 = vector.extract_strided_slice %717 {offsets = [0, 80], sizes = [1, 16], strides = [1, 1]} : vector<1x96xf32> to vector<1x16xf32>
    %721 = vector.extract_strided_slice %709 {offsets = [0, 160], sizes = [1, 64], strides = [1, 1]} : vector<1x224xf32> to vector<1x64xf32>
    %cst_392 = arith.constant 2.000000e+01 : f32
    %722 = vector.broadcast %cst_392 : f32 to vector<1x64xf32>
    %723 = arith.cmpf ogt, %721, %722 : vector<1x64xf32>
    %724 = math.exp %721 : vector<1x64xf32>
    %cst_393 = arith.constant 1.000000e+00 : f32
    %725 = vector.broadcast %cst_393 : f32 to vector<1x64xf32>
    %726 = arith.addf %725, %724 : vector<1x64xf32>
    %727 = math.log %726 : vector<1x64xf32>
    %728 = arith.select %723, %721, %727 : vector<1x64xi1>, vector<1x64xf32>
    %729 = arith.mulf %719, %720 : vector<1x16xf32>
    %cst_394 = arith.constant dense<0.000000e+00> : vector<1xf32>
    %730 = vector.multi_reduction <add>, %729, %cst_394 [1] : vector<1x16xf32> to vector<1xf32>
    %731 = vector.shape_cast %730 : vector<1xf32> to vector<1x1xf32>
    %732 = vector.broadcast %731 : vector<1x1xf32> to vector<1x64xf32>
    %733 = arith.mulf %728, %732 : vector<1x64xf32>
    %c0_395 = arith.constant 0 : index
    %c5_396 = arith.constant 5 : index
    %c0_397 = arith.constant 0 : index
    %c0_398 = arith.constant 0 : index
    %734 = vector.load %arg6[%c0_395, %c5_396, %c0_397, %c0_398] : memref<1x6x1x64xf32, #tpu.memory_space<vmem>>, vector<1x1x1x64xf32>
    %735 = vector.shape_cast %734 : vector<1x1x1x64xf32> to vector<1x64xf32>
    %736 = arith.addf %733, %735 : vector<1x64xf32>
    %737 = arith.mulf %736, %718 : vector<1x64xf32>
    %738 = arith.negf %710 : vector<1x64xf32>
    %739 = math.exp %738 : vector<1x64xf32>
    %cst_399 = arith.constant 1.000000e+00 : f32
    %740 = vector.broadcast %cst_399 : f32 to vector<1x64xf32>
    %741 = arith.addf %740, %739 : vector<1x64xf32>
    %742 = arith.divf %740, %741 : vector<1x64xf32>
    %743 = arith.mulf %710, %742 : vector<1x64xf32>
    %744 = arith.mulf %737, %743 : vector<1x64xf32>
    %745 = arith.mulf %744, %744 : vector<1x64xf32>
    %cst_400 = arith.constant dense<0.000000e+00> : vector<1xf32>
    %746 = vector.multi_reduction <add>, %745, %cst_400 [1] : vector<1x64xf32> to vector<1xf32>
    %747 = vector.shape_cast %746 : vector<1xf32> to vector<1x1xf32>
    %cst_401 = arith.constant 6.400000e+01 : f32
    %748 = vector.broadcast %cst_401 : f32 to vector<1x1xf32>
    %749 = arith.divf %747, %748 : vector<1x1xf32>
    %cst_402 = arith.constant 9.99999974E-6 : f32
    %750 = vector.broadcast %cst_402 : f32 to vector<1x1xf32>
    %751 = arith.addf %749, %750 : vector<1x1xf32>
    %752 = math.rsqrt %751 : vector<1x1xf32>
    %753 = vector.broadcast %752 : vector<1x1xf32> to vector<1x64xf32>
    %754 = arith.mulf %744, %753 : vector<1x64xf32>
    %c0_403 = arith.constant 0 : index
    %c5_404 = arith.constant 5 : index
    %c0_405 = arith.constant 0 : index
    %c0_406 = arith.constant 0 : index
    %755 = vector.load %arg7[%c0_403, %c5_404, %c0_405, %c0_406] : memref<1x6x1x64xf32, #tpu.memory_space<vmem>>, vector<1x1x1x64xf32>
    %756 = vector.shape_cast %755 : vector<1x1x1x64xf32> to vector<1x64xf32>
    %757 = arith.mulf %754, %756 : vector<1x64xf32>
    %758 = arith.truncf %757 : vector<1x64xf32> to vector<1x64xbf16>
    %c0_407 = arith.constant 0 : index
    %c5_408 = arith.constant 5 : index
    %c0_409 = arith.constant 0 : index
    %c0_410 = arith.constant 0 : index
    %759 = vector.load %arg8[%c0_407, %c5_408, %c0_409, %c0_410] : memref<1x6x64x32xbf16, #tpu.memory_space<vmem>>, vector<1x1x64x32xbf16>
    %760 = vector.shape_cast %759 : vector<1x1x64x32xbf16> to vector<64x32xbf16>
    %cst_411 = arith.constant dense<0.000000e+00> : vector<1x32xf32>
    %761 = tpu.matmul %758, %760, %cst_411 {dimension_numbers = #tpu.dot_dimension_numbers<[1], [0], [0], [1], [0, 0, 1, 1], [], []>} : vector<1x64xbf16>, vector<64x32xbf16>, vector<1x32xf32> -> vector<1x32xf32>
    %762 = arith.addf %691, %761 : vector<1x32xf32>
    %c0_412 = arith.constant 0 : index
    %c5_413 = arith.constant 5 : index
    %c0_414 = arith.constant 0 : index
    %c0_415 = arith.constant 0 : index
    %763 = vector.load %arg9[%c0_412, %c5_413, %c0_414, %c0_415] : memref<1x6x1x32xf32, #tpu.memory_space<vmem>>, vector<1x1x1x32xf32>
    %764 = vector.shape_cast %763 : vector<1x1x1x32xf32> to vector<1x32xf32>
    %765 = arith.mulf %764, %762 : vector<1x32xf32>
    %766 = arith.mulf %762, %762 : vector<1x32xf32>
    %cst_416 = arith.constant dense<0.000000e+00> : vector<1xf32>
    %767 = vector.multi_reduction <add>, %766, %cst_416 [1] : vector<1x32xf32> to vector<1xf32>
    %768 = vector.shape_cast %767 : vector<1xf32> to vector<1x1xf32>
    %cst_417 = arith.constant 9.99999997E-7 : f32
    %769 = vector.broadcast %cst_417 : f32 to vector<1x1xf32>
    %770 = arith.addf %768, %769 : vector<1x1xf32>
    %771 = math.rsqrt %770 : vector<1x1xf32>
    %772 = vector.broadcast %771 : vector<1x1xf32> to vector<1x32xf32>
    %773 = arith.mulf %765, %772 : vector<1x32xf32>
    %774 = arith.truncf %773 : vector<1x32xf32> to vector<1x32xbf16>
    %c0_418 = arith.constant 0 : index
    %c5_419 = arith.constant 5 : index
    %c0_420 = arith.constant 0 : index
    %c0_421 = arith.constant 0 : index
    %775 = vector.load %arg10[%c0_418, %c5_419, %c0_420, %c0_421] : memref<1x6x32x128xbf16, #tpu.memory_space<vmem>>, vector<1x1x32x128xbf16>
    %776 = vector.shape_cast %775 : vector<1x1x32x128xbf16> to vector<32x128xbf16>
    %cst_422 = arith.constant dense<0.000000e+00> : vector<1x128xf32>
    %777 = tpu.matmul %774, %776, %cst_422 {dimension_numbers = #tpu.dot_dimension_numbers<[1], [0], [0], [1], [0, 0, 1, 1], [], []>} : vector<1x32xbf16>, vector<32x128xbf16>, vector<1x128xf32> -> vector<1x128xf32>
    %c0_423 = arith.constant 0 : index
    %c5_424 = arith.constant 5 : index
    %c0_425 = arith.constant 0 : index
    %c0_426 = arith.constant 0 : index
    %778 = vector.load %arg11[%c0_423, %c5_424, %c0_425, %c0_426] : memref<1x6x1x128xf32, #tpu.memory_space<vmem>>, vector<1x1x1x128xf32>
    %779 = vector.shape_cast %778 : vector<1x1x1x128xf32> to vector<1x128xf32>
    %780 = arith.addf %777, %779 : vector<1x128xf32>
    %cst_427 = arith.constant 5.000000e-01 : f32
    %781 = vector.broadcast %cst_427 : f32 to vector<1x128xf32>
    %782 = arith.mulf %781, %780 : vector<1x128xf32>
    %cst_428 = arith.constant 0.707106769 : f32
    %783 = vector.broadcast %cst_428 : f32 to vector<1x128xf32>
    %784 = arith.mulf %780, %783 : vector<1x128xf32>
    %cst_429 = arith.constant 0.000000e+00 : f32
    %785 = vector.broadcast %cst_429 : f32 to vector<1x128xf32>
    %786 = arith.cmpf oge, %784, %785 : vector<1x128xf32>
    %cst_430 = arith.constant 1.000000e+00 : f32
    %cst_431 = arith.constant -1.000000e+00 : f32
    %787 = vector.broadcast %cst_430 : f32 to vector<1x128xf32>
    %788 = vector.broadcast %cst_431 : f32 to vector<1x128xf32>
    %789 = arith.select %786, %787, %788 : vector<1x128xi1>, vector<1x128xf32>
    %790 = math.absf %784 : vector<1x128xf32>
    %cst_432 = arith.constant 0.327591091 : f32
    %791 = vector.broadcast %cst_432 : f32 to vector<1x128xf32>
    %792 = arith.mulf %791, %790 : vector<1x128xf32>
    %cst_433 = arith.constant 1.000000e+00 : f32
    %793 = vector.broadcast %cst_433 : f32 to vector<1x128xf32>
    %794 = arith.addf %793, %792 : vector<1x128xf32>
    %cst_434 = arith.constant 1.000000e+00 : f32
    %795 = vector.broadcast %cst_434 : f32 to vector<1x128xf32>
    %796 = arith.divf %795, %794 : vector<1x128xf32>
    %cst_435 = arith.constant 1.06140542 : f32
    %797 = vector.broadcast %cst_435 : f32 to vector<1x128xf32>
    %798 = arith.mulf %797, %796 : vector<1x128xf32>
    %cst_436 = arith.constant -1.45315206 : f32
    %799 = vector.broadcast %cst_436 : f32 to vector<1x128xf32>
    %800 = arith.addf %798, %799 : vector<1x128xf32>
    %801 = arith.mulf %800, %796 : vector<1x128xf32>
    %cst_437 = arith.constant 1.42141378 : f32
    %802 = vector.broadcast %cst_437 : f32 to vector<1x128xf32>
    %803 = arith.addf %801, %802 : vector<1x128xf32>
    %804 = arith.mulf %803, %796 : vector<1x128xf32>
    %cst_438 = arith.constant -0.284496725 : f32
    %805 = vector.broadcast %cst_438 : f32 to vector<1x128xf32>
    %806 = arith.addf %804, %805 : vector<1x128xf32>
    %807 = arith.mulf %806, %796 : vector<1x128xf32>
    %cst_439 = arith.constant 0.254829586 : f32
    %808 = vector.broadcast %cst_439 : f32 to vector<1x128xf32>
    %809 = arith.addf %807, %808 : vector<1x128xf32>
    %810 = arith.mulf %809, %796 : vector<1x128xf32>
    %cst_440 = arith.constant 0.000000e+00 : f32
    %811 = vector.broadcast %cst_440 : f32 to vector<1x128xf32>
    %812 = arith.subf %811, %790 : vector<1x128xf32>
    %813 = arith.mulf %812, %790 : vector<1x128xf32>
    %814 = math.exp %813 : vector<1x128xf32>
    %815 = arith.mulf %810, %814 : vector<1x128xf32>
    %cst_441 = arith.constant 1.000000e+00 : f32
    %816 = vector.broadcast %cst_441 : f32 to vector<1x128xf32>
    %817 = arith.subf %816, %815 : vector<1x128xf32>
    %818 = arith.mulf %789, %817 : vector<1x128xf32>
    %cst_442 = arith.constant 1.000000e+00 : f32
    %819 = vector.broadcast %cst_442 : f32 to vector<1x128xf32>
    %820 = arith.addf %819, %818 : vector<1x128xf32>
    %821 = arith.mulf %782, %820 : vector<1x128xf32>
    %822 = arith.truncf %821 : vector<1x128xf32> to vector<1x128xbf16>
    %c0_443 = arith.constant 0 : index
    %c5_444 = arith.constant 5 : index
    %c0_445 = arith.constant 0 : index
    %c0_446 = arith.constant 0 : index
    %823 = vector.load %arg12[%c0_443, %c5_444, %c0_445, %c0_446] : memref<1x6x128x32xbf16, #tpu.memory_space<vmem>>, vector<1x1x128x32xbf16>
    %824 = vector.shape_cast %823 : vector<1x1x128x32xbf16> to vector<128x32xbf16>
    %cst_447 = arith.constant dense<0.000000e+00> : vector<1x32xf32>
    %825 = tpu.matmul %822, %824, %cst_447 {dimension_numbers = #tpu.dot_dimension_numbers<[1], [0], [0], [1], [0, 0, 1, 1], [], []>} : vector<1x128xbf16>, vector<128x32xbf16>, vector<1x32xf32> -> vector<1x32xf32>
    %826 = arith.addf %762, %825 : vector<1x32xf32>
    %c0_448 = arith.constant 0 : index
    %c5_449 = arith.constant 5 : index
    %c0_450 = arith.constant 0 : index
    %c0_451 = arith.constant 0 : index
    %827 = vector.load %arg13[%c0_448, %c5_449, %c0_450, %c0_451] : memref<1x6x1x32xf32, #tpu.memory_space<vmem>>, vector<1x1x1x32xf32>
    %828 = vector.shape_cast %827 : vector<1x1x1x32xf32> to vector<1x32xf32>
    %829 = arith.addf %826, %828 : vector<1x32xf32>
    %c0_452 = arith.constant 0 : index
    %c0_453 = arith.constant 0 : index
    %830 = vector.load %arg14[%c0_452, %c0_453] : memref<32x4xf32, #tpu.memory_space<vmem>>, vector<32x4xf32>
    %cst_454 = arith.constant dense<0.000000e+00> : vector<1x4xf32>
    %831 = tpu.matmul %829, %830, %cst_454 {dimension_numbers = #tpu.dot_dimension_numbers<[1], [0], [0], [1], [0, 0, 1, 1], [], []>} : vector<1x32xf32>, vector<32x4xf32>, vector<1x4xf32> -> vector<1x4xf32>
    %c0_455 = arith.constant 0 : index
    %c0_456 = arith.constant 0 : index
    %832 = vector.load %arg15[%c0_455, %c0_456] : memref<1x4xf32, #tpu.memory_space<vmem>>, vector<1x4xf32>
    %833 = arith.addf %831, %832 : vector<1x4xf32>
    %c0_457 = arith.constant 0 : index
    %c0_458 = arith.constant 0 : index
    %c0_459 = arith.constant 0 : index
    %834 = vector.load %arg16[%c0_457, %c0_458, %c0_459] : memref<1x1x4xf32, #tpu.memory_space<vmem>>, vector<1x1x4xf32>
    %835 = vector.shape_cast %834 : vector<1x1x4xf32> to vector<1x4xf32>
    %836 = vector.shape_cast %833 : vector<1x4xf32> to vector<1x1x4xf32>
    tpu.vector_store %arg16[%c0_457, %c0_458, %c0_459], %836 {strides = array<i32>} : memref<1x1x4xf32, #tpu.memory_space<vmem>>, vector<1x1x4xf32>,
    return
  }
  func.func @transform_0(%arg0: i32, %arg1: memref<2xi32, #tpu.memory_space<smem>>) -> (i32, i32, i32) {
    %c0_i32 = arith.constant 0 : i32
    %c0_i32_0 = arith.constant 0 : i32
    %c0_i32_1 = arith.constant 0 : i32
    return %arg0, %c0_i32, %c0_i32_0 : i32, i32, i32
  }
  func.func @transform_1(%arg0: i32, %arg1: memref<2xi32, #tpu.memory_space<smem>>) -> (i32, i32, i32, i32) {
    %0 = arith.index_cast %arg0 : i32 to index
    %1 = memref.load %arg1[%0] : memref<2xi32, #tpu.memory_space<smem>>
    %c0_i32 = arith.constant 0 : i32
    %c0_i32_0 = arith.constant 0 : i32
    %c0_i32_1 = arith.constant 0 : i32
    %c0_i32_2 = arith.constant 0 : i32
    return %1, %c0_i32, %c0_i32_0, %c0_i32_1 : i32, i32, i32, i32
  }
  func.func @transform_2(%arg0: i32, %arg1: memref<2xi32, #tpu.memory_space<smem>>) -> (i32, i32, i32, i32) {
    %0 = arith.index_cast %arg0 : i32 to index
    %1 = memref.load %arg1[%0] : memref<2xi32, #tpu.memory_space<smem>>
    %c0_i32 = arith.constant 0 : i32
    %c0_i32_0 = arith.constant 0 : i32
    %c0_i32_1 = arith.constant 0 : i32
    %c0_i32_2 = arith.constant 0 : i32
    return %1, %c0_i32, %c0_i32_0, %c0_i32_1 : i32, i32, i32, i32
  }
  func.func @transform_3(%arg0: i32, %arg1: memref<2xi32, #tpu.memory_space<smem>>) -> (i32, i32, i32, i32) {
    %0 = arith.index_cast %arg0 : i32 to index
    %1 = memref.load %arg1[%0] : memref<2xi32, #tpu.memory_space<smem>>
    %c0_i32 = arith.constant 0 : i32
    %c0_i32_0 = arith.constant 0 : i32
    %c0_i32_1 = arith.constant 0 : i32
    %c0_i32_2 = arith.constant 0 : i32
    return %1, %c0_i32, %c0_i32_0, %c0_i32_1 : i32, i32, i32, i32
  }
  func.func @transform_4(%arg0: i32, %arg1: memref<2xi32, #tpu.memory_space<smem>>) -> (i32, i32, i32, i32) {
    %0 = arith.index_cast %arg0 : i32 to index
    %1 = memref.load %arg1[%0] : memref<2xi32, #tpu.memory_space<smem>>
    %c0_i32 = arith.constant 0 : i32
    %c0_i32_0 = arith.constant 0 : i32
    %c0_i32_1 = arith.constant 0 : i32
    %c0_i32_2 = arith.constant 0 : i32
    return %1, %c0_i32, %c0_i32_0, %c0_i32_1 : i32, i32, i32, i32
  }
  func.func @transform_5(%arg0: i32, %arg1: memref<2xi32, #tpu.memory_space<smem>>) -> (i32, i32, i32, i32) {
    %0 = arith.index_cast %arg0 : i32 to index
    %1 = memref.load %arg1[%0] : memref<2xi32, #tpu.memory_space<smem>>
    %c0_i32 = arith.constant 0 : i32
    %c0_i32_0 = arith.constant 0 : i32
    %c0_i32_1 = arith.constant 0 : i32
    %c0_i32_2 = arith.constant 0 : i32
    return %1, %c0_i32, %c0_i32_0, %c0_i32_1 : i32, i32, i32, i32
  }
  func.func @transform_6(%arg0: i32, %arg1: memref<2xi32, #tpu.memory_space<smem>>) -> (i32, i32, i32, i32) {
    %0 = arith.index_cast %arg0 : i32 to index
    %1 = memref.load %arg1[%0] : memref<2xi32, #tpu.memory_space<smem>>
    %c0_i32 = arith.constant 0 : i32
    %c0_i32_0 = arith.constant 0 : i32
    %c0_i32_1 = arith.constant 0 : i32
    %c0_i32_2 = arith.constant 0 : i32
    return %1, %c0_i32, %c0_i32_0, %c0_i32_1 : i32, i32, i32, i32
  }
  func.func @transform_7(%arg0: i32, %arg1: memref<2xi32, #tpu.memory_space<smem>>) -> (i32, i32, i32, i32) {
    %0 = arith.index_cast %arg0 : i32 to index
    %1 = memref.load %arg1[%0] : memref<2xi32, #tpu.memory_space<smem>>
    %c0_i32 = arith.constant 0 : i32
    %c0_i32_0 = arith.constant 0 : i32
    %c0_i32_1 = arith.constant 0 : i32
    %c0_i32_2 = arith.constant 0 : i32
    return %1, %c0_i32, %c0_i32_0, %c0_i32_1 : i32, i32, i32, i32
  }
  func.func @transform_8(%arg0: i32, %arg1: memref<2xi32, #tpu.memory_space<smem>>) -> (i32, i32, i32, i32) {
    %0 = arith.index_cast %arg0 : i32 to index
    %1 = memref.load %arg1[%0] : memref<2xi32, #tpu.memory_space<smem>>
    %c0_i32 = arith.constant 0 : i32
    %c0_i32_0 = arith.constant 0 : i32
    %c0_i32_1 = arith.constant 0 : i32
    %c0_i32_2 = arith.constant 0 : i32
    return %1, %c0_i32, %c0_i32_0, %c0_i32_1 : i32, i32, i32, i32
  }
  func.func @transform_9(%arg0: i32, %arg1: memref<2xi32, #tpu.memory_space<smem>>) -> (i32, i32, i32, i32) {
    %0 = arith.index_cast %arg0 : i32 to index
    %1 = memref.load %arg1[%0] : memref<2xi32, #tpu.memory_space<smem>>
    %c0_i32 = arith.constant 0 : i32
    %c0_i32_0 = arith.constant 0 : i32
    %c0_i32_1 = arith.constant 0 : i32
    %c0_i32_2 = arith.constant 0 : i32
    return %1, %c0_i32, %c0_i32_0, %c0_i32_1 : i32, i32, i32, i32
  }
  func.func @transform_10(%arg0: i32, %arg1: memref<2xi32, #tpu.memory_space<smem>>) -> (i32, i32, i32, i32) {
    %0 = arith.index_cast %arg0 : i32 to index
    %1 = memref.load %arg1[%0] : memref<2xi32, #tpu.memory_space<smem>>
    %c0_i32 = arith.constant 0 : i32
    %c0_i32_0 = arith.constant 0 : i32
    %c0_i32_1 = arith.constant 0 : i32
    %c0_i32_2 = arith.constant 0 : i32
    return %1, %c0_i32, %c0_i32_0, %c0_i32_1 : i32, i32, i32, i32
  }
  func.func @transform_11(%arg0: i32, %arg1: memref<2xi32, #tpu.memory_space<smem>>) -> (i32, i32, i32, i32) {
    %0 = arith.index_cast %arg0 : i32 to index
    %1 = memref.load %arg1[%0] : memref<2xi32, #tpu.memory_space<smem>>
    %c0_i32 = arith.constant 0 : i32
    %c0_i32_0 = arith.constant 0 : i32
    %c0_i32_1 = arith.constant 0 : i32
    %c0_i32_2 = arith.constant 0 : i32
    return %1, %c0_i32, %c0_i32_0, %c0_i32_1 : i32, i32, i32, i32
  }
  func.func @transform_12(%arg0: i32, %arg1: memref<2xi32, #tpu.memory_space<smem>>) -> (i32, i32) {
    %c0_i32 = arith.constant 0 : i32
    %c0_i32_0 = arith.constant 0 : i32
    %c0_i32_1 = arith.constant 0 : i32
    return %c0_i32, %c0_i32_0 : i32, i32
  }
  func.func @transform_13(%arg0: i32, %arg1: memref<2xi32, #tpu.memory_space<smem>>) -> (i32, i32) {
    %c0_i32 = arith.constant 0 : i32
    %c0_i32_0 = arith.constant 0 : i32
    %c0_i32_1 = arith.constant 0 : i32
    return %c0_i32, %c0_i32_0 : i32, i32
  }
  func.func @transform_14(%arg0: i32, %arg1: memref<2xi32, #tpu.memory_space<smem>>) -> (i32, i32, i32) {
    %c0_i32 = arith.constant 0 : i32
    %c0_i32_0 = arith.constant 0 : i32
    %c0_i32_1 = arith.constant 0 : i32
    return %arg0, %c0_i32, %c0_i32_0 : i32, i32, i32
  }
}

</mosaic_0001>

<bundles_post_ra>
// kernel: div.11
= control target key start
LH: loop header
LB: loop body
LE: loop exit
PB: predicated region body
PF: predicated region fallthrough
CT: control target
= control target key end

     0   :  { %s62_s0 = inlined_call_operand.vmem [shape: f32[2,1,32], index: 0, kind: input, shape index: {}]   ;;  %s63_s1 = inlined_call_operand.vmem [shape: f32[2,1,32], index: 1, kind: input, shape index: {}]   ;;  %s64_s2 = inlined_call_operand.vmem [shape: f32[2,1,32], index: 2, kind: output, shape index: {}]  }
   0x1   :  { %v4_v0 = vld [vmem:[%s63_s1] sm:$0x1]  ;;  %v23_v1 = vld [vmem:[%s63_s1 + $0x1] sm:$0x1] }
   0x2   :  { %25 = vrcp.f32 %v4_v0  ;;  %v3_v2 = vld [vmem:[%s62_s0] sm:$0x1]  ;;  %v22_v3 = vld [vmem:[%s62_s0 + $0x1] sm:$0x1] }
   0x3   :  { %27 = vrcp.f32 %v23_v1 }
   0xf   :  { %v26_v4 = vpop.eup %25 }
  0x10   :  { %v28_v5 = vpop.eup %27  ;;  %v8_v6 = vmul.f32 %v26_v4, %v3_v2 }
  0x11   :  { %v18_v7 = vmul.f32 %v28_v5, %v22_v3 }
  0x12   :  { %10 = vst [vmem:[%s64_s2] sm:$0x1] %v8_v6 }
  0x13   :  { %24 = vst [vmem:[%s64_s2 + $0x1] sm:$0x1] %v18_v7 }

// kernel: gamba5_forward.1
= control target key start
LH: loop header
LB: loop body
LE: loop exit
PB: predicated region body
PF: predicated region fallthrough
CT: control target
= control target key end

     0   :  { %s5586_s0 = inlined_call_operand.vmem [shape: s32[2], index: 0, kind: input, shape index: {}]   ;;  %s5587_s1 = inlined_call_operand.vmem [shape: f32[2,1,32], index: 1, kind: input, shape index: {}]   ;;  %s5588_s2 = inlined_call_operand.vmem [shape: f32[5,6,1,32], index: 2, kind: input, shape index: {}]   ;;  %s5589_s3 = inlined_call_operand.vmem [shape: bf16[5,6,32,224], index: 3, kind: input, shape index: {}]   ;;  %s5590_s4 = inlined_call_operand.vmem [shape: f32[5,6,1,224], index: 4, kind: input, shape index: {}]   ;;  %s5591_s5 = inlined_call_operand.vmem [shape: f32[5,6,1,64], index: 5, kind: input, shape index: {}]   ;;  %s5592_s6 = inlined_call_operand.vmem [shape: f32[5,6,1,64], index: 6, kind: input, shape index: {}]   ;;  %s5593_s7 = inlined_call_operand.vmem [shape: bf16[5,6,64,32], index: 7, kind: input, shape index: {}]   ;;  %s5594_s8 = inlined_call_operand.vmem [shape: f32[5,6,1,32], index: 8, kind: input, shape index: {}]   ;;  %s5595_s9 = inlined_call_operand.vmem [shape: bf16[5,6,32,128], index: 9, kind: input, shape index: {}]   ;;  %s5596_s10 = inlined_call_operand.vmem [shape: f32[5,6,1,128], index: 10, kind: input, shape index: {}]   ;;  %s5597_s11 = inlined_call_operand.vmem [shape: bf16[5,6,128,32], index: 11, kind: input, shape index: {}]   ;;  %s5598_s12 = inlined_call_operand.vmem [shape: f32[5,6,1,32], index: 12, kind: input, shape index: {}]   ;;  %s5599_s13 = inlined_call_operand.vmem [shape: f32[32,4], index: 13, kind: input, shape index: {}]   ;;  %s5600_s14 = inlined_call_operand.vmem [shape: f32[1,4], index: 14, kind: input, shape index: {}]   ;;  %s5601_s15 = inlined_call_operand.hbm [shape: f32[2,1,4], index: 15, kind: output, shape index: {}]  }
   0x1   :  { %5609 = sst [smem:[#allocation10_spill]] %s5587_s1  ;;  %s20_s20 = sshll.u32 %s5586_s0, 4  ;;  %s21_s20 = int_to_ptr.vmem [resolvable:$true] %s20_s20 }
   0x2   :  { %5610 = sst [smem:[#allocation11_spill]] %s5588_s2  ;;  %s4783_s21 = scalar_lea.vmem %s21_s20, 16 }
   0x3   :  { %5611 = sst [smem:[#allocation12_spill]] %s5589_s3  ;;  %p4784_p0 = scmp.ne.s32.totalorder %s21_s20, %s4783_s21 }
   0x4   :  { %5612 = sst [smem:[#allocation13_spill]] %s5590_s4  ;;  %p4788_p1 = scmp.lt.s32.totalorder %s21_s20, %s21_s20 }
   0x5   :  { %5613 = sst [smem:[#allocation14_spill]] %s5591_s5  ;;  %p4789_p2 = scmp.lt.s32.totalorder %s4783_s21, %s4783_s21 }
   0x6   :  { %5614 = sst [smem:[#allocation15_spill]] %s5592_s6 }
   0x7   :  { %p4790_p3 = por %p4789_p2, %p4788_p1 }
   0x9   :  { %p4791_p4 = pnand %p4790_p3, %p4784_p0 }
   0xb   :  { %4794 = shalt.err (!%p4791_p4)  }
   0xc   :  { %s4859_s22 = smov [#allocation3]  }
   0xd   :  { %23 = dma.vmem_to_smem %s21_s20, 16, %s4859_s22, [#allocation2] }
   0xe   :  { %4837 = dma.done.wait [#allocation2], 16 }
   0xf   :  { %4838 = vsyncadd [#allocation2], 4294967280 }
  0x10   :  { %25 = sfence }
  0x11   :  { %26 = vsyncpa [#allocation5], 0 }
  0x12   :  { %28 = vsyncpa [#allocation5 + $0x1], 0  ;;  %s4951_s23 = smov 0   ;;  %s4953_s24 = smov 0  }
  0x13   :  { %s4955_s0 = smov 0   ;;  %s4957_s25 = smov 0  }
  0x14 LB: > { %5615 = sst [smem:[#allocation8_spill]] %s4853_s0  ;;  %s4972_s26 = sadd.s32 4294967295, %s4857_s25   ;;  %s4857_s25 = sphi %s4957_s25, %s5632_s25   ;;  %s4853_s0 = sphi %s4955_s0, %s5629_s0   ;;  %s4849_s24 = sphi %s4953_s24, %s5631_s24   ;;  %s4845_s23 = sphi %s4951_s23, %s5630_s23  }
  0x15   : > { %s3758_s27 = sadd.s32 4294967294, %s4857_s25   ;;  %s4976_s28 = sadd.s32 1, %s4857_s25  }
  0x16   : > { %s417_s29 = sadd.s32 1, %s4853_s0  ;;  %s414_s30 = ssub.s32 %s4857_s25, %s4976_s28 }
  0x17   : > { %p427_p5 = scmp.ne.s32.totalorder %s4853_s0, %s4849_s24  ;;  %p415_p6 = scmp.eq.s32.totalorder %s414_s30, 0 }
  0x18   : > { %p428_p7 = scmp.eq.s32.totalorder %s4972_s26, 1  ;;  %p433_p8 = scmp.ne.s32.totalorder %s4849_s24, %s4845_s23 }
  0x19   : > { %p434_p9 = scmp.eq.s32.totalorder %s3758_s27, 1  ;;  %p3761_p12 = scmp.ge.s32.totalorder %s4857_s25, 1 }
  0x1a   : > { %s4987_s16 = scalar_select %p415_p6, %s4853_s0, %s417_s29  }
  0x1b   : > { %p4989_p10 = por %p428_p7, %p427_p5  ;;  %p4993_p11 = por %p434_p9, %p433_p8 }
  0x1c   : > { %5616 = sst [smem:[#allocation9_spill]] %s4987_s16  ;;  %p567_p13 = scmp.lt.s32.totalorder %s4857_s25, 3 }
  0x1e   : > { %p568_p0 = pnand %p3761_p12, %p567_p13 }
  0x1f   : > { %p669_p1 = scmp.lt.s32.totalorder (!%p568_p0), %s4972_s26, 1  ;;  %s5619_s1 = sld [smem:[#allocation10_spill]] (!%p568_p0) }
  0x20   : > { %571 = sbr.rel (%p568_p0) target bundleno = 11359 (0x2c5f), region = 76  ;;  %s678_s27 = sld [smem:[#allocation3 + %s4972_s26]] (!%p568_p0) }
  0x21   : > { %s5620_s3 = sld [smem:[#allocation12_spill]] (!%p568_p0) }
  0x22   : > { %s672_s21 = sld [smem:[#allocation3 + %s4972_s26]] (!%p568_p0) }
  0x23   : > { %s5621_s2 = sld [smem:[#allocation11_spill]] (!%p568_p0) }
  0x24   : > { %s691_s20 = sld [smem:[#allocation3 + %s4972_s26]] (!%p568_p0) }
  0x25   : > { %s670_s19 = scalar_select %p669_p1, %s4972_s26, 1  ;;  %vm747_vm0 = vcmask 253952   ;;  %v4860_v3 = vmov 0   ;;  %vm791_vm1 = vcmask 261120   ;;  %v781_v16 = vlaneseq }
  0x26   : > { %p679_p2 = scmp.lt.s32.totalorder %s678_s27, 4  ;;  %827 = vmatprep.mubr.bf16.mxu1 %v4860_v3  ;;  %s5622_s5 = sld [smem:[#allocation14_spill]]  ;;  %vm862_vm2 = vcmask 122880   ;;  %vm891_vm4 = vcmask 516096   ;;  %v4864_v60 = vmov 0.0   ;;  %vm4865_vm5 = vmmov 0  }
  0x27   : > { %s671_s22 = scalar_lea.vmem %s5619_s1, %s670_s19  ;;  %v782_v17 = vshrl.u32 %v781_v16, 7  ;;  %s5623_s4 = sld [smem:[#allocation13_spill]]  ;;  %4242 = vmatprep.subr.bf16.mxu0 %v4864_v60  ;;  %4258 = vmatprep.mubr.msk.bf16.mxu0 %vm4865_vm5, %v4864_v60  ;;  %vm946_vm6 = vcmask 523264  }
  0x28   : > { %v5004_v0 = vld [vmem:[%s671_s22] sm:$0x1]  ;;  %s5634_s27 = smov (!%p679_p2, %s678_s27), 4  ;;  %p673_p3 = scmp.lt.s32.totalorder %s672_s21, 4 }
  0x29   : > { %v746_v1 = vmul.f32 %v5004_v0, %v5004_v0  ;;  %s4474_s29 = smul.u32 192, %s5634_s27  ;;  %s5607_s27 = smov 32   ;;  %v5043_v18 = vsub.s32 0, %v782_v17  ;;  %v5046_v20 = vsub.s32 1, %v782_v17 }
  0x2a   : > { %s5636_s21 = smov (!%p673_p3, %s672_s21), 4  ;;  %p692_p4 = scmp.lt.s32.totalorder %s691_s20, 4 }
  0x2b   : > { %v748_v2 = vsel %vm747_vm0, %v746_v1, 0.0  ;;  %s5014_s19 = scalar_lea.vmem %s5620_s3, %s4474_s29  ;;  %s4473_s22 = smul.u32 6, %s5636_s21 }
  0x2c   : > { %749 = vadd.xlane.f32.xlu0 %v748_v2  ;;  %v4531_v4 = vld [vmem:[%s5014_s19 + $0x14] ss:$8 sps:$4 sm:$0xff]   ;;  %v4533_v5 = vld [vmem:[%s5014_s19 + $0x10] ss:$8 sps:$4 sm:$0xff]   ;;  %v4534_v6 = vld [vmem:[%s5014_s19 + $0x4] ss:$8 sps:$4 sm:$0xff]  }
  0x2d   : > { %807 = vmatprep.subr.bf16.mxu1 %v4531_v4  ;;  %v4536_v7 = vld [vmem:[%s5014_s19] ss:$8 sps:$4 sm:$0xff]   ;;  %s5024_s30 = scalar_lea.vmem %s5621_s2, %s4473_s22  ;;  %s5638_s20 = smov (!%p692_p4, %s691_s20), 4 }
  0x2e   : > { %808 = vmatpush1.bf16.msra.mxu1 %v4533_v5  ;;  %v744_v10 = vld [vmem:[%s5024_s30] sm:$0x1]  ;;  %s4476_s21 = smul.u32 6, %s5638_s20  ;;  %s685_s29 = sld [smem:[#allocation3 + %s4972_s26]] }
  0x2f   : > { %809 = vmatprep.subr.bf16.mxu1 %v4534_v6  ;;  %v745_v11 = vmul.f32 %v744_v10, %v5004_v0  ;;  %s5605_s1 = smov 96   ;;  %s697_s3 = sld [smem:[#allocation3 + %s4972_s26]] }
  0x30   : > { %s5033_s22 = scalar_lea.vmem %s5622_s5, %s4476_s21  ;;  %s5624_s6 = sld [smem:[#allocation15_spill]] }
  0x31   : > { %v3773_v15 = vld [vmem:[%s5033_s22] ss:$0 sm:$0xff]  ;;  %s729_s16 = sld [smem:[#allocation3 + %s4972_s26]] }
  0x32   : > { %810 = vmatpush1.bf16.msra.mxu1 %v4536_v7  ;;  %873 = vrot.lane.b32.xlu1 %v3773_v15, %s5607_s27  ;;  %s723_s5 = sld [smem:[#allocation3 + %s4972_s26]] }
  0x33   : > { %4222 = vmatprep.subr.bf16.mxu1 %v4864_v60 }
  0x34   : > { %p686_p5 = scmp.lt.s32.totalorder %s685_s29, 4 }
  0x35   : > { %p698_p6 = scmp.lt.s32.totalorder %s697_s3, 4 }
  0x36   : > { %s5640_s29 = smov (!%p686_p5, %s685_s29), 4 }
  0x37   : > { %s4475_s2 = smul.u32 12, %s5640_s29  ;;  %s5642_s3 = smov (!%p698_p6, %s697_s3), 4 }
  0x38   : > { %s4477_s0 = smul.u32 6, %s5642_s3  ;;  %p730_p12 = scmp.lt.s32.totalorder %s729_s16, 4 }
  0x39   : > { %s5041_s20 = scalar_lea.vmem %s5623_s4, %s4475_s2  ;;  %s5603_s2 = smov 112  }
  0x3a   : > { %v759_v19 = vld [vmem:[%s5041_s20] sm:$0x3]  ;;  %s5059_s29 = scalar_lea.vmem %s5624_s6, %s4477_s0  ;;  %s5650_s16 = smov (!%p730_p12, %s729_s16), 4 }
  0x3b   : > { %v784_v21 = vrot.slane %v759_v19, %v5043_v18  ;;  %v788_v22 = vrot.slane %v759_v19, %v5046_v20  ;;  %v3774_v57 = vld [vmem:[%s5059_s29] ss:$0 sm:$0xff]  ;;  %p724_p13 = scmp.lt.s32.totalorder %s723_s5, 4 }
  0x3d   : > { %s5652_s5 = smov (!%p724_p13, %s723_s5), 4 }
  0x3e   : > { %s4481_s6 = smul.u32 6, %s5652_s5 }
  0xa4   : > { %v874_v45 = vpop.permute.xlu1 %873 }
  0xb5   : > { %v750_v8 = vpop.xlane.xlu0 %749 }
  0xb6   : > { %v751_v9 = vadd.f32 1e-06, %v750_v8 }
  0xb8   : > { %4651 = vrsqrt.f32 %v751_v9 }
  0xc5   : > { %v4652_v12 = vpop.eup %4651 }
  0xc6   : > { %v753_v13 = vmul.f32 %v4652_v12, %v745_v11 }
  0xc8   : > { %v754_v14 = vpack.c.bf16 %v753_v13, %v753_v13 }
  0xca   : > { %3770 = vmatmul.mubr.msk.bf16.vlgmr.msra.gmra.mxu1 %vm791_vm1, %v754_v14 }
  0xcb   : > { %4230 = vmatprep.mubr.msk.bf16.mxu1 %vm4865_vm5, %v4864_v60 }
 0x18a   : > { %v829_v23 = vpop.f32.mrf.mxu1 }
 0x18b   : > { %v830_v24 = vadd.f32 %v829_v23, %v784_v21 }
 0x18c   : > { %v831_v25 = vpop.f32.mrf.mxu1 }
 0x18d   : > { %v3771_v26 = vmul.f32 -1.442695, %v830_v24  ;;  %v832_v27 = vadd.f32 %v831_v25, %v788_v22 }
 0x18e   : > { %v833_v28 = vpop.f32.mrf.mxu1 }
 0x18f   : > { %4653 = vpow2.f32 %v3771_v26  ;;  %v3772_v29 = vmul.f32 -1.442695, %v832_v27  ;;  %v851_v42 = vmul.f32 1.442695, %v832_v27  ;;  %vm850_vm3 = vcmp.gt.f32.partialorder %v832_v27, 20.0 }
 0x190   : > { %v834_v30 = vpop.f32.mrf.mxu1 }
 0x191   : > { %4655 = vpow2.f32 %v3772_v29 }
 0x19c   : > { %v4654_v31 = vpop.eup %4653 }
 0x19d   : > { %v842_v32 = vadd.f32 1.0, %v4654_v31 }
 0x19e   : > { %v4656_v33 = vpop.eup %4655 }
 0x19f   : > { %4657 = vrcp.f32 %v842_v32  ;;  %v843_v34 = vadd.f32 1.0, %v4656_v33 }
 0x1a1   : > { %4659 = vrcp.f32 %v843_v34 }
 0x1a2   : > { %4661 = vpow2.f32 %v851_v42 }
 0x1ac   : > { %v4658_v35 = vpop.eup %4657 }
 0x1ad   : > { %v848_v36 = vmul.f32 %v4658_v35, %v830_v24 }
 0x1ae   : > { %v4660_v37 = vpop.eup %4659 }
 0x1af   : > { %878 = vrot.lane.b32.xlu1 %v848_v36, %s5605_s1  ;;  %v849_v38 = vmul.f32 %v4660_v37, %v832_v27  ;;  %v4662_v43 = vpop.eup %4661 }
 0x1b0   : > { %v853_v44 = vadd.f32 1.0, %v4662_v43 }
 0x1b1   : > { %858 = vrot.lane.b32.xlu0 %v849_v38, %s5603_s2  ;;  %s703_s2 = sld [smem:[#allocation3 + %s4972_s26]] }
 0x1b2   : > { %4663 = vlog2.f32 %v853_v44 }
 0x1b7   : > { %p704_p7 = scmp.lt.s32.totalorder %s703_s2, 4 }
 0x1b9   : > { %s5644_s2 = smov (!%p704_p7, %s703_s2), 4 }
 0x1ba   : > { %s4478_s3 = smul.u32 192, %s5644_s2  ;;  %s716_s2 = sld [smem:[#allocation3 + %s4972_s26]] }
 0x1bc   : > { %s5074_s21 = scalar_lea.vmem %s5593_s7, %s4478_s3 }
 0x1bd   : > { %v4537_v61 = vld [vmem:[%s5074_s21 + $0x18] sm:$0xff]   ;;  %v4538_v62 = vld [vmem:[%s5074_s21 + $0x10] sm:$0xff]   ;;  %v4539_v63 = vld [vmem:[%s5074_s21 + $0x8] sm:$0xff]  }
 0x1be   : > { %4223 = vmatpush3.bf16.msra.mxu1 %v4537_v61  ;;  %v4540_v1 = vld [vmem:[%s5074_s21] sm:$0xff]  }
 0x1bf   : > { %v4664_v46 = vpop.eup %4663  ;;  %4224 = vmatprep.subr.bf16.mxu1 %v4864_v60 }
 0x1c0   : > { %v855_v48 = vmul.f32 0.6931472, %v4664_v46  ;;  %p717_p8 = scmp.lt.s32.totalorder %s716_s2, 4 }
 0x1c2   : > { %v856_v49 = vsel %vm850_vm3, %v832_v27, %v855_v48  ;;  %4225 = vmatpush3.bf16.msra.mxu1 %v4538_v62  ;;  %s5646_s2 = smov (!%p717_p8, %s716_s2), 4 }
 0x1c3   : > { %4226 = vmatprep.subr.bf16.mxu1 %v4864_v60  ;;  %s4480_s3 = smul.u32 96, %s5646_s2 }
 0x1c6   : > { %4227 = vmatpush3.bf16.msra.mxu1 %v4539_v63 }
 0x1c7   : > { %4228 = vmatprep.subr.bf16.mxu1 %v4864_v60 }
 0x1ca   : > { %4229 = vmatpush3.bf16.msra.mxu1 %v4540_v1  ;;  %v4866_v1 = vmov -1.0  }
 0x1cb   : > { %4234 = vmatprep.subr.bf16.mxu1 %v4864_v60 }
 0x221   : > { %v879_v47 = vpop.permute.xlu1 %878 }
 0x223   : > { %v859_v39 = vpop.permute.xlu0 %858 }
 0x224   : > { %v861_v40 = vmul.f32 %v859_v39, %v849_v38 }
 0x226   : > { %v863_v41 = vsel %vm862_vm2, %v861_v40, 0.0 }
 0x227   : > { %864 = vadd.xlane.f32.xlu1 %v863_v41 }
 0x238   : > { %882 = vrot.lane.b32.xlu1 %v848_v36, %s5607_s27 }
 0x2b0   : > { %v865_v50 = vpop.xlane.xlu1 %864 }
 0x2b1   : > { %v866_v51 = vmul.f32 %v865_v50, %v856_v49 }
 0x2b3   : > { %v876_v52 = vadd.f32 %v874_v45, %v866_v51 }
 0x2b4   : > { %v883_v54 = vpop.permute.xlu1 %882 }
 0x2b5   : > { %v881_v53 = vmul.f32 %v879_v47, %v876_v52 }
 0x2b7   : > { %v885_v55 = vmul.f32 %v883_v54, %v881_v53 }
 0x2b9   : > { %v886_v56 = vmul.f32 %v885_v55, %v885_v55 }
 0x2bb   : > { %888 = vrot.lane.b32.xlu0 %v886_v56, %s5605_s1 }
 0x2bf   : > { %906 = vrot.lane.b32.xlu0 %v3774_v57, %s5607_s27  ;;  %s710_s27 = sld [smem:[#allocation3 + %s4972_s26]] }
 0x2c5   : > { %p711_p9 = scmp.lt.s32.totalorder %s710_s27, 4 }
 0x2c7   : > { %s5648_s27 = smov (!%p711_p9, %s710_s27), 4 }
 0x2c8   : > { %s4479_s2 = smul.u32 6, %s5648_s27 }
 0x2c9   : > { %s4482_s27 = smul.u32 384, %s5650_s16  ;;  %s5139_s16 = scalar_lea.vmem %s5596_s10, %s4481_s6 }
 0x2ca   : > { %v1005_v37 = vld [vmem:[%s5139_s16] sm:$0x1]  ;;  %s5627_s6 = smov 96  }
 0x2cb   : > { %s5117_s4 = scalar_lea.vmem %s5597_s11, %s4482_s27  ;;  %s736_s27 = sld [smem:[#allocation3 + %s4972_s26]] }
 0x2cc   : > { %v4543_v29 = vld [vmem:[%s5117_s4 + $0x38] sm:$0xff]   ;;  %v4544_v30 = vld [vmem:[%s5117_s4 + $0x30] sm:$0xff]   ;;  %v4545_v31 = vld [vmem:[%s5117_s4 + $0x28] sm:$0xff]  }
 0x2cd   : > { %4243 = vmatpush3.bf16.msra.mxu0 %v4543_v29  ;;  %v4546_v32 = vld [vmem:[%s5117_s4 + $0x20] sm:$0xff]   ;;  %v4547_v33 = vld [vmem:[%s5117_s4 + $0x18] sm:$0xff]   ;;  %v4548_v34 = vld [vmem:[%s5117_s4 + $0x10] sm:$0xff]  }
 0x2ce   : > { %4244 = vmatprep.subr.bf16.mxu0 %v4864_v60  ;;  %v4549_v35 = vld [vmem:[%s5117_s4 + $0x8] sm:$0xff]   ;;  %v4550_v36 = vld [vmem:[%s5117_s4] sm:$0xff]  }
 0x2d1   : > { %4245 = vmatpush3.bf16.msra.mxu0 %v4544_v30  ;;  %p737_p0 = scmp.lt.s32.totalorder %s736_s27, 4  ;;  %v3805_v30 = vld [vmem:[%s5033_s22 + $0x1] ss:$0 sm:$0xff] }
 0x2d2   : > { %4246 = vmatprep.subr.bf16.mxu0 %v4864_v60 }
 0x2d3   : > { %s5654_s27 = smov (!%p737_p0, %s736_s27), 4 }
 0x2d4   : > { %s4483_s5 = smul.u32 6, %s5654_s27  ;;  %s5625_s27 = smov 32  }
 0x2d5   : > { %4247 = vmatpush3.bf16.msra.mxu0 %v4545_v31  ;;  %v3796_v31 = vld [vmem:[%s5041_s20 + $0x2] sm:$0x3] }
 0x2d6   : > { %4248 = vmatprep.subr.bf16.mxu0 %v4864_v60  ;;  %s5149_s0 = scalar_lea.vmem %s5598_s12, %s4483_s5  ;;  %s5626_s5 = smov 112  }
 0x2d9   : > { %4249 = vmatpush3.bf16.msra.mxu0 %v4546_v32  ;;  %v1238_v32 = vrot.slane %v3796_v31, %v5043_v18 }
 0x2da   : > { %4250 = vmatprep.subr.bf16.mxu0 %v4864_v60 }
 0x2dd   : > { %4251 = vmatpush3.bf16.msra.mxu0 %v4547_v33  ;;  %v1242_v33 = vrot.slane %v3796_v31, %v5046_v20 }
 0x2de   : > { %4252 = vmatprep.subr.bf16.mxu0 %v4864_v60 }
 0x2e1   : > { %4253 = vmatpush3.bf16.msra.mxu0 %v4548_v34 }
 0x2e2   : > { %4254 = vmatprep.subr.bf16.mxu0 %v4864_v60 }
 0x2e5   : > { %4255 = vmatpush3.bf16.msra.mxu0 %v4549_v35 }
 0x2e6   : > { %4256 = vmatprep.subr.bf16.mxu0 %v4864_v60 }
 0x2e9   : > { %4257 = vmatpush3.bf16.msra.mxu0 %v4550_v36 }
 0x2ea   : > { %4282 = vmatprep.subr.bf16.mxu0 %v4864_v60 }
 0x32d   : > { %v889_v58 = vpop.permute.xlu0 %888 }
 0x32e   : > { %v892_v59 = vsel %vm891_vm4, %v889_v58, 0.0 }
 0x32f   : > { %893 = vadd.xlane.f32.xlu1 %v892_v59 }
 0x331   : > { %v907_v7 = vpop.permute.xlu0 %906 }
 0x3b8   : > { %v894_v2 = vpop.xlane.xlu1 %893 }
 0x3b9   : > { %v896_v4 = vmul.f32 0.015625, %v894_v2 }
 0x3bb   : > { %v897_v5 = vadd.f32 1e-05, %v896_v4 }
 0x3bd   : > { %4665 = vrsqrt.f32 %v897_v5 }
 0x3ca   : > { %v4666_v6 = vpop.eup %4665 }
 0x3cb   : > { %v899_v8 = vmul.f32 %v4666_v6, %v885_v55 }
 0x3cd   : > { %v909_v9 = vmul.f32 %v907_v7, %v899_v8 }
 0x3cf   : > { %v910_v10 = vpack.c.bf16 %v909_v9, %v909_v9 }
 0x3d1   : > { %920 = vrot.lane.b32.xlu0 %v910_v10, %s5605_s1  ;;  %s5098_s1 = scalar_lea.vmem %s5595_s9, %s4480_s3  ;;  %s5107_s3 = scalar_lea.vmem %s5594_s8, %s4479_s2  ;;  %v1194_v10 = vld [vmem:[%s5149_s0] sm:$0x1] }
 0x3d2   : > { %v4542_v21 = vld [vmem:[%s5098_s1] sm:$0xff]  }
 0x3d3   : > { %v991_v24 = vld [vmem:[%s5107_s3] sm:$0x1] }
 0x443   : > { %v921_v11 = vpop.permute.xlu0 %920 }
 0x444   : > { %4231 = vmatmul.mubr.msk.bf16.vlgmr.msra.gmra.mxu1 %vm946_vm6, %v921_v11 }
 0x445   : > { %4238 = vmatprep.mubr.msk.bf16.mxu1 %vm4865_vm5, %v4864_v60 }
 0x504   : > { %v984_v12 = vpop.f32.mrf.mxu1 }
 0x505   : > { %v5089_v13 = vadd.f32 %v984_v12, %v5004_v0  ;;  %v4541_v0 = vld [vmem:[%s5098_s1 + $0x8] sm:$0xff]  }
 0x506   : > { %v4232_v14 = vpop.f32.mrf.mxu1  ;;  %4235 = vmatpush3.bf16.msra.mxu1 %v4541_v0  ;;  %v4551_v0 = vld [vmem:[%s5014_s19 + $0x30] ss:$8 sps:$4 sm:$0xff]  }
 0x507   : > { %v993_v15 = vmul.f32 %v5089_v13, %v5089_v13  ;;  %4236 = vmatprep.subr.bf16.mxu1 %v4864_v60  ;;  %v992_v25 = vmul.f32 %v991_v24, %v5089_v13 }
 0x508   : > { %v987_v16 = vpop.f32.mrf.mxu1 }
 0x509   : > { %v994_v17 = vsel %vm747_vm0, %v993_v15, 0.0 }
 0x50a   : > { %995 = vadd.xlane.f32.xlu0 %v994_v17  ;;  %v4233_v19 = vpop.f32.mrf.mxu1  ;;  %4237 = vmatpush3.bf16.msra.mxu1 %v4542_v21  ;;  %v4553_v21 = vld [vmem:[%s5014_s19 + $0x34] ss:$8 sps:$4 sm:$0xff]  }
 0x50b   : > { %1260 = vmatprep.subr.bf16.mxu1 %v4553_v21 }
 0x593   : > { %v996_v22 = vpop.xlane.xlu0 %995 }
 0x594   : > { %v997_v23 = vadd.f32 1e-06, %v996_v22  ;;  %v4556_v22 = vld [vmem:[%s5014_s19 + $0x24] ss:$8 sps:$4 sm:$0xff]  }
 0x596   : > { %4667 = vrsqrt.f32 %v997_v23  ;;  %v4554_v23 = vld [vmem:[%s5014_s19 + $0x20] ss:$8 sps:$4 sm:$0xff]  }
 0x5a3   : > { %v4668_v26 = vpop.eup %4667 }
 0x5a4   : > { %v999_v27 = vmul.f32 %v4668_v26, %v992_v25  ;;  %v3791_v25 = vld [vmem:[%s5024_s30 + $0x1] sm:$0x1] }
 0x5a6   : > { %v1000_v28 = vpack.c.bf16 %v999_v27, %v999_v27 }
 0x5a8   : > { %4239 = vmatmul.mubr.msk.bf16.vlgmr.msra.gmra.mxu1 %vm791_vm1, %v1000_v28 }
 0x5a9   : > { %1280 = vmatprep.mubr.bf16.mxu1 %v4860_v3  ;;  %1261 = vmatpush1.bf16.msra.mxu1 %v4551_v0 }
 0x5aa   : > { %1262 = vmatprep.subr.bf16.mxu1 %v4556_v22 }
 0x5ad   : > { %1263 = vmatpush1.bf16.msra.mxu1 %v4554_v23 }
 0x5ae   : > { %4262 = vmatprep.subr.bf16.mxu1 %v4864_v60 }
 0x668   : > { %v1055_v38 = vpop.f32.mrf.mxu1 }
 0x669   : > { %v1056_v39 = vadd.f32 %v1055_v38, %v1005_v37 }
 0x66a   : > { %v4240_v40 = vpop.f32.mrf.mxu1 }
 0x66b   : > { %v1062_v41 = vmul.f32 0.70710677, %v1056_v39  ;;  %v1061_v5 = vmul.f32 0.5, %v1056_v39 }
 0x66c   : > { %v1058_v42 = vpop.f32.mrf.mxu1 }
 0x66d   : > { %v1065_v43 = vand.u32 2147483647, %v1062_v41  ;;  %vm1063_vm7 = vcmp.ge.f32.partialorder %v1062_v41, 0.0 }
 0x66e   : > { %v4241_v44 = vpop.f32.mrf.mxu1  ;;  %v1064_v2 = vsel %vm1063_vm7, 1.0, %v4866_v1 }
 0x66f   : > { %v1066_v45 = vmul.f32 0.3275911, %v1065_v43  ;;  %v1079_v47 = vsub.f32 0.0, %v1065_v43 }
 0x671   : > { %v1067_v46 = vadd.f32 1.0, %v1066_v45  ;;  %v1080_v48 = vmul.f32 %v1079_v47, %v1065_v43 }
 0x673   : > { %4669 = vrcp.f32 %v1067_v46  ;;  %v1081_v51 = vmul.f32 1.442695, %v1080_v48 }
 0x675   : > { %4671 = vpow2.f32 %v1081_v51 }
 0x680   : > { %v4670_v49 = vpop.eup %4669 }
 0x681   : > { %v1070_v50 = vmul.f32 1.0614054, %v4670_v49 }
 0x682   : > { %v4672_v61 = vpop.eup %4671 }
 0x683   : > { %v1071_v52 = vadd.f32 -1.4531521, %v1070_v50 }
 0x685   : > { %v1072_v53 = vmul.f32 %v4670_v49, %v1071_v52 }
 0x687   : > { %v1073_v54 = vadd.f32 1.4214138, %v1072_v53 }
 0x689   : > { %v1074_v55 = vmul.f32 %v4670_v49, %v1073_v54 }
 0x68b   : > { %v1075_v56 = vadd.f32 -0.28449672, %v1074_v55 }
 0x68d   : > { %v1076_v57 = vmul.f32 %v4670_v49, %v1075_v56 }
 0x68f   : > { %v1077_v58 = vadd.f32 0.2548296, %v1076_v57 }
 0x691   : > { %v1078_v59 = vmul.f32 %v4670_v49, %v1077_v58 }
 0x693   : > { %v1083_v62 = vmul.f32 %v4672_v61, %v1078_v59 }
 0x695   : > { %v1084_v63 = vsub.f32 1.0, %v1083_v62 }
 0x697   : > { %v1085_v4 = vmul.f32 %v1084_v63, %v1064_v2 }
 0x699   : > { %v1086_v6 = vadd.f32 1.0, %v1085_v4 }
 0x69b   : > { %v1087_v7 = vmul.f32 %v1086_v6, %v1061_v5 }
 0x69d   : > { %v1088_v8 = vpack.c.bf16 %v1087_v7, %v1087_v7 }
 0x69f   : > { %4259 = vmatmul.mubr.bf16.vlgmr.msra.gmra.mxu0 %v1088_v8  ;;  %v3807_v8 = vld [vmem:[%s5059_s29 + $0x1] ss:$0 sm:$0xff] }
 0x6a0   : > { %4298 = vmatprep.mubr.msk.bf16.mxu0 %vm4865_vm5, %v4864_v60 }
 0x75f   : > { %v1187_v9 = vpop.f32.mrf.mxu0 }
 0x760   : > { %v1193_v11 = vadd.f32 %v1187_v9, %v5089_v13 }
 0x761   : > { %v4260_v12 = vpop.f32.mrf.mxu0 }
 0x762   : > { %v5153_v14 = vadd.f32 %v1194_v10, %v1193_v11  ;;  %v4557_v11 = vld [vmem:[%s5074_s21 + $0x38] sm:$0xff]   ;;  %v4558_v12 = vld [vmem:[%s5074_s21 + $0x30] sm:$0xff]  }
 0x763   : > { %v1190_v15 = vpop.f32.mrf.mxu0 }
 0x764   : > { %v1199_v16 = vmul.f32 %v5153_v14, %v5153_v14  ;;  %v1198_v26 = vmul.f32 %v3791_v25, %v5153_v14  ;;  %v4559_v15 = vld [vmem:[%s5074_s21 + $0x28] sm:$0xff]  }
 0x765   : > { %v4261_v17 = vpop.f32.mrf.mxu0 }
 0x766   : > { %v1200_v19 = vsel %vm747_vm0, %v1199_v16, 0.0  ;;  %v4560_v16 = vld [vmem:[%s5074_s21 + $0x20] sm:$0xff]  }
 0x767   : > { %1201 = vadd.xlane.f32.xlu1 %v1200_v19 }
 0x778   : > { %1326 = vrot.lane.b32.xlu1 %v3805_v30, %s5625_s27 }
 0x7f0   : > { %v1202_v13 = vpop.xlane.xlu1 %1201 }
 0x7f1   : > { %v1203_v24 = vadd.f32 1e-06, %v1202_v13 }
 0x7f3   : > { %4673 = vrsqrt.f32 %v1203_v24 }
 0x7f4   : > { %v1327_v57 = vpop.permute.xlu1 %1326 }
 0x800   : > { %v4674_v27 = vpop.eup %4673 }
 0x801   : > { %v1205_v28 = vmul.f32 %v4674_v27, %v1198_v26 }
 0x803   : > { %v1206_v29 = vpack.c.bf16 %v1205_v28, %v1205_v28 }
 0x805   : > { %3801 = vmatmul.mubr.msk.bf16.vlgmr.msra.gmra.mxu1 %vm791_vm1, %v1206_v29 }
 0x806   : > { %4270 = vmatprep.mubr.msk.bf16.mxu1 %vm4865_vm5, %v4864_v60  ;;  %4263 = vmatpush3.bf16.msra.mxu1 %v4557_v11 }
 0x807   : > { %4264 = vmatprep.subr.bf16.mxu1 %v4864_v60 }
 0x80a   : > { %4265 = vmatpush3.bf16.msra.mxu1 %v4558_v12 }
 0x80b   : > { %4266 = vmatprep.subr.bf16.mxu1 %v4864_v60 }
 0x80e   : > { %4267 = vmatpush3.bf16.msra.mxu1 %v4559_v15 }
 0x80f   : > { %4268 = vmatprep.subr.bf16.mxu1 %v4864_v60 }
 0x812   : > { %4269 = vmatpush3.bf16.msra.mxu1 %v4560_v16 }
 0x813   : > { %4274 = vmatprep.subr.bf16.mxu1 %v4864_v60 }
 0x8c5   : > { %v1282_v34 = vpop.f32.mrf.mxu1 }
 0x8c6   : > { %v1283_v35 = vadd.f32 %v1282_v34, %v1238_v32  ;;  %v4562_v34 = vld [vmem:[%s5098_s1 + $0x10] sm:$0xff]  }
 0x8c7   : > { %v1284_v36 = vpop.f32.mrf.mxu1 }
 0x8c8   : > { %v3802_v37 = vmul.f32 -1.442695, %v1283_v35  ;;  %v1285_v38 = vadd.f32 %v1284_v36, %v1242_v33  ;;  %v4561_v33 = vld [vmem:[%s5098_s1 + $0x18] sm:$0xff]   ;;  %v3821_v36 = vld [vmem:[%s5107_s3 + $0x1] sm:$0x1] }
 0x8c9   : > { %v1286_v39 = vpop.f32.mrf.mxu1 }
 0x8ca   : > { %4675 = vpow2.f32 %v3802_v37  ;;  %v3803_v40 = vmul.f32 -1.442695, %v1285_v38  ;;  %v1304_v53 = vmul.f32 1.442695, %v1285_v38  ;;  %vm1303_vm8 = vcmp.gt.f32.partialorder %v1285_v38, 20.0 }
 0x8cb   : > { %v1287_v41 = vpop.f32.mrf.mxu1 }
 0x8cc   : > { %4677 = vpow2.f32 %v3803_v40  ;;  %v4563_v41 = vld [vmem:[%s5117_s4 + $0x78] sm:$0xff]  }
 0x8cd   : > { %4283 = vmatpush3.bf16.msra.mxu0 %v4563_v41 }
 0x8ce   : > { %4284 = vmatprep.subr.bf16.mxu0 %v4864_v60 }
 0x8d7   : > { %v4676_v42 = vpop.eup %4675 }
 0x8d8   : > { %v1295_v44 = vadd.f32 1.0, %v4676_v42  ;;  %v4564_v42 = vld [vmem:[%s5117_s4 + $0x70] sm:$0xff]  }
 0x8d9   : > { %v4678_v43 = vpop.eup %4677  ;;  %4285 = vmatpush3.bf16.msra.mxu0 %v4564_v42  ;;  %v3860_v42 = vld [vmem:[%s5041_s20 + $0x4] sm:$0x3] }
 0x8da   : > { %v1296_v45 = vadd.f32 1.0, %v4678_v43  ;;  %4286 = vmatprep.subr.bf16.mxu0 %v4864_v60  ;;  %v4565_v43 = vld [vmem:[%s5117_s4 + $0x68] sm:$0xff]  }
 0x8dc   : > { %4679 = vrcp.f32 %v1296_v45  ;;  %v4567_v45 = vld [vmem:[%s5117_s4 + $0x58] sm:$0xff]  }
 0x8dd   : > { %4681 = vrcp.f32 %v1295_v44  ;;  %4287 = vmatpush3.bf16.msra.mxu0 %v4565_v43  ;;  %v4566_v44 = vld [vmem:[%s5117_s4 + $0x60] sm:$0xff]   ;;  %v1695_v43 = vrot.slane %v3860_v42, %v5043_v18 }
 0x8de   : > { %4683 = vpow2.f32 %v1304_v53  ;;  %4288 = vmatprep.subr.bf16.mxu0 %v4864_v60 }
 0x8e1   : > { %4289 = vmatpush3.bf16.msra.mxu0 %v4566_v44  ;;  %v1699_v44 = vrot.slane %v3860_v42, %v5046_v20 }
 0x8e2   : > { %4290 = vmatprep.subr.bf16.mxu0 %v4864_v60 }
 0x8e5   : > { %4291 = vmatpush3.bf16.msra.mxu0 %v4567_v45 }
 0x8e6   : > { %4292 = vmatprep.subr.bf16.mxu0 %v4864_v60 }
 0x8e9   : > { %v4680_v46 = vpop.eup %4679 }
 0x8ea   : > { %v1302_v47 = vmul.f32 %v4680_v46, %v1285_v38  ;;  %v4682_v48 = vpop.eup %4681  ;;  %v4568_v46 = vld [vmem:[%s5117_s4 + $0x50] sm:$0xff]  }
 0x8eb   : > { %v1301_v49 = vmul.f32 %v4682_v48, %v1283_v35  ;;  %v4684_v54 = vpop.eup %4683  ;;  %4293 = vmatpush3.bf16.msra.mxu0 %v4568_v46  ;;  %v4570_v48 = vld [vmem:[%s5117_s4 + $0x40] sm:$0xff]  }
 0x8ec   : > { %1311 = vrot.lane.b32.xlu0 %v1302_v47, %s5626_s5  ;;  %v1306_v55 = vadd.f32 1.0, %v4684_v54  ;;  %4294 = vmatprep.subr.bf16.mxu0 %v4864_v60 }
 0x8ee   : > { %4685 = vlog2.f32 %v1306_v55 }
 0x8f0   : > { %1335 = vrot.lane.b32.xlu0 %v1301_v49, %s5625_s27 }
 0x8fb   : > { %v4686_v56 = vpop.eup %4685 }
 0x8fc   : > { %v1308_v58 = vmul.f32 0.6931472, %v4686_v56 }
 0x8fe   : > { %v1309_v59 = vsel %vm1303_vm8, %v1285_v38, %v1308_v58 }
 0x95e   : > { %v1312_v50 = vpop.permute.xlu0 %1311 }
 0x95f   : > { %v1314_v51 = vmul.f32 %v1312_v50, %v1302_v47  ;;  %v4569_v47 = vld [vmem:[%s5117_s4 + $0x48] sm:$0xff]  }
 0x960   : > { %4295 = vmatpush3.bf16.msra.mxu0 %v4569_v47 }
 0x961   : > { %v1315_v52 = vsel %vm862_vm2, %v1314_v51, 0.0  ;;  %4296 = vmatprep.subr.bf16.mxu0 %v4864_v60 }
 0x962   : > { %1316 = vadd.xlane.f32.xlu1 %v1315_v52  ;;  %v1336_v5 = vpop.permute.xlu0 %1335 }
 0x964   : > { %4297 = vmatpush3.bf16.msra.mxu0 %v4570_v48 }
 0x965   : > { %4322 = vmatprep.subr.bf16.mxu0 %v4864_v60 }
 0x973   : > { %1331 = vrot.lane.b32.xlu1 %v1301_v49, %s5627_s6  ;;  %v3826_v49 = vld [vmem:[%s5139_s16 + $0x1] sm:$0x1] }
 0x9eb   : > { %v1317_v61 = vpop.xlane.xlu1 %1316 }
 0x9ec   : > { %v1318_v62 = vmul.f32 %v1317_v61, %v1309_v59 }
 0x9ee   : > { %v1329_v63 = vadd.f32 %v1327_v57, %v1318_v62 }
 0x9ef   : > { %v1332_v2 = vpop.permute.xlu1 %1331 }
 0x9f0   : > { %v1334_v4 = vmul.f32 %v1332_v2, %v1329_v63 }
 0x9f2   : > { %v1338_v6 = vmul.f32 %v1336_v5, %v1334_v4 }
 0x9f4   : > { %v1339_v7 = vmul.f32 %v1338_v6, %v1338_v6 }
 0x9f6   : > { %1341 = vrot.lane.b32.xlu1 %v1339_v7, %s5627_s6 }
 0x9fa   : > { %1358 = vrot.lane.b32.xlu1 %v3807_v8, %s5625_s27 }
 0xa68   : > { %v1342_v9 = vpop.permute.xlu1 %1341 }
 0xa69   : > { %v1344_v10 = vsel %vm891_vm4, %v1342_v9, 0.0 }
 0xa6a   : > { %1345 = vadd.xlane.f32.xlu0 %v1344_v10 }
 0xa6c   : > { %v1359_v22 = vpop.permute.xlu1 %1358 }
 0xaf3   : > { %v1346_v17 = vpop.xlane.xlu0 %1345 }
 0xaf4   : > { %v1347_v19 = vmul.f32 0.015625, %v1346_v17 }
 0xaf6   : > { %v1348_v0 = vadd.f32 1e-05, %v1347_v19 }
 0xaf8   : > { %4687 = vrsqrt.f32 %v1348_v0 }
 0xb05   : > { %v4688_v21 = vpop.eup %4687 }
 0xb06   : > { %v1350_v23 = vmul.f32 %v4688_v21, %v1338_v6 }
 0xb08   : > { %v1361_v13 = vmul.f32 %v1359_v22, %v1350_v23 }
 0xb0a   : > { %v1362_v24 = vpack.c.bf16 %v1361_v13, %v1361_v13 }
 0xb0c   : > { %1373 = vrot.lane.b32.xlu1 %v1362_v24, %s5627_s6  ;;  %v3854_v24 = vld [vmem:[%s5149_s0 + $0x1] sm:$0x1] }
 0xb7e   : > { %v1374_v25 = vpop.permute.xlu1 %1373 }
 0xb7f   : > { %4271 = vmatmul.mubr.msk.bf16.vlgmr.msra.gmra.mxu1 %vm946_vm6, %v1374_v25 }
 0xb80   : > { %4278 = vmatprep.mubr.msk.bf16.mxu1 %vm4865_vm5, %v4864_v60  ;;  %4275 = vmatpush3.bf16.msra.mxu1 %v4561_v33  ;;  %v4571_v33 = vld [vmem:[%s5014_s19 + $0x50] ss:$8 sps:$4 sm:$0xff]  }
 0xb81   : > { %4276 = vmatprep.subr.bf16.mxu1 %v4864_v60 }
 0xb84   : > { %4277 = vmatpush3.bf16.msra.mxu1 %v4562_v34  ;;  %v4573_v34 = vld [vmem:[%s5014_s19 + $0x54] ss:$8 sps:$4 sm:$0xff]  }
 0xb85   : > { %1717 = vmatprep.subr.bf16.mxu1 %v4573_v34 }
 0xc3f   : > { %v1436_v26 = vpop.f32.mrf.mxu1 }
 0xc40   : > { %v5194_v27 = vadd.f32 %v1436_v26, %v5153_v14 }
 0xc41   : > { %v4272_v28 = vpop.f32.mrf.mxu1 }
 0xc42   : > { %v1446_v29 = vmul.f32 %v5194_v27, %v5194_v27  ;;  %v1445_v37 = vmul.f32 %v3821_v36, %v5194_v27 }
 0xc43   : > { %v1439_v30 = vpop.f32.mrf.mxu1 }
 0xc44   : > { %v1447_v31 = vsel %vm747_vm0, %v1446_v29, 0.0 }
 0xc45   : > { %1448 = vadd.xlane.f32.xlu1 %v1447_v31  ;;  %v4273_v32 = vpop.f32.mrf.mxu1 }
 0xcce   : > { %v1449_v35 = vpop.xlane.xlu1 %1448 }
 0xccf   : > { %v1450_v14 = vadd.f32 1e-06, %v1449_v35  ;;  %v4576_v35 = vld [vmem:[%s5014_s19 + $0x44] ss:$8 sps:$4 sm:$0xff]  }
 0xcd1   : > { %4689 = vrsqrt.f32 %v1450_v14  ;;  %v4574_v14 = vld [vmem:[%s5014_s19 + $0x40] ss:$8 sps:$4 sm:$0xff]  }
 0xcde   : > { %v4690_v38 = vpop.eup %4689 }
 0xcdf   : > { %v1452_v39 = vmul.f32 %v4690_v38, %v1445_v37  ;;  %v3855_v37 = vld [vmem:[%s5024_s30 + $0x2] sm:$0x1] }
 0xce1   : > { %v1453_v40 = vpack.c.bf16 %v1452_v39, %v1452_v39 }
 0xce3   : > { %4279 = vmatmul.mubr.msk.bf16.vlgmr.msra.gmra.mxu1 %vm791_vm1, %v1453_v40 }
 0xce4   : > { %1737 = vmatprep.mubr.bf16.mxu1 %v4860_v3  ;;  %1718 = vmatpush1.bf16.msra.mxu1 %v4571_v33 }
 0xce5   : > { %1719 = vmatprep.subr.bf16.mxu1 %v4576_v35 }
 0xce8   : > { %1720 = vmatpush1.bf16.msra.mxu1 %v4574_v14 }
 0xce9   : > { %4302 = vmatprep.subr.bf16.mxu1 %v4864_v60 }
 0xda3   : > { %v1510_v50 = vpop.f32.mrf.mxu1 }
 0xda4   : > { %v1511_v51 = vadd.f32 %v3826_v49, %v1510_v50 }
 0xda5   : > { %v4280_v52 = vpop.f32.mrf.mxu1 }
 0xda6   : > { %v1517_v53 = vmul.f32 0.70710677, %v1511_v51  ;;  %v1516_v0 = vmul.f32 0.5, %v1511_v51 }
 0xda7   : > { %v1513_v54 = vpop.f32.mrf.mxu1 }
 0xda8   : > { %v1520_v55 = vand.u32 2147483647, %v1517_v53  ;;  %vm1518_vm9 = vcmp.ge.f32.partialorder %v1517_v53, 0.0 }
 0xda9   : > { %v4281_v56 = vpop.f32.mrf.mxu1  ;;  %v1519_v17 = vsel %vm1518_vm9, 1.0, %v4866_v1 }
 0xdaa   : > { %v1521_v57 = vmul.f32 0.3275911, %v1520_v55  ;;  %v1534_v59 = vsub.f32 0.0, %v1520_v55 }
 0xdac   : > { %v1522_v58 = vadd.f32 1.0, %v1521_v57  ;;  %v1535_v61 = vmul.f32 %v1534_v59, %v1520_v55 }
 0xdae   : > { %4691 = vrcp.f32 %v1522_v58  ;;  %v1536_v2 = vmul.f32 1.442695, %v1535_v61 }
 0xdb0   : > { %4693 = vpow2.f32 %v1536_v2 }
 0xdbb   : > { %v4692_v62 = vpop.eup %4691 }
 0xdbc   : > { %v1525_v63 = vmul.f32 1.0614054, %v4692_v62 }
 0xdbd   : > { %v4694_v12 = vpop.eup %4693 }
 0xdbe   : > { %v1526_v4 = vadd.f32 -1.4531521, %v1525_v63 }
 0xdc0   : > { %v1527_v5 = vmul.f32 %v4692_v62, %v1526_v4  ;;  %v3869_v4 = vld [vmem:[%s5033_s22 + $0x2] ss:$0 sm:$0xff] }
 0xdc2   : > { %v1528_v6 = vadd.f32 1.4214138, %v1527_v5 }
 0xdc4   : > { %v1529_v7 = vmul.f32 %v4692_v62, %v1528_v6 }
 0xdc6   : > { %v1530_v8 = vadd.f32 -0.28449672, %v1529_v7 }
 0xdc8   : > { %v1531_v9 = vmul.f32 %v4692_v62, %v1530_v8 }
 0xdca   : > { %v1532_v10 = vadd.f32 0.2548296, %v1531_v9 }
 0xdcc   : > { %v1533_v11 = vmul.f32 %v4692_v62, %v1532_v10 }
 0xdce   : > { %v1538_v15 = vmul.f32 %v4694_v12, %v1533_v11 }
 0xdd0   : > { %v1539_v16 = vsub.f32 1.0, %v1538_v15 }
 0xdd2   : > { %v1540_v19 = vmul.f32 %v1539_v16, %v1519_v17 }
 0xdd4   : > { %v1541_v21 = vadd.f32 1.0, %v1540_v19 }
 0xdd6   : > { %v1542_v22 = vmul.f32 %v1541_v21, %v1516_v0 }
 0xdd8   : > { %v1543_v23 = vpack.c.bf16 %v1542_v22, %v1542_v22 }
 0xdda   : > { %4299 = vmatmul.mubr.bf16.vlgmr.msra.gmra.mxu0 %v1543_v23  ;;  %v3871_v23 = vld [vmem:[%s5059_s29 + $0x2] ss:$0 sm:$0xff] }
 0xddb   : > { %4338 = vmatprep.mubr.msk.bf16.mxu0 %vm4865_vm5, %v4864_v60 }
 0xe9a   : > { %v1643_v13 = vpop.f32.mrf.mxu0 }
 0xe9b   : > { %v1649_v25 = vadd.f32 %v1643_v13, %v5194_v27 }
 0xe9c   : > { %v4300_v26 = vpop.f32.mrf.mxu0 }
 0xe9d   : > { %v5228_v28 = vadd.f32 %v3854_v24, %v1649_v25  ;;  %v4577_v25 = vld [vmem:[%s5074_s21 + $0x58] sm:$0xff]   ;;  %v4578_v26 = vld [vmem:[%s5074_s21 + $0x50] sm:$0xff]  }
 0xe9e   : > { %v1646_v29 = vpop.f32.mrf.mxu0 }
 0xe9f   : > { %v1656_v30 = vmul.f32 %v5228_v28, %v5228_v28  ;;  %v1655_v38 = vmul.f32 %v3855_v37, %v5228_v28  ;;  %v4579_v29 = vld [vmem:[%s5074_s21 + $0x48] sm:$0xff]  }
 0xea0   : > { %v4301_v31 = vpop.f32.mrf.mxu0 }
 0xea1   : > { %v1657_v32 = vsel %vm747_vm0, %v1656_v30, 0.0  ;;  %v4580_v30 = vld [vmem:[%s5074_s21 + $0x40] sm:$0xff]  }
 0xea2   : > { %1658 = vadd.xlane.f32.xlu0 %v1657_v32 }
 0xf2b   : > { %v1659_v27 = vpop.xlane.xlu0 %1658 }
 0xf2c   : > { %v1660_v36 = vadd.f32 1e-06, %v1659_v27 }
 0xf2e   : > { %4695 = vrsqrt.f32 %v1660_v36 }
 0xf3b   : > { %v4696_v39 = vpop.eup %4695 }
 0xf3c   : > { %v1662_v40 = vmul.f32 %v4696_v39, %v1655_v38 }
 0xf3e   : > { %v1663_v41 = vpack.c.bf16 %v1662_v40, %v1662_v40 }
 0xf40   : > { %3865 = vmatmul.mubr.msk.bf16.vlgmr.msra.gmra.mxu1 %vm791_vm1, %v1663_v41 }
 0xf41   : > { %4310 = vmatprep.mubr.msk.bf16.mxu1 %vm4865_vm5, %v4864_v60  ;;  %4303 = vmatpush3.bf16.msra.mxu1 %v4577_v25 }
 0xf42   : > { %4304 = vmatprep.subr.bf16.mxu1 %v4864_v60 }
 0xf45   : > { %4305 = vmatpush3.bf16.msra.mxu1 %v4578_v26 }
 0xf46   : > { %4306 = vmatprep.subr.bf16.mxu1 %v4864_v60 }
 0xf49   : > { %4307 = vmatpush3.bf16.msra.mxu1 %v4579_v29 }
 0xf4a   : > { %4308 = vmatprep.subr.bf16.mxu1 %v4864_v60 }
 0xf4d   : > { %4309 = vmatpush3.bf16.msra.mxu1 %v4580_v30 }
 0xf4e   : > { %4314 = vmatprep.subr.bf16.mxu1 %v4864_v60 }
0x1000   : > { %v1739_v45 = vpop.f32.mrf.mxu1 }
0x1001   : > { %v1740_v46 = vadd.f32 %v1739_v45, %v1695_v43  ;;  %v4581_v45 = vld [vmem:[%s5098_s1 + $0x28] sm:$0xff]  }
0x1002   : > { %v1741_v47 = vpop.f32.mrf.mxu1 }
0x1003   : > { %v3866_v48 = vmul.f32 -1.442695, %v1740_v46  ;;  %v1742_v49 = vadd.f32 %v1741_v47, %v1699_v44 }
0x1004   : > { %v1743_v50 = vpop.f32.mrf.mxu1 }
0x1005   : > { %4697 = vpow2.f32 %v3866_v48  ;;  %v3867_v51 = vmul.f32 -1.442695, %v1742_v49  ;;  %v1761_v5 = vmul.f32 1.442695, %v1742_v49  ;;  %vm1760_vm10 = vcmp.gt.f32.partialorder %v1742_v49, 20.0 }
0x1006   : > { %v1744_v52 = vpop.f32.mrf.mxu1  ;;  %v3885_v48 = vld [vmem:[%s5107_s3 + $0x2] sm:$0x1] }
0x1007   : > { %4699 = vpow2.f32 %v3867_v51 }
0x1012   : > { %v4698_v53 = vpop.eup %4697 }
0x1013   : > { %v1752_v55 = vadd.f32 1.0, %v4698_v53  ;;  %v4583_v53 = vld [vmem:[%s5117_s4 + $0xb8] sm:$0xff]  }
0x1014   : > { %v4700_v54 = vpop.eup %4699  ;;  %4323 = vmatpush3.bf16.msra.mxu0 %v4583_v53 }
0x1015   : > { %v1753_v56 = vadd.f32 1.0, %v4700_v54  ;;  %4324 = vmatprep.subr.bf16.mxu0 %v4864_v60  ;;  %v4584_v54 = vld [vmem:[%s5117_s4 + $0xb0] sm:$0xff]  }
0x1017   : > { %4701 = vrcp.f32 %v1753_v56  ;;  %v4586_v56 = vld [vmem:[%s5117_s4 + $0xa0] sm:$0xff]  }
0x1018   : > { %4703 = vrcp.f32 %v1752_v55  ;;  %4325 = vmatpush3.bf16.msra.mxu0 %v4584_v54  ;;  %v4585_v55 = vld [vmem:[%s5117_s4 + $0xa8] sm:$0xff]   ;;  %v3933_v54 = vld [vmem:[%s5033_s22 + $0x3] ss:$0 sm:$0xff] }
0x1019   : > { %4705 = vpow2.f32 %v1761_v5  ;;  %4326 = vmatprep.subr.bf16.mxu0 %v4864_v60 }
0x101c   : > { %4327 = vmatpush3.bf16.msra.mxu0 %v4585_v55  ;;  %v3924_v55 = vld [vmem:[%s5041_s20 + $0x6] sm:$0x3] }
0x101d   : > { %4328 = vmatprep.subr.bf16.mxu0 %v4864_v60 }
0x1020   : > { %4329 = vmatpush3.bf16.msra.mxu0 %v4586_v56  ;;  %v2152_v56 = vrot.slane %v3924_v55, %v5043_v18 }
0x1021   : > { %4330 = vmatprep.subr.bf16.mxu0 %v4864_v60 }
0x1024   : > { %v4702_v57 = vpop.eup %4701 }
0x1025   : > { %v1759_v58 = vmul.f32 %v4702_v57, %v1742_v49  ;;  %v4704_v59 = vpop.eup %4703  ;;  %v4587_v57 = vld [vmem:[%s5117_s4 + $0x98] sm:$0xff]  }
0x1026   : > { %v1758_v61 = vmul.f32 %v4704_v59, %v1740_v46  ;;  %v4706_v6 = vpop.eup %4705  ;;  %v4582_v46 = vld [vmem:[%s5098_s1 + $0x20] sm:$0xff]   ;;  %4331 = vmatpush3.bf16.msra.mxu0 %v4587_v57  ;;  %v4589_v59 = vld [vmem:[%s5117_s4 + $0x88] sm:$0xff]   ;;  %v2156_v57 = vrot.slane %v3924_v55, %v5046_v20 }
0x1027   : > { %1768 = vrot.lane.b32.xlu0 %v1759_v58, %s5626_s5  ;;  %v1763_v7 = vadd.f32 1.0, %v4706_v6  ;;  %4332 = vmatprep.subr.bf16.mxu0 %v4864_v60 }
0x1029   : > { %4707 = vlog2.f32 %v1763_v7 }
0x102b   : > { %1788 = vrot.lane.b32.xlu0 %v1758_v61, %s5627_s6 }
0x102f   : > { %1792 = vrot.lane.b32.xlu0 %v1758_v61, %s5625_s27  ;;  %v4590_v61 = vld [vmem:[%s5117_s4 + $0x80] sm:$0xff]  }
0x1036   : > { %v4708_v8 = vpop.eup %4707 }
0x1037   : > { %v1765_v9 = vmul.f32 0.6931472, %v4708_v8 }
0x1039   : > { %v1766_v12 = vsel %vm1760_vm10, %v1742_v49, %v1765_v9 }
0x1099   : > { %v1769_v62 = vpop.permute.xlu0 %1768 }
0x109a   : > { %v1771_v63 = vmul.f32 %v1769_v62, %v1759_v58  ;;  %v4588_v58 = vld [vmem:[%s5117_s4 + $0x90] sm:$0xff]   ;;  %v3890_v62 = vld [vmem:[%s5139_s16 + $0x2] sm:$0x1] }
0x109b   : > { %4333 = vmatpush3.bf16.msra.mxu0 %v4588_v58 }
0x109c   : > { %v1772_v2 = vsel %vm862_vm2, %v1771_v63, 0.0  ;;  %4334 = vmatprep.subr.bf16.mxu0 %v4864_v60 }
0x109d   : > { %1773 = vadd.xlane.f32.xlu1 %v1772_v2  ;;  %v1789_v11 = vpop.permute.xlu0 %1788 }
0x109f   : > { %4335 = vmatpush3.bf16.msra.mxu0 %v4589_v59 }
0x10a0   : > { %4336 = vmatprep.subr.bf16.mxu0 %v4864_v60 }
0x10a1   : > { %v1793_v0 = vpop.permute.xlu0 %1792 }
0x10a3   : > { %4337 = vmatpush3.bf16.msra.mxu0 %v4590_v61 }
0x10a4   : > { %4362 = vmatprep.subr.bf16.mxu0 %v4864_v60 }
0x10ae   : > { %1783 = vrot.lane.b32.xlu1 %v3869_v4, %s5625_s27 }
0x1126   : > { %v1774_v10 = vpop.xlane.xlu1 %1773 }
0x1127   : > { %v1775_v15 = vmul.f32 %v1774_v10, %v1766_v12 }
0x112a   : > { %v1784_v16 = vpop.permute.xlu1 %1783 }
0x112b   : > { %v1786_v17 = vadd.f32 %v1784_v16, %v1775_v15 }
0x112d   : > { %v1791_v19 = vmul.f32 %v1789_v11, %v1786_v17 }
0x112f   : > { %v1795_v21 = vmul.f32 %v1793_v0, %v1791_v19 }
0x1131   : > { %v1796_v22 = vmul.f32 %v1795_v21, %v1795_v21 }
0x1133   : > { %1798 = vrot.lane.b32.xlu0 %v1796_v22, %s5627_s6 }
0x1137   : > { %1815 = vrot.lane.b32.xlu0 %v3871_v23, %s5625_s27 }
0x11a5   : > { %v1799_v13 = vpop.permute.xlu0 %1798 }
0x11a6   : > { %v1801_v24 = vsel %vm891_vm4, %v1799_v13, 0.0 }
0x11a7   : > { %1802 = vadd.xlane.f32.xlu1 %v1801_v24 }
0x11a9   : > { %v1816_v35 = vpop.permute.xlu0 %1815 }
0x1230   : > { %v1803_v31 = vpop.xlane.xlu1 %1802 }
0x1231   : > { %v1804_v32 = vmul.f32 0.015625, %v1803_v31 }
0x1233   : > { %v1805_v33 = vadd.f32 1e-05, %v1804_v32 }
0x1235   : > { %4709 = vrsqrt.f32 %v1805_v33 }
0x1242   : > { %v4710_v34 = vpop.eup %4709 }
0x1243   : > { %v1807_v14 = vmul.f32 %v4710_v34, %v1795_v21 }
0x1245   : > { %v1818_v27 = vmul.f32 %v1816_v35, %v1807_v14 }
0x1247   : > { %v1819_v36 = vpack.c.bf16 %v1818_v27, %v1818_v27 }
0x1249   : > { %1830 = vrot.lane.b32.xlu0 %v1819_v36, %s5627_s6  ;;  %v3918_v36 = vld [vmem:[%s5149_s0 + $0x2] sm:$0x1] }
0x12bb   : > { %v1831_v37 = vpop.permute.xlu0 %1830 }
0x12bc   : > { %4311 = vmatmul.mubr.msk.bf16.vlgmr.msra.gmra.mxu1 %vm946_vm6, %v1831_v37 }
0x12bd   : > { %4318 = vmatprep.mubr.msk.bf16.mxu1 %vm4865_vm5, %v4864_v60  ;;  %4315 = vmatpush3.bf16.msra.mxu1 %v4581_v45  ;;  %v4591_v45 = vld [vmem:[%s5014_s19 + $0x70] ss:$8 sps:$4 sm:$0xff]  }
0x12be   : > { %4316 = vmatprep.subr.bf16.mxu1 %v4864_v60 }
0x12c1   : > { %4317 = vmatpush3.bf16.msra.mxu1 %v4582_v46  ;;  %v4593_v46 = vld [vmem:[%s5014_s19 + $0x74] ss:$8 sps:$4 sm:$0xff]  }
0x12c2   : > { %2174 = vmatprep.subr.bf16.mxu1 %v4593_v46 }
0x137c   : > { %v1893_v38 = vpop.f32.mrf.mxu1 }
0x137d   : > { %v5269_v39 = vadd.f32 %v1893_v38, %v5228_v28 }
0x137e   : > { %v4312_v40 = vpop.f32.mrf.mxu1 }
0x137f   : > { %v1903_v41 = vmul.f32 %v5269_v39, %v5269_v39  ;;  %v1902_v49 = vmul.f32 %v3885_v48, %v5269_v39 }
0x1380   : > { %v1896_v42 = vpop.f32.mrf.mxu1 }
0x1381   : > { %v1904_v43 = vsel %vm747_vm0, %v1903_v41, 0.0 }
0x1382   : > { %1905 = vadd.xlane.f32.xlu0 %v1904_v43  ;;  %v4313_v44 = vpop.f32.mrf.mxu1 }
0x140b   : > { %v1906_v47 = vpop.xlane.xlu0 %1905 }
0x140c   : > { %v1907_v28 = vadd.f32 1e-06, %v1906_v47  ;;  %v4596_v47 = vld [vmem:[%s5014_s19 + $0x64] ss:$8 sps:$4 sm:$0xff]  }
0x140e   : > { %4711 = vrsqrt.f32 %v1907_v28  ;;  %v4594_v28 = vld [vmem:[%s5014_s19 + $0x60] ss:$8 sps:$4 sm:$0xff]  }
0x141b   : > { %v4712_v50 = vpop.eup %4711 }
0x141c   : > { %v1909_v51 = vmul.f32 %v4712_v50, %v1902_v49  ;;  %v3919_v49 = vld [vmem:[%s5024_s30 + $0x3] sm:$0x1] }
0x141e   : > { %v1910_v52 = vpack.c.bf16 %v1909_v51, %v1909_v51 }
0x1420   : > { %4319 = vmatmul.mubr.msk.bf16.vlgmr.msra.gmra.mxu1 %vm791_vm1, %v1910_v52 }
0x1421   : > { %2194 = vmatprep.mubr.bf16.mxu1 %v4860_v3  ;;  %2175 = vmatpush1.bf16.msra.mxu1 %v4591_v45 }
0x1422   : > { %2176 = vmatprep.subr.bf16.mxu1 %v4596_v47 }
0x1425   : > { %2177 = vmatpush1.bf16.msra.mxu1 %v4594_v28 }
0x1426   : > { %4342 = vmatprep.subr.bf16.mxu1 %v4864_v60 }
0x14e0   : > { %v1967_v63 = vpop.f32.mrf.mxu1 }
0x14e1   : > { %v1968_v2 = vadd.f32 %v3890_v62, %v1967_v63 }
0x14e2   : > { %v4320_v4 = vpop.f32.mrf.mxu1 }
0x14e3   : > { %v1974_v5 = vmul.f32 0.70710677, %v1968_v2  ;;  %v1973_v33 = vmul.f32 0.5, %v1968_v2 }
0x14e4   : > { %v1970_v6 = vpop.f32.mrf.mxu1 }
0x14e5   : > { %v1977_v7 = vand.u32 2147483647, %v1974_v5  ;;  %vm1975_vm11 = vcmp.ge.f32.partialorder %v1974_v5, 0.0 }
0x14e6   : > { %v4321_v8 = vpop.f32.mrf.mxu1  ;;  %v1976_v31 = vsel %vm1975_vm11, 1.0, %v4866_v1 }
0x14e7   : > { %v1978_v9 = vmul.f32 0.3275911, %v1977_v7  ;;  %v1991_v11 = vsub.f32 0.0, %v1977_v7 }
0x14e9   : > { %v1979_v10 = vadd.f32 1.0, %v1978_v9  ;;  %v1992_v12 = vmul.f32 %v1991_v11, %v1977_v7 }
0x14eb   : > { %4713 = vrcp.f32 %v1979_v10  ;;  %v1993_v17 = vmul.f32 1.442695, %v1992_v12 }
0x14ed   : > { %4715 = vpow2.f32 %v1993_v17 }
0x14f8   : > { %v4714_v15 = vpop.eup %4713 }
0x14f9   : > { %v1982_v16 = vmul.f32 1.0614054, %v4714_v15 }
0x14fa   : > { %v4716_v26 = vpop.eup %4715 }
0x14fb   : > { %v1983_v19 = vadd.f32 -1.4531521, %v1982_v16 }
0x14fd   : > { %v1984_v0 = vmul.f32 %v4714_v15, %v1983_v19 }
0x14ff   : > { %v1985_v21 = vadd.f32 1.4214138, %v1984_v0 }
0x1501   : > { %v1986_v22 = vmul.f32 %v4714_v15, %v1985_v21 }
0x1503   : > { %v1987_v23 = vadd.f32 -0.28449672, %v1986_v22 }
0x1505   : > { %v1988_v13 = vmul.f32 %v4714_v15, %v1987_v23 }
0x1507   : > { %v1989_v24 = vadd.f32 0.2548296, %v1988_v13 }
0x1509   : > { %v1990_v25 = vmul.f32 %v4714_v15, %v1989_v24 }
0x150b   : > { %v1995_v29 = vmul.f32 %v4716_v26, %v1990_v25 }
0x150d   : > { %v1996_v30 = vsub.f32 1.0, %v1995_v29 }
0x150f   : > { %v1997_v32 = vmul.f32 %v1996_v30, %v1976_v31 }
0x1511   : > { %v1998_v34 = vadd.f32 1.0, %v1997_v32 }
0x1513   : > { %v1999_v35 = vmul.f32 %v1998_v34, %v1973_v33 }
0x1515   : > { %v2000_v14 = vpack.c.bf16 %v1999_v35, %v1999_v35 }
0x1517   : > { %4339 = vmatmul.mubr.bf16.vlgmr.msra.gmra.mxu0 %v2000_v14  ;;  %v3935_v14 = vld [vmem:[%s5059_s29 + $0x3] ss:$0 sm:$0xff] }
0x1518   : > { %4378 = vmatprep.mubr.msk.bf16.mxu0 %vm4865_vm5, %v4864_v60 }
0x15d7   : > { %v2100_v27 = vpop.f32.mrf.mxu0 }
0x15d8   : > { %v2106_v37 = vadd.f32 %v2100_v27, %v5269_v39 }
0x15d9   : > { %v4340_v38 = vpop.f32.mrf.mxu0 }
0x15da   : > { %v5303_v40 = vadd.f32 %v3918_v36, %v2106_v37  ;;  %v4597_v37 = vld [vmem:[%s5074_s21 + $0x78] sm:$0xff]   ;;  %v4598_v38 = vld [vmem:[%s5074_s21 + $0x70] sm:$0xff]  }
0x15db   : > { %v2103_v41 = vpop.f32.mrf.mxu0 }
0x15dc   : > { %v2113_v42 = vmul.f32 %v5303_v40, %v5303_v40  ;;  %v2112_v50 = vmul.f32 %v3919_v49, %v5303_v40  ;;  %v4599_v41 = vld [vmem:[%s5074_s21 + $0x68] sm:$0xff]  }
0x15dd   : > { %v4341_v43 = vpop.f32.mrf.mxu0 }
0x15de   : > { %v2114_v44 = vsel %vm747_vm0, %v2113_v42, 0.0  ;;  %v4600_v42 = vld [vmem:[%s5074_s21 + $0x60] sm:$0xff]  }
0x15df   : > { %2115 = vadd.xlane.f32.xlu1 %v2114_v44 }
0x15f0   : > { %2240 = vrot.lane.b32.xlu1 %v3933_v54, %s5625_s27 }
0x1668   : > { %v2116_v39 = vpop.xlane.xlu1 %2115 }
0x1669   : > { %v2117_v48 = vadd.f32 1e-06, %v2116_v39 }
0x166b   : > { %4717 = vrsqrt.f32 %v2117_v48 }
0x166c   : > { %v2241_v13 = vpop.permute.xlu1 %2240 }
0x1678   : > { %v4718_v51 = vpop.eup %4717 }
0x1679   : > { %v2119_v52 = vmul.f32 %v4718_v51, %v2112_v50 }
0x167b   : > { %v2120_v53 = vpack.c.bf16 %v2119_v52, %v2119_v52 }
0x167d   : > { %3929 = vmatmul.mubr.msk.bf16.vlgmr.msra.gmra.mxu1 %vm791_vm1, %v2120_v53 }
0x167e   : > { %4350 = vmatprep.mubr.msk.bf16.mxu1 %vm4865_vm5, %v4864_v60  ;;  %4343 = vmatpush3.bf16.msra.mxu1 %v4597_v37 }
0x167f   : > { %4344 = vmatprep.subr.bf16.mxu1 %v4864_v60 }
0x1682   : > { %4345 = vmatpush3.bf16.msra.mxu1 %v4598_v38 }
0x1683   : > { %4346 = vmatprep.subr.bf16.mxu1 %v4864_v60 }
0x1686   : > { %4347 = vmatpush3.bf16.msra.mxu1 %v4599_v41 }
0x1687   : > { %4348 = vmatprep.subr.bf16.mxu1 %v4864_v60 }
0x168a   : > { %4349 = vmatpush3.bf16.msra.mxu1 %v4600_v42 }
0x168b   : > { %4354 = vmatprep.subr.bf16.mxu1 %v4864_v60 }
0x173d   : > { %v2196_v58 = vpop.f32.mrf.mxu1 }
0x173e   : > { %v2197_v59 = vadd.f32 %v2196_v58, %v2152_v56  ;;  %v4602_v58 = vld [vmem:[%s5098_s1 + $0x30] sm:$0xff]  }
0x173f   : > { %v2198_v61 = vpop.f32.mrf.mxu1 }
0x1740   : > { %v3930_v62 = vmul.f32 -1.442695, %v2197_v59  ;;  %v2199_v63 = vadd.f32 %v2198_v61, %v2156_v57  ;;  %v4601_v57 = vld [vmem:[%s5098_s1 + $0x38] sm:$0xff]   ;;  %v3949_v61 = vld [vmem:[%s5107_s3 + $0x3] sm:$0x1] }
0x1741   : > { %v2200_v2 = vpop.f32.mrf.mxu1 }
0x1742   : > { %4719 = vpow2.f32 %v3930_v62  ;;  %v3931_v4 = vmul.f32 -1.442695, %v2199_v63  ;;  %v2218_v0 = vmul.f32 1.442695, %v2199_v63  ;;  %vm2217_vm12 = vcmp.gt.f32.partialorder %v2199_v63, 20.0 }
0x1743   : > { %v2201_v5 = vpop.f32.mrf.mxu1 }
0x1744   : > { %4721 = vpow2.f32 %v3931_v4  ;;  %v4603_v5 = vld [vmem:[%s5117_s4 + $0xf8] sm:$0xff]  }
0x1745   : > { %4363 = vmatpush3.bf16.msra.mxu0 %v4603_v5 }
0x1746   : > { %4364 = vmatprep.subr.bf16.mxu0 %v4864_v60 }
0x174f   : > { %v4720_v6 = vpop.eup %4719 }
0x1750   : > { %v2209_v8 = vadd.f32 1.0, %v4720_v6  ;;  %v4604_v6 = vld [vmem:[%s5117_s4 + $0xf0] sm:$0xff]  }
0x1751   : > { %v4722_v7 = vpop.eup %4721  ;;  %4365 = vmatpush3.bf16.msra.mxu0 %v4604_v6  ;;  %v3988_v6 = vld [vmem:[%s5041_s20 + $0x8] sm:$0x3] }
0x1752   : > { %v2210_v9 = vadd.f32 1.0, %v4722_v7  ;;  %4366 = vmatprep.subr.bf16.mxu0 %v4864_v60  ;;  %v4605_v7 = vld [vmem:[%s5117_s4 + $0xe8] sm:$0xff]  }
0x1754   : > { %4723 = vrcp.f32 %v2210_v9  ;;  %v4607_v9 = vld [vmem:[%s5117_s4 + $0xd8] sm:$0xff]  }
0x1755   : > { %4725 = vrcp.f32 %v2209_v8  ;;  %4367 = vmatpush3.bf16.msra.mxu0 %v4605_v7  ;;  %v4606_v8 = vld [vmem:[%s5117_s4 + $0xe0] sm:$0xff]   ;;  %v2609_v7 = vrot.slane %v3988_v6, %v5043_v18 }
0x1756   : > { %4727 = vpow2.f32 %v2218_v0  ;;  %4368 = vmatprep.subr.bf16.mxu0 %v4864_v60 }
0x1759   : > { %4369 = vmatpush3.bf16.msra.mxu0 %v4606_v8  ;;  %v2613_v8 = vrot.slane %v3988_v6, %v5046_v20 }
0x175a   : > { %4370 = vmatprep.subr.bf16.mxu0 %v4864_v60 }
0x175d   : > { %4371 = vmatpush3.bf16.msra.mxu0 %v4607_v9 }
0x175e   : > { %4372 = vmatprep.subr.bf16.mxu0 %v4864_v60 }
0x1761   : > { %v4724_v10 = vpop.eup %4723 }
0x1762   : > { %v2216_v11 = vmul.f32 %v4724_v10, %v2199_v63  ;;  %v4726_v12 = vpop.eup %4725  ;;  %v4608_v10 = vld [vmem:[%s5117_s4 + $0xd0] sm:$0xff]  }
0x1763   : > { %v2215_v15 = vmul.f32 %v4726_v12, %v2197_v59  ;;  %v4728_v21 = vpop.eup %4727  ;;  %4373 = vmatpush3.bf16.msra.mxu0 %v4608_v10  ;;  %v4610_v12 = vld [vmem:[%s5117_s4 + $0xc0] sm:$0xff]  }
0x1764   : > { %2225 = vrot.lane.b32.xlu0 %v2216_v11, %s5626_s5  ;;  %v2220_v22 = vadd.f32 1.0, %v4728_v21  ;;  %4374 = vmatprep.subr.bf16.mxu0 %v4864_v60 }
0x1766   : > { %4729 = vlog2.f32 %v2220_v22 }
0x1768   : > { %2249 = vrot.lane.b32.xlu0 %v2215_v15, %s5625_s27 }
0x1773   : > { %v4730_v23 = vpop.eup %4729 }
0x1774   : > { %v2222_v24 = vmul.f32 0.6931472, %v4730_v23 }
0x1776   : > { %v2223_v25 = vsel %vm2217_vm12, %v2199_v63, %v2222_v24 }
0x17d6   : > { %v2226_v16 = vpop.permute.xlu0 %2225 }
0x17d7   : > { %v2228_v17 = vmul.f32 %v2226_v16, %v2216_v11  ;;  %v4609_v11 = vld [vmem:[%s5117_s4 + $0xc8] sm:$0xff]  }
0x17d8   : > { %4375 = vmatpush3.bf16.msra.mxu0 %v4609_v11 }
0x17d9   : > { %v2229_v19 = vsel %vm862_vm2, %v2228_v17, 0.0  ;;  %4376 = vmatprep.subr.bf16.mxu0 %v4864_v60 }
0x17da   : > { %2230 = vadd.xlane.f32.xlu1 %v2229_v19  ;;  %v2250_v33 = vpop.permute.xlu0 %2249 }
0x17dc   : > { %4377 = vmatpush3.bf16.msra.mxu0 %v4610_v12 }
0x17dd   : > { %4402 = vmatprep.subr.bf16.mxu0 %v4864_v60 }
0x17eb   : > { %2245 = vrot.lane.b32.xlu1 %v2215_v15, %s5627_s6  ;;  %v3954_v15 = vld [vmem:[%s5139_s16 + $0x3] sm:$0x1] }
0x1863   : > { %v2231_v26 = vpop.xlane.xlu1 %2230 }
0x1864   : > { %v2232_v29 = vmul.f32 %v2231_v26, %v2223_v25 }
0x1866   : > { %v2243_v30 = vadd.f32 %v2241_v13, %v2232_v29 }
0x1867   : > { %v2246_v31 = vpop.permute.xlu1 %2245 }
0x1868   : > { %v2248_v32 = vmul.f32 %v2246_v31, %v2243_v30 }
0x186a   : > { %v2252_v34 = vmul.f32 %v2250_v33, %v2248_v32 }
0x186c   : > { %v2253_v35 = vmul.f32 %v2252_v34, %v2252_v34 }
0x186e   : > { %2255 = vrot.lane.b32.xlu1 %v2253_v35, %s5627_s6 }
0x1872   : > { %2272 = vrot.lane.b32.xlu1 %v3935_v14, %s5625_s27 }
0x18e0   : > { %v2256_v27 = vpop.permute.xlu1 %2255 }
0x18e1   : > { %v2258_v36 = vsel %vm891_vm4, %v2256_v27, 0.0 }
0x18e2   : > { %2259 = vadd.xlane.f32.xlu0 %v2258_v36 }
0x18e4   : > { %v2273_v47 = vpop.permute.xlu1 %2272 }
0x196b   : > { %v2260_v43 = vpop.xlane.xlu0 %2259 }
0x196c   : > { %v2261_v44 = vmul.f32 0.015625, %v2260_v43 }
0x196e   : > { %v2262_v45 = vadd.f32 1e-05, %v2261_v44 }
0x1970   : > { %4731 = vrsqrt.f32 %v2262_v45 }
0x197d   : > { %v4732_v46 = vpop.eup %4731 }
0x197e   : > { %v2264_v28 = vmul.f32 %v4732_v46, %v2252_v34 }
0x1980   : > { %v2275_v39 = vmul.f32 %v2273_v47, %v2264_v28 }
0x1982   : > { %v2276_v48 = vpack.c.bf16 %v2275_v39, %v2275_v39 }
0x1984   : > { %2287 = vrot.lane.b32.xlu1 %v2276_v48, %s5627_s6  ;;  %v3982_v48 = vld [vmem:[%s5149_s0 + $0x3] sm:$0x1] }
0x19f6   : > { %v2288_v49 = vpop.permute.xlu1 %2287 }
0x19f7   : > { %4351 = vmatmul.mubr.msk.bf16.vlgmr.msra.gmra.mxu1 %vm946_vm6, %v2288_v49 }
0x19f8   : > { %4358 = vmatprep.mubr.msk.bf16.mxu1 %vm4865_vm5, %v4864_v60  ;;  %4355 = vmatpush3.bf16.msra.mxu1 %v4601_v57  ;;  %v4611_v57 = vld [vmem:[%s5014_s19 + $0x90] ss:$8 sps:$4 sm:$0xff]  }
0x19f9   : > { %4356 = vmatprep.subr.bf16.mxu1 %v4864_v60 }
0x19fc   : > { %4357 = vmatpush3.bf16.msra.mxu1 %v4602_v58  ;;  %v4613_v58 = vld [vmem:[%s5014_s19 + $0x94] ss:$8 sps:$4 sm:$0xff]  }
0x19fd   : > { %2631 = vmatprep.subr.bf16.mxu1 %v4613_v58 }
0x1ab7   : > { %v2350_v50 = vpop.f32.mrf.mxu1 }
0x1ab8   : > { %v5344_v51 = vadd.f32 %v2350_v50, %v5303_v40 }
0x1ab9   : > { %v4352_v52 = vpop.f32.mrf.mxu1 }
0x1aba   : > { %v2360_v53 = vmul.f32 %v5344_v51, %v5344_v51  ;;  %v2359_v62 = vmul.f32 %v3949_v61, %v5344_v51 }
0x1abb   : > { %v2353_v54 = vpop.f32.mrf.mxu1 }
0x1abc   : > { %v2361_v55 = vsel %vm747_vm0, %v2360_v53, 0.0 }
0x1abd   : > { %2362 = vadd.xlane.f32.xlu1 %v2361_v55  ;;  %v4353_v56 = vpop.f32.mrf.mxu1 }
0x1b46   : > { %v2363_v59 = vpop.xlane.xlu1 %2362 }
0x1b47   : > { %v2364_v40 = vadd.f32 1e-06, %v2363_v59  ;;  %v4616_v59 = vld [vmem:[%s5014_s19 + $0x84] ss:$8 sps:$4 sm:$0xff]  }
0x1b49   : > { %4733 = vrsqrt.f32 %v2364_v40  ;;  %v4614_v40 = vld [vmem:[%s5014_s19 + $0x80] ss:$8 sps:$4 sm:$0xff]  }
0x1b56   : > { %v4734_v63 = vpop.eup %4733 }
0x1b57   : > { %v2366_v2 = vmul.f32 %v4734_v63, %v2359_v62  ;;  %v3983_v62 = vld [vmem:[%s5024_s30 + $0x4] sm:$0x1] }
0x1b59   : > { %v2367_v4 = vpack.c.bf16 %v2366_v2, %v2366_v2 }
0x1b5b   : > { %4359 = vmatmul.mubr.msk.bf16.vlgmr.msra.gmra.mxu1 %vm791_vm1, %v2367_v4 }
0x1b5c   : > { %2651 = vmatprep.mubr.bf16.mxu1 %v4860_v3  ;;  %2632 = vmatpush1.bf16.msra.mxu1 %v4611_v57 }
0x1b5d   : > { %2633 = vmatprep.subr.bf16.mxu1 %v4616_v59 }
0x1b60   : > { %2634 = vmatpush1.bf16.msra.mxu1 %v4614_v40 }
0x1b61   : > { %4382 = vmatprep.subr.bf16.mxu1 %v4864_v60 }
0x1c1b   : > { %v2424_v16 = vpop.f32.mrf.mxu1 }
0x1c1c   : > { %v2425_v17 = vadd.f32 %v3954_v15, %v2424_v16 }
0x1c1d   : > { %v4360_v19 = vpop.f32.mrf.mxu1 }
0x1c1e   : > { %v2431_v0 = vmul.f32 0.70710677, %v2425_v17  ;;  %v2430_v45 = vmul.f32 0.5, %v2425_v17 }
0x1c1f   : > { %v2427_v21 = vpop.f32.mrf.mxu1 }
0x1c20   : > { %v2434_v22 = vand.u32 2147483647, %v2431_v0  ;;  %vm2432_vm13 = vcmp.ge.f32.partialorder %v2431_v0, 0.0 }
0x1c21   : > { %v4361_v23 = vpop.f32.mrf.mxu1  ;;  %v2433_v43 = vsel %vm2432_vm13, 1.0, %v4866_v1 }
0x1c22   : > { %v2435_v13 = vmul.f32 0.3275911, %v2434_v22  ;;  %v2448_v25 = vsub.f32 0.0, %v2434_v22 }
0x1c24   : > { %v2436_v24 = vadd.f32 1.0, %v2435_v13  ;;  %v2449_v26 = vmul.f32 %v2448_v25, %v2434_v22 }
0x1c26   : > { %4735 = vrcp.f32 %v2436_v24  ;;  %v2450_v31 = vmul.f32 1.442695, %v2449_v26 }
0x1c28   : > { %4737 = vpow2.f32 %v2450_v31 }
0x1c33   : > { %v4736_v29 = vpop.eup %4735 }
0x1c34   : > { %v2439_v30 = vmul.f32 1.0614054, %v4736_v29 }
0x1c35   : > { %v4738_v38 = vpop.eup %4737 }
0x1c36   : > { %v2440_v32 = vadd.f32 -1.4531521, %v2439_v30 }
0x1c38   : > { %v2441_v33 = vmul.f32 %v4736_v29, %v2440_v32  ;;  %v3997_v32 = vld [vmem:[%s5033_s22 + $0x4] ss:$0 sm:$0xff] }
0x1c3a   : > { %v2442_v34 = vadd.f32 1.4214138, %v2441_v33 }
0x1c3c   : > { %v2443_v35 = vmul.f32 %v4736_v29, %v2442_v34 }
0x1c3e   : > { %v2444_v14 = vadd.f32 -0.28449672, %v2443_v35 }
0x1c40   : > { %v2445_v27 = vmul.f32 %v4736_v29, %v2444_v14 }
0x1c42   : > { %v2446_v36 = vadd.f32 0.2548296, %v2445_v27 }
0x1c44   : > { %v2447_v37 = vmul.f32 %v4736_v29, %v2446_v36 }
0x1c46   : > { %v2452_v41 = vmul.f32 %v4738_v38, %v2447_v37 }
0x1c48   : > { %v2453_v42 = vsub.f32 1.0, %v2452_v41 }
0x1c4a   : > { %v2454_v44 = vmul.f32 %v2453_v42, %v2433_v43 }
0x1c4c   : > { %v2455_v46 = vadd.f32 1.0, %v2454_v44 }
0x1c4e   : > { %v2456_v47 = vmul.f32 %v2455_v46, %v2430_v45 }
0x1c50   : > { %v2457_v28 = vpack.c.bf16 %v2456_v47, %v2456_v47 }
0x1c52   : > { %4379 = vmatmul.mubr.bf16.vlgmr.msra.gmra.mxu0 %v2457_v28  ;;  %v3999_v28 = vld [vmem:[%s5059_s29 + $0x4] ss:$0 sm:$0xff] }
0x1c53   : > { %4418 = vmatprep.mubr.msk.bf16.mxu0 %vm4865_vm5, %v4864_v60 }
0x1d12   : > { %v2557_v39 = vpop.f32.mrf.mxu0 }
0x1d13   : > { %v2563_v49 = vadd.f32 %v2557_v39, %v5344_v51 }
0x1d14   : > { %v4380_v50 = vpop.f32.mrf.mxu0 }
0x1d15   : > { %v5378_v52 = vadd.f32 %v3982_v48, %v2563_v49  ;;  %v4617_v49 = vld [vmem:[%s5074_s21 + $0x98] sm:$0xff]   ;;  %v4618_v50 = vld [vmem:[%s5074_s21 + $0x90] sm:$0xff]  }
0x1d16   : > { %v2560_v53 = vpop.f32.mrf.mxu0 }
0x1d17   : > { %v2570_v54 = vmul.f32 %v5378_v52, %v5378_v52  ;;  %v2569_v63 = vmul.f32 %v3983_v62, %v5378_v52  ;;  %v4619_v53 = vld [vmem:[%s5074_s21 + $0x88] sm:$0xff]  }
0x1d18   : > { %v4381_v55 = vpop.f32.mrf.mxu0 }
0x1d19   : > { %v2571_v56 = vsel %vm747_vm0, %v2570_v54, 0.0  ;;  %v4620_v54 = vld [vmem:[%s5074_s21 + $0x80] sm:$0xff]  }
0x1d1a   : > { %2572 = vadd.xlane.f32.xlu0 %v2571_v56 }
0x1da3   : > { %v2573_v51 = vpop.xlane.xlu0 %2572 }
0x1da4   : > { %v2574_v61 = vadd.f32 1e-06, %v2573_v51 }
0x1da6   : > { %4739 = vrsqrt.f32 %v2574_v61 }
0x1db3   : > { %v4740_v2 = vpop.eup %4739 }
0x1db4   : > { %v2576_v4 = vmul.f32 %v4740_v2, %v2569_v63 }
0x1db6   : > { %v2577_v5 = vpack.c.bf16 %v2576_v4, %v2576_v4 }
0x1db8   : > { %3993 = vmatmul.mubr.msk.bf16.vlgmr.msra.gmra.mxu1 %vm791_vm1, %v2577_v5 }
0x1db9   : > { %4390 = vmatprep.mubr.msk.bf16.mxu1 %vm4865_vm5, %v4864_v60  ;;  %4383 = vmatpush3.bf16.msra.mxu1 %v4617_v49 }
0x1dba   : > { %4384 = vmatprep.subr.bf16.mxu1 %v4864_v60 }
0x1dbd   : > { %4385 = vmatpush3.bf16.msra.mxu1 %v4618_v50 }
0x1dbe   : > { %4386 = vmatprep.subr.bf16.mxu1 %v4864_v60 }
0x1dc1   : > { %4387 = vmatpush3.bf16.msra.mxu1 %v4619_v53 }
0x1dc2   : > { %4388 = vmatprep.subr.bf16.mxu1 %v4864_v60 }
0x1dc5   : > { %4389 = vmatpush3.bf16.msra.mxu1 %v4620_v54 }
0x1dc6   : > { %4394 = vmatprep.subr.bf16.mxu1 %v4864_v60 }
0x1e78   : > { %v2653_v9 = vpop.f32.mrf.mxu1 }
0x1e79   : > { %v2654_v10 = vadd.f32 %v2653_v9, %v2609_v7  ;;  %v4621_v9 = vld [vmem:[%s5098_s1 + $0x48] sm:$0xff]  }
0x1e7a   : > { %v2655_v11 = vpop.f32.mrf.mxu1 }
0x1e7b   : > { %v3994_v12 = vmul.f32 -1.442695, %v2654_v10  ;;  %v2656_v15 = vadd.f32 %v2655_v11, %v2613_v8 }
0x1e7c   : > { %v2657_v16 = vpop.f32.mrf.mxu1 }
0x1e7d   : > { %4741 = vpow2.f32 %v3994_v12  ;;  %v3995_v17 = vmul.f32 -1.442695, %v2656_v15  ;;  %v2675_v33 = vmul.f32 1.442695, %v2656_v15  ;;  %vm2674_vm14 = vcmp.gt.f32.partialorder %v2656_v15, 20.0 }
0x1e7e   : > { %v2658_v19 = vpop.f32.mrf.mxu1  ;;  %v4013_v12 = vld [vmem:[%s5107_s3 + $0x4] sm:$0x1] }
0x1e7f   : > { %4743 = vpow2.f32 %v3995_v17 }
0x1e8a   : > { %v4742_v0 = vpop.eup %4741 }
0x1e8b   : > { %v2666_v22 = vadd.f32 1.0, %v4742_v0  ;;  %v4623_v0 = vld [vmem:[%s5117_s4 + $0x138] sm:$0xff]  }
0x1e8c   : > { %v4744_v21 = vpop.eup %4743  ;;  %4403 = vmatpush3.bf16.msra.mxu0 %v4623_v0  ;;  %v4061_v0 = vld [vmem:[%s5033_s22 + $0x5] ss:$0 sm:$0xff] }
0x1e8d   : > { %v2667_v23 = vadd.f32 1.0, %v4744_v21  ;;  %4404 = vmatprep.subr.bf16.mxu0 %v4864_v60  ;;  %v4624_v21 = vld [vmem:[%s5117_s4 + $0x130] sm:$0xff]  }
0x1e8f   : > { %4745 = vrcp.f32 %v2667_v23  ;;  %v4626_v23 = vld [vmem:[%s5117_s4 + $0x120] sm:$0xff]  }
0x1e90   : > { %4747 = vrcp.f32 %v2666_v22  ;;  %4405 = vmatpush3.bf16.msra.mxu0 %v4624_v21  ;;  %v4625_v22 = vld [vmem:[%s5117_s4 + $0x128] sm:$0xff]  }
0x1e91   : > { %4749 = vpow2.f32 %v2675_v33  ;;  %4406 = vmatprep.subr.bf16.mxu0 %v4864_v60  ;;  %v4052_v21 = vld [vmem:[%s5041_s20 + $0xa] sm:$0x3] }
0x1e94   : > { %4407 = vmatpush3.bf16.msra.mxu0 %v4625_v22  ;;  %v3066_v22 = vrot.slane %v4052_v21, %v5043_v18 }
0x1e95   : > { %4408 = vmatprep.subr.bf16.mxu0 %v4864_v60 }
0x1e98   : > { %4409 = vmatpush3.bf16.msra.mxu0 %v4626_v23  ;;  %v3070_v23 = vrot.slane %v4052_v21, %v5046_v20  ;;  %v4642_v21 = vld [vmem:[%s5098_s1 + $0x50] sm:$0xff]  }
0x1e99   : > { %4410 = vmatprep.subr.bf16.mxu0 %v4864_v60 }
0x1e9c   : > { %v4746_v13 = vpop.eup %4745 }
0x1e9d   : > { %v2673_v24 = vmul.f32 %v4746_v13, %v2656_v15  ;;  %v4748_v25 = vpop.eup %4747  ;;  %v4628_v13 = vld [vmem:[%s5117_s4 + $0x110] sm:$0xff]  }
0x1e9e   : > { %v2672_v26 = vmul.f32 %v4748_v25, %v2654_v10  ;;  %v4750_v34 = vpop.eup %4749  ;;  %v4622_v10 = vld [vmem:[%s5098_s1 + $0x40] sm:$0xff]  }
0x1e9f   : > { %2682 = vrot.lane.b32.xlu0 %v2673_v24, %s5626_s5  ;;  %v2677_v35 = vadd.f32 1.0, %v4750_v34  ;;  %v4630_v25 = vld [vmem:[%s5117_s4 + $0x100] sm:$0xff]  }
0x1ea1   : > { %4751 = vlog2.f32 %v2677_v35 }
0x1ea3   : > { %2702 = vrot.lane.b32.xlu0 %v2672_v26, %s5627_s6 }
0x1ea7   : > { %2706 = vrot.lane.b32.xlu0 %v2672_v26, %s5625_s27  ;;  %v4018_v26 = vld [vmem:[%s5139_s16 + $0x4] sm:$0x1] }
0x1eae   : > { %v4752_v14 = vpop.eup %4751 }
0x1eaf   : > { %v2679_v27 = vmul.f32 0.6931472, %v4752_v14 }
0x1eb1   : > { %v2680_v38 = vsel %vm2674_vm14, %v2656_v15, %v2679_v27 }
0x1f11   : > { %v2683_v29 = vpop.permute.xlu0 %2682 }
0x1f12   : > { %v2685_v30 = vmul.f32 %v2683_v29, %v2673_v24  ;;  %v4629_v24 = vld [vmem:[%s5117_s4 + $0x108] sm:$0xff]  }
0x1f14   : > { %v2686_v31 = vsel %vm862_vm2, %v2685_v30, 0.0 }
0x1f15   : > { %2687 = vadd.xlane.f32.xlu1 %v2686_v31  ;;  %v2703_v37 = vpop.permute.xlu0 %2702 }
0x1f19   : > { %v2707_v45 = vpop.permute.xlu0 %2706 }
0x1f26   : > { %2697 = vrot.lane.b32.xlu1 %v3997_v32, %s5625_s27 }
0x1f9e   : > { %v2688_v36 = vpop.xlane.xlu1 %2687 }
0x1f9f   : > { %v2689_v41 = vmul.f32 %v2688_v36, %v2680_v38 }
0x1fa2   : > { %v2698_v42 = vpop.permute.xlu1 %2697 }
0x1fa3   : > { %v2700_v43 = vadd.f32 %v2698_v42, %v2689_v41 }
0x1fa5   : > { %v2705_v44 = vmul.f32 %v2703_v37, %v2700_v43 }
0x1fa7   : > { %v2709_v46 = vmul.f32 %v2707_v45, %v2705_v44 }
0x1fa9   : > { %v2710_v47 = vmul.f32 %v2709_v46, %v2709_v46 }
0x1fab   : > { %2712 = vrot.lane.b32.xlu0 %v2710_v47, %s5627_s6 }
0x1faf   : > { %2729 = vrot.lane.b32.xlu0 %v3999_v28, %s5625_s27 }
0x201d   : > { %v2713_v39 = vpop.permute.xlu0 %2712 }
0x201e   : > { %v2715_v48 = vsel %vm891_vm4, %v2713_v39, 0.0 }
0x201f   : > { %2716 = vadd.xlane.f32.xlu1 %v2715_v48 }
0x2021   : > { %v2730_v59 = vpop.permute.xlu0 %2729 }
0x20a8   : > { %v2717_v55 = vpop.xlane.xlu1 %2716 }
0x20a9   : > { %v2718_v56 = vmul.f32 0.015625, %v2717_v55 }
0x20ab   : > { %v2719_v57 = vadd.f32 1e-05, %v2718_v56 }
0x20ad   : > { %4753 = vrsqrt.f32 %v2719_v57 }
0x20ba   : > { %v4754_v58 = vpop.eup %4753 }
0x20bb   : > { %v2721_v40 = vmul.f32 %v4754_v58, %v2709_v46 }
0x20bd   : > { %v2732_v51 = vmul.f32 %v2730_v59, %v2721_v40 }
0x20bf   : > { %v2733_v61 = vpack.c.bf16 %v2732_v51, %v2732_v51  ;;  %v4046_v51 = vld [vmem:[%s5149_s0 + $0x4] sm:$0x1] }
0x20c1   : > { %2744 = vrot.lane.b32.xlu0 %v2733_v61, %s5627_s6 }
0x2133   : > { %v2745_v62 = vpop.permute.xlu0 %2744 }
0x2134   : > { %4391 = vmatmul.mubr.msk.bf16.vlgmr.msra.gmra.mxu1 %vm946_vm6, %v2745_v62 }
0x2135   : > { %4398 = vmatprep.mubr.msk.bf16.mxu1 %vm4865_vm5, %v4864_v60  ;;  %4395 = vmatpush3.bf16.msra.mxu1 %v4621_v9  ;;  %v4633_v9 = vld [vmem:[%s5014_s19 + $0xb4] ss:$8 sps:$4 sm:$0xff]  }
0x2136   : > { %4396 = vmatprep.subr.bf16.mxu1 %v4864_v60 }
0x2139   : > { %4397 = vmatpush3.bf16.msra.mxu1 %v4622_v10  ;;  %v4636_v10 = vld [vmem:[%s5014_s19 + $0xa4] ss:$8 sps:$4 sm:$0xff]  }
0x213a   : > { %3088 = vmatprep.subr.bf16.mxu1 %v4633_v9 }
0x21f4   : > { %v2807_v63 = vpop.f32.mrf.mxu1 }
0x21f5   : > { %v5419_v2 = vadd.f32 %v2807_v63, %v5378_v52 }
0x21f6   : > { %v4392_v4 = vpop.f32.mrf.mxu1 }
0x21f7   : > { %v2817_v5 = vmul.f32 %v5419_v2, %v5419_v2  ;;  %v2816_v15 = vmul.f32 %v4013_v12, %v5419_v2  ;;  %v4047_v12 = vld [vmem:[%s5024_s30 + $0x5] sm:$0x1] }
0x21f8   : > { %v2810_v6 = vpop.f32.mrf.mxu1 }
0x21f9   : > { %v2818_v7 = vsel %vm747_vm0, %v2817_v5, 0.0 }
0x21fa   : > { %2819 = vadd.xlane.f32.xlu0 %v2818_v7  ;;  %v4393_v8 = vpop.f32.mrf.mxu1 }
0x21fb   : > { %v4631_v8 = vld [vmem:[%s5014_s19 + $0xb0] ss:$8 sps:$4 sm:$0xff]  }
0x2283   : > { %v2820_v11 = vpop.xlane.xlu0 %2819 }
0x2284   : > { %v2821_v52 = vadd.f32 1e-06, %v2820_v11  ;;  %v4634_v11 = vld [vmem:[%s5014_s19 + $0xa0] ss:$8 sps:$4 sm:$0xff]  }
0x2286   : > { %4755 = vrsqrt.f32 %v2821_v52 }
0x2293   : > { %v4756_v16 = vpop.eup %4755 }
0x2294   : > { %v2823_v17 = vmul.f32 %v4756_v16, %v2816_v15 }
0x2296   : > { %v2824_v19 = vpack.c.bf16 %v2823_v17, %v2823_v17 }
0x2298   : > { %4399 = vmatmul.mubr.msk.bf16.vlgmr.msra.gmra.mxu1 %vm791_vm1, %v2824_v19 }
0x2299   : > { %3108 = vmatprep.mubr.bf16.mxu1 %v4860_v3  ;;  %v4627_v3 = vld [vmem:[%s5117_s4 + $0x118] sm:$0xff]   ;;  %3089 = vmatpush1.bf16.msra.mxu1 %v4631_v8 }
0x229a   : > { %4411 = vmatpush3.bf16.msra.mxu0 %v4627_v3  ;;  %3090 = vmatprep.subr.bf16.mxu1 %v4636_v10 }
0x229b   : > { %4412 = vmatprep.subr.bf16.mxu0 %v4864_v60 }
0x229d   : > { %3091 = vmatpush1.bf16.msra.mxu1 %v4634_v11 }
0x229e   : > { %4413 = vmatpush3.bf16.msra.mxu0 %v4628_v13  ;;  %4422 = vmatprep.subr.bf16.mxu1 %v4864_v60 }
0x229f   : > { %4414 = vmatprep.subr.bf16.mxu0 %v4864_v60 }
0x22a2   : > { %4415 = vmatpush3.bf16.msra.mxu0 %v4629_v24 }
0x22a3   : > { %4416 = vmatprep.subr.bf16.mxu0 %v4864_v60 }
0x22a6   : > { %4417 = vmatpush3.bf16.msra.mxu0 %v4630_v25 }
0x22a7   : > { %4442 = vmatprep.subr.bf16.mxu0 %v4864_v60 }
0x2358   : > { %v2881_v29 = vpop.f32.mrf.mxu1 }
0x2359   : > { %v2882_v30 = vadd.f32 %v4018_v26, %v2881_v29 }
0x235a   : > { %v4400_v31 = vpop.f32.mrf.mxu1 }
0x235b   : > { %v2888_v32 = vmul.f32 0.70710677, %v2882_v30  ;;  %v2887_v56 = vmul.f32 0.5, %v2882_v30 }
0x235c   : > { %v2884_v33 = vpop.f32.mrf.mxu1 }
0x235d   : > { %v2891_v34 = vand.u32 2147483647, %v2888_v32  ;;  %vm2889_vm15 = vcmp.ge.f32.partialorder %v2888_v32, 0.0 }
0x235e   : > { %v4401_v35 = vpop.f32.mrf.mxu1  ;;  %v2890_v54 = vsel %vm2889_vm15, 1.0, %v4866_v1 }
0x235f   : > { %v2892_v14 = vmul.f32 0.3275911, %v2891_v34  ;;  %v2905_v36 = vsub.f32 0.0, %v2891_v34 }
0x2361   : > { %v2893_v27 = vadd.f32 1.0, %v2892_v14  ;;  %v2906_v37 = vmul.f32 %v2905_v36, %v2891_v34 }
0x2363   : > { %4757 = vrcp.f32 %v2893_v27  ;;  %v2907_v42 = vmul.f32 1.442695, %v2906_v37 }
0x2365   : > { %4759 = vpow2.f32 %v2907_v42 }
0x2370   : > { %v4758_v38 = vpop.eup %4757 }
0x2371   : > { %v2896_v41 = vmul.f32 1.0614054, %v4758_v38 }
0x2372   : > { %v4760_v49 = vpop.eup %4759 }
0x2373   : > { %v2897_v43 = vadd.f32 -1.4531521, %v2896_v41 }
0x2375   : > { %v2898_v44 = vmul.f32 %v4758_v38, %v2897_v43 }
0x2377   : > { %v2899_v45 = vadd.f32 1.4214138, %v2898_v44 }
0x2379   : > { %v2900_v46 = vmul.f32 %v4758_v38, %v2899_v45 }
0x237b   : > { %v2901_v47 = vadd.f32 -0.28449672, %v2900_v46 }
0x237d   : > { %v2902_v28 = vmul.f32 %v4758_v38, %v2901_v47 }
0x237f   : > { %v2903_v39 = vadd.f32 0.2548296, %v2902_v28 }
0x2381   : > { %v2904_v48 = vmul.f32 %v4758_v38, %v2903_v39 }
0x2383   : > { %v2909_v50 = vmul.f32 %v4760_v49, %v2904_v48 }
0x2385   : > { %v2910_v53 = vsub.f32 1.0, %v2909_v50 }
0x2387   : > { %v2911_v55 = vmul.f32 %v2910_v53, %v2890_v54 }
0x2389   : > { %v2912_v57 = vadd.f32 1.0, %v2911_v55 }
0x238b   : > { %v2913_v58 = vmul.f32 %v2912_v57, %v2887_v56  ;;  %v4063_v56 = vld [vmem:[%s5059_s29 + $0x5] ss:$0 sm:$0xff] }
0x238d   : > { %v2914_v59 = vpack.c.bf16 %v2913_v58, %v2913_v58 }
0x238f   : > { %4419 = vmatmul.mubr.bf16.vlgmr.msra.gmra.mxu0 %v2914_v59  ;;  %v4637_v59 = vld [vmem:[%s5074_s21 + $0xb8] sm:$0xff]  }
0x2390   : > { %4458 = vmatprep.mubr.msk.bf16.mxu0 %vm4865_vm5, %v4864_v60 }
0x244f   : > { %v3014_v40 = vpop.f32.mrf.mxu0 }
0x2450   : > { %v3020_v61 = vadd.f32 %v3014_v40, %v5419_v2  ;;  %v4638_v40 = vld [vmem:[%s5074_s21 + $0xb0] sm:$0xff]  }
0x2451   : > { %v4420_v62 = vpop.f32.mrf.mxu0 }
0x2452   : > { %v5453_v63 = vadd.f32 %v4046_v51, %v3020_v61  ;;  %v4639_v51 = vld [vmem:[%s5074_s21 + $0xa8] sm:$0xff]   ;;  %v4640_v61 = vld [vmem:[%s5074_s21 + $0xa0] sm:$0xff]  }
0x2453   : > { %v3017_v4 = vpop.f32.mrf.mxu0 }
0x2454   : > { %v3027_v5 = vmul.f32 %v5453_v63, %v5453_v63  ;;  %v3026_v15 = vmul.f32 %v4047_v12, %v5453_v63 }
0x2455   : > { %v4421_v6 = vpop.f32.mrf.mxu0 }
0x2456   : > { %v3028_v7 = vsel %vm747_vm0, %v3027_v5, 0.0 }
0x2457   : > { %3029 = vadd.xlane.f32.xlu1 %v3028_v7 }
0x2468   : > { %3154 = vrot.lane.b32.xlu1 %v4061_v0, %s5625_s27  ;;  %v4641_v0 = vld [vmem:[%s5098_s1 + $0x58] sm:$0xff]  }
0x24e0   : > { %v3030_v2 = vpop.xlane.xlu1 %3029 }
0x24e1   : > { %v3031_v52 = vadd.f32 1e-06, %v3030_v2 }
0x24e3   : > { %4761 = vrsqrt.f32 %v3031_v52 }
0x24e4   : > { %v3155_v45 = vpop.permute.xlu1 %3154 }
0x24f0   : > { %v4762_v16 = vpop.eup %4761 }
0x24f1   : > { %v3033_v17 = vmul.f32 %v4762_v16, %v3026_v15 }
0x24f3   : > { %v3034_v19 = vpack.c.bf16 %v3033_v17, %v3033_v17 }
0x24f5   : > { %4057 = vmatmul.mubr.msk.bf16.vlgmr.msra.gmra.mxu1 %vm791_vm1, %v3034_v19 }
0x24f6   : > { %4430 = vmatprep.mubr.msk.bf16.mxu1 %vm4865_vm5, %v4864_v60  ;;  %4423 = vmatpush3.bf16.msra.mxu1 %v4637_v59 }
0x24f7   : > { %4424 = vmatprep.subr.bf16.mxu1 %v4864_v60 }
0x24fa   : > { %4425 = vmatpush3.bf16.msra.mxu1 %v4638_v40 }
0x24fb   : > { %4426 = vmatprep.subr.bf16.mxu1 %v4864_v60 }
0x24fe   : > { %4427 = vmatpush3.bf16.msra.mxu1 %v4639_v51 }
0x24ff   : > { %4428 = vmatprep.subr.bf16.mxu1 %v4864_v60 }
0x2502   : > { %4429 = vmatpush3.bf16.msra.mxu1 %v4640_v61 }
0x2503   : > { %4434 = vmatprep.subr.bf16.mxu1 %v4864_v60 }
0x25b5   : > { %v3110_v3 = vpop.f32.mrf.mxu1 }
0x25b6   : > { %v3111_v13 = vadd.f32 %v3110_v3, %v3066_v22 }
0x25b7   : > { %v3112_v24 = vpop.f32.mrf.mxu1 }
0x25b8   : > { %v4058_v25 = vmul.f32 -1.442695, %v3111_v13  ;;  %v3113_v26 = vadd.f32 %v3112_v24, %v3070_v23  ;;  %v4077_v23 = vld [vmem:[%s5107_s3 + $0x5] sm:$0x1] }
0x25b9   : > { %v3114_v29 = vpop.f32.mrf.mxu1 }
0x25ba   : > { %4763 = vpow2.f32 %v4058_v25  ;;  %v4059_v30 = vmul.f32 -1.442695, %v3113_v26  ;;  %v3132_v41 = vmul.f32 1.442695, %v3113_v26  ;;  %vm3131_vm3 = vcmp.gt.f32.partialorder %v3113_v26, 20.0  ;;  %v4644_v29 = vld [vmem:[%s5117_s4 + $0x170] sm:$0xff]  }
0x25bb   : > { %v3115_v31 = vpop.f32.mrf.mxu1 }
0x25bc   : > { %4765 = vpow2.f32 %v4059_v30  ;;  %v4645_v30 = vld [vmem:[%s5117_s4 + $0x168] sm:$0xff]   ;;  %v4646_v31 = vld [vmem:[%s5117_s4 + $0x160] sm:$0xff]  }
0x25c7   : > { %v4764_v32 = vpop.eup %4763 }
0x25c8   : > { %v3123_v34 = vadd.f32 1.0, %v4764_v32  ;;  %v4647_v32 = vld [vmem:[%s5117_s4 + $0x158] sm:$0xff]  }
0x25c9   : > { %v4766_v33 = vpop.eup %4765 }
0x25ca   : > { %v3124_v35 = vadd.f32 1.0, %v4766_v33  ;;  %v4648_v33 = vld [vmem:[%s5117_s4 + $0x150] sm:$0xff]  }
0x25cc   : > { %4767 = vrcp.f32 %v3124_v35  ;;  %v4650_v35 = vld [vmem:[%s5117_s4 + $0x140] sm:$0xff]  }
0x25cd   : > { %4769 = vrcp.f32 %v3123_v34  ;;  %v4649_v34 = vld [vmem:[%s5117_s4 + $0x148] sm:$0xff]  }
0x25ce   : > { %4771 = vpow2.f32 %v3132_v41 }
0x25d9   : > { %v4768_v14 = vpop.eup %4767 }
0x25da   : > { %v3130_v18 = vmul.f32 %v4768_v14, %v3113_v26  ;;  %v4770_v27 = vpop.eup %4769  ;;  %v3484_v14 = vld [vmem:[%s5599_s13 + $0x18] sm:$0xff] }
0x25db   : > { %v3129_v20 = vmul.f32 %v4770_v27, %v3111_v13  ;;  %v4772_v42 = vpop.eup %4771  ;;  %v4082_v27 = vld [vmem:[%s5139_s16 + $0x5] sm:$0x1] }
0x25dc   : > { %3139 = vrot.lane.b32.xlu0 %v3130_v18, %s5626_s5  ;;  %v3134_v43 = vadd.f32 1.0, %v4772_v42 }
0x25de   : > { %4773 = vlog2.f32 %v3134_v43 }
0x25e0   : > { %3163 = vrot.lane.b32.xlu0 %v3129_v20, %s5625_s27 }
0x25eb   : > { %v4774_v44 = vpop.eup %4773 }
0x25ec   : > { %v3136_v46 = vmul.f32 0.6931472, %v4774_v44 }
0x25ee   : > { %v3137_v47 = vsel %vm3131_vm3, %v3113_v26, %v3136_v46  ;;  %v4643_v26 = vld [vmem:[%s5117_s4 + $0x178] sm:$0xff]   ;;  %s667_s4 = sand.u32 1, %s4849_s24  }
0x25ef   : > { %4443 = vmatpush3.bf16.msra.mxu0 %v4643_v26  ;;  %s668_s5 = scalar_lea.vmem [#allocation4], %s667_s4  ;;  %s3562_s22 = scalar_lea.sflag [#allocation5], %s667_s4 }
0x25f0   : > { %4444 = vmatprep.subr.bf16.mxu0 %v4864_v60 }
0x25f3   : > { %4445 = vmatpush3.bf16.msra.mxu0 %v4644_v29 }
0x25f4   : > { %4446 = vmatprep.subr.bf16.mxu0 %v4864_v60 }
0x25f7   : > { %4447 = vmatpush3.bf16.msra.mxu0 %v4645_v30 }
0x25f8   : > { %4448 = vmatprep.subr.bf16.mxu0 %v4864_v60 }
0x25fb   : > { %4449 = vmatpush3.bf16.msra.mxu0 %v4646_v31 }
0x25fc   : > { %4450 = vmatprep.subr.bf16.mxu0 %v4864_v60 }
0x25ff   : > { %4451 = vmatpush3.bf16.msra.mxu0 %v4647_v32 }
0x2600   : > { %4452 = vmatprep.subr.bf16.mxu0 %v4864_v60 }
0x2603   : > { %4453 = vmatpush3.bf16.msra.mxu0 %v4648_v33 }
0x2604   : > { %4454 = vmatprep.subr.bf16.mxu0 %v4864_v60 }
0x2607   : > { %4455 = vmatpush3.bf16.msra.mxu0 %v4649_v34 }
0x2608   : > { %4456 = vmatprep.subr.bf16.mxu0 %v4864_v60 }
0x260b   : > { %4457 = vmatpush3.bf16.msra.mxu0 %v4650_v35 }
0x264e   : > { %v3140_v36 = vpop.permute.xlu0 %3139 }
0x264f   : > { %v3142_v37 = vmul.f32 %v3140_v36, %v3130_v18  ;;  %v3483_v18 = vld [vmem:[%s5599_s13 + $0x10] sm:$0xff] }
0x2651   : > { %v3143_v38 = vsel %vm862_vm2, %v3142_v37, 0.0  ;;  %vm3559_vm2 = vcmask 24576  }
0x2652   : > { %3144 = vadd.xlane.f32.xlu1 %v3143_v38  ;;  %v3164_v53 = vpop.permute.xlu0 %3163 }
0x2663   : > { %3159 = vrot.lane.b32.xlu1 %v3129_v20, %s5627_s6 }
0x26db   : > { %v3145_v28 = vpop.xlane.xlu1 %3144 }
0x26dc   : > { %v3146_v39 = vmul.f32 %v3145_v28, %v3137_v47 }
0x26de   : > { %v3157_v48 = vadd.f32 %v3155_v45, %v3146_v39 }
0x26df   : > { %v3160_v49 = vpop.permute.xlu1 %3159 }
0x26e0   : > { %v3162_v50 = vmul.f32 %v3160_v49, %v3157_v48 }
0x26e2   : > { %v3166_v54 = vmul.f32 %v3164_v53, %v3162_v50 }
0x26e4   : > { %v3167_v55 = vmul.f32 %v3166_v54, %v3166_v54 }
0x26e6   : > { %3169 = vrot.lane.b32.xlu1 %v3167_v55, %s5627_s6 }
0x26ea   : > { %3186 = vrot.lane.b32.xlu1 %v4063_v56, %s5625_s27  ;;  %s4112_s27 = sshll.u32 %s4972_s26, 4  ;;  %s4867_s26 = smov [#allocation4]  }
0x26eb   : > { %s5551_s30 = scalar_lea.hbm %s5601_s15, %s4112_s27  ;;  %s4799_s1 = sshll.u32 %s4867_s26, 4  ;;  %s4800_s1 = int_to_ptr.vmem [resolvable:$false] %s4799_s1 }
0x26ec   : > { %s4801_s29 = scalar_lea.vmem %s4800_s1, 32 }
0x2758   : > { %v3170_v57 = vpop.permute.xlu1 %3169 }
0x2759   : > { %v3172_v58 = vsel %vm891_vm4, %v3170_v57, 0.0 }
0x275a   : > { %3173 = vadd.xlane.f32.xlu0 %v3172_v58 }
0x275c   : > { %v3187_v7 = vpop.permute.xlu1 %3186 }
0x27e3   : > { %v3174_v62 = vpop.xlane.xlu0 %3173 }
0x27e4   : > { %v3175_v4 = vmul.f32 0.015625, %v3174_v62 }
0x27e6   : > { %v3176_v5 = vadd.f32 1e-05, %v3175_v4 }
0x27e8   : > { %4775 = vrsqrt.f32 %v3176_v5 }
0x27f5   : > { %v4776_v6 = vpop.eup %4775 }
0x27f6   : > { %v3178_v8 = vmul.f32 %v4776_v6, %v3166_v54 }
0x27f8   : > { %v3189_v9 = vmul.f32 %v3187_v7, %v3178_v8  ;;  %v3482_v8 = vld [vmem:[%s5599_s13 + $0x8] sm:$0xff] }
0x27fa   : > { %v3190_v10 = vpack.c.bf16 %v3189_v9, %v3189_v9  ;;  %v3481_v9 = vld [vmem:[%s5599_s13] sm:$0xff] }
0x27fc   : > { %3201 = vrot.lane.b32.xlu1 %v3190_v10, %s5627_s6  ;;  %v4110_v10 = vld [vmem:[%s5149_s0 + $0x5] sm:$0x1]  ;;  %s3574_s6 = sshll.u32 %s668_s5, 4  ;;  %s3575_s6 = int_to_ptr.vmem [resolvable:$true] %s3574_s6 }
0x27fd   : > { %s4795_s20 = scalar_lea.vmem %s3575_s6, 16  ;;  %p4802_p4 = scmp.lt.s32.totalorder %s3575_s6, %s4800_s1 }
0x27fe   : > { %p4796_p1 = scmp.ne.s32.totalorder %s3575_s6, %s4795_s20  ;;  %p4803_p5 = scmp.lt.s32.totalorder %s4801_s29, %s4795_s20 }
0x2800   : > { %p4797_p2 = pnand %p4796_p1, %p4989_p10  ;;  %p4804_p6 = por %p4803_p5, %p4802_p4 }
0x2802   : > { %p4798_p3 = pneg %p4797_p2 }
0x2804   : > { %p4805_p7 = pnand %p4804_p6, %p4798_p3 }
0x286e   : > { %v3202_v11 = vpop.permute.xlu1 %3201 }
0x286f   : > { %4431 = vmatmul.mubr.msk.bf16.vlgmr.msra.gmra.mxu1 %vm946_vm6, %v3202_v11 }
0x2870   : > { %4438 = vmatprep.mubr.msk.bf16.mxu1 %vm4865_vm5, %v4864_v60  ;;  %4435 = vmatpush3.bf16.msra.mxu1 %v4641_v0 }
0x2871   : > { %4436 = vmatprep.subr.bf16.mxu1 %v4864_v60 }
0x2874   : > { %4437 = vmatpush3.bf16.msra.mxu1 %v4642_v21 }
0x2875   : > { %4462 = vmatprep.subr.mxu1 %v4864_v60 }
0x292f   : > { %v3264_v2 = vpop.f32.mrf.mxu1 }
0x2930   : > { %v5494_v52 = vadd.f32 %v3264_v2, %v5453_v63 }
0x2931   : > { %v4432_v12 = vpop.f32.mrf.mxu1 }
0x2932   : > { %v3274_v15 = vmul.f32 %v5494_v52, %v5494_v52  ;;  %v3273_v3 = vmul.f32 %v4077_v23, %v5494_v52 }
0x2933   : > { %v3267_v16 = vpop.f32.mrf.mxu1 }
0x2934   : > { %v3275_v17 = vsel %vm747_vm0, %v3274_v15, 0.0 }
0x2935   : > { %3276 = vadd.xlane.f32.xlu1 %v3275_v17  ;;  %v4433_v19 = vpop.f32.mrf.mxu1  ;;  %v3485_v17 = vld [vmem:[%s5600_s14] sm:$0x1] }
0x29be   : > { %v3277_v63 = vpop.xlane.xlu1 %3276 }
0x29bf   : > { %v3278_v22 = vadd.f32 1e-06, %v3277_v63 }
0x29c1   : > { %4777 = vrsqrt.f32 %v3278_v22 }
0x29ce   : > { %v4778_v13 = vpop.eup %4777 }
0x29cf   : > { %v3280_v24 = vmul.f32 %v4778_v13, %v3273_v3 }
0x29d1   : > { %v3281_v25 = vpack.c.bf16 %v3280_v24, %v3280_v24 }
0x29d3   : > { %4439 = vmatmul.mubr.msk.bf16.vlgmr.msra.gmra.mxu1 %vm791_vm1, %v3281_v25 }
0x29d4   : > { %4470 = vmatprep.mubr.msk.f32.mxu1 %vm4865_vm5, %v4864_v60  ;;  %4463 = vmatpush3.msra.mxu1 %v3484_v14 }
0x29d5   : > { %4464 = vmatprep.subr.mxu1 %v4864_v60 }
0x29d6   : > { %4465 = vmatpush3.msra.mxu1 %v3483_v18 }
0x29d7   : > { %4466 = vmatprep.subr.mxu1 %v4864_v60 }
0x29d8   : > { %4467 = vmatpush3.msra.mxu1 %v3482_v8 }
0x29d9   : > { %4468 = vmatprep.subr.mxu1 %v4864_v60 }
0x29da   : > { %4469 = vmatpush3.msra.mxu1 %v3481_v9 }
0x2a93   : > { %v3338_v20 = vpop.f32.mrf.mxu1 }
0x2a94   : > { %v3339_v36 = vadd.f32 %v4082_v27, %v3338_v20 }
0x2a95   : > { %v4440_v37 = vpop.f32.mrf.mxu1 }
0x2a96   : > { %v3345_v38 = vmul.f32 0.70710677, %v3339_v36  ;;  %v3344_v4 = vmul.f32 0.5, %v3339_v36 }
0x2a97   : > { %v3341_v41 = vpop.f32.mrf.mxu1 }
0x2a98   : > { %v3348_v42 = vand.u32 2147483647, %v3345_v38  ;;  %vm3346_vm0 = vcmp.ge.f32.partialorder %v3345_v38, 0.0 }
0x2a99   : > { %v4441_v43 = vpop.f32.mrf.mxu1  ;;  %v3347_v61 = vsel %vm3346_vm0, 1.0, %v4866_v1 }
0x2a9a   : > { %v3349_v44 = vmul.f32 0.3275911, %v3348_v42  ;;  %v3362_v46 = vsub.f32 0.0, %v3348_v42 }
0x2a9c   : > { %v3350_v45 = vadd.f32 1.0, %v3349_v44  ;;  %v3363_v47 = vmul.f32 %v3362_v46, %v3348_v42 }
0x2a9e   : > { %4779 = vrcp.f32 %v3350_v45  ;;  %v3364_v48 = vmul.f32 1.442695, %v3363_v47 }
0x2aa0   : > { %4781 = vpow2.f32 %v3364_v48 }
0x2aab   : > { %v4780_v28 = vpop.eup %4779 }
0x2aac   : > { %v3353_v39 = vmul.f32 1.0614054, %v4780_v28 }
0x2aad   : > { %v4782_v59 = vpop.eup %4781 }
0x2aae   : > { %v3354_v49 = vadd.f32 -1.4531521, %v3353_v39 }
0x2ab0   : > { %v3355_v50 = vmul.f32 %v4780_v28, %v3354_v49 }
0x2ab2   : > { %v3356_v53 = vadd.f32 1.4214138, %v3355_v50 }
0x2ab4   : > { %v3357_v54 = vmul.f32 %v4780_v28, %v3356_v53 }
0x2ab6   : > { %v3358_v55 = vadd.f32 -0.28449672, %v3357_v54 }
0x2ab8   : > { %v3359_v56 = vmul.f32 %v4780_v28, %v3358_v55 }
0x2aba   : > { %v3360_v57 = vadd.f32 0.2548296, %v3359_v56 }
0x2abc   : > { %v3361_v58 = vmul.f32 %v4780_v28, %v3360_v57 }
0x2abe   : > { %v3366_v40 = vmul.f32 %v4782_v59, %v3361_v58 }
0x2ac0   : > { %v3367_v51 = vsub.f32 1.0, %v3366_v40 }
0x2ac2   : > { %v3368_v62 = vmul.f32 %v3367_v51, %v3347_v61 }
0x2ac4   : > { %v3369_v5 = vadd.f32 1.0, %v3368_v62 }
0x2ac6   : > { %v3370_v6 = vmul.f32 %v3369_v5, %v3344_v4 }
0x2ac8   : > { %v3371_v7 = vpack.c.bf16 %v3370_v6, %v3370_v6 }
0x2aca   : > { %4459 = vmatmul.mubr.bf16.vlgmr.msra.gmra.mxu0 %v3371_v7 }
0x2b8a   : > { %v3471_v1 = vpop.f32.mrf.mxu0 }
0x2b8b   : > { %v3477_v11 = vadd.f32 %v3471_v1, %v5494_v52 }
0x2b8c   : > { %v4460_v2 = vpop.f32.mrf.mxu0 }
0x2b8d   : > { %v3480_v12 = vadd.f32 %v4110_v10, %v3477_v11 }
0x2b8e   : > { %v3474_v15 = vpop.f32.mrf.mxu0 }
0x2b8f   : > { %4471 = vmatmul.mubr.msk.f32.vlgmr.msra.gmra.mxu1 %vm791_vm1, %v3480_v12 }
0x2b90   : > { %v4461_v16 = vpop.f32.mrf.mxu0 }
0x2c4f   : > { %v3555_v60 = vpop.f32.mrf.mxu1 }
0x2c50   : > { %v3556_v19 = vadd.f32 %v3555_v60, %v3485_v17 }
0x2c51   : > { %v4472_v52 = vpop.f32.mrf.mxu1 }
0x2c52   : > { %3560 = vst.msk [vmem:[%s668_s5] sm:$0x1] %vm3559_vm2, %v3556_v19 }
0x2c53   : > { %4808 = shalt.err (!%p4805_p7)
}
0x2c54   : > { %s4809_s21 = scalar_lea.hbm %s5551_s30, 16  ;;  %s4813_s16 = scalar_lea.hbm %s5601_s15, 32 }
0x2c55   : > { %p4810_p8 = scmp.ne.s32.totalorder %s5551_s30, %s4809_s21  ;;  %p4814_p13 = scmp.lt.s32.totalorder %s5551_s30, %s5601_s15 }
0x2c56   : > { %p4815_p0 = scmp.lt.s32.totalorder %s4813_s16, %s4809_s21 }
0x2c57   : > { %p4811_p9 = pnand %p4810_p8, %p4989_p10 }
0x2c58   : > { %p4816_p1 = por %p4815_p0, %p4814_p13 }
0x2c59   : > { %p4812_p12 = pneg %p4811_p9 }
0x2c5b   : > { %p4817_p2 = pnand %p4816_p1, %p4812_p12 }
0x2c5d   : > { %4820 = shalt.err (!%p4817_p2)
}
0x2c5e   : > { %4484 = dma.vmem_to_hbm [thread:$0]  (%p4989_p10), %s3575_s6, 16, %s5551_s30, %s3562_s22  }
0x2c5f PF: > { %p4490_p3 = scmp.ge.s32.totalorder %s4857_s25, 2  ;;  %s3586_s5 = sand.u32 1, %s4845_s23  }
0x2c60   : > { %s3587_s0 = scalar_lea.sflag [#allocation5], %s3586_s5 }
0x2c61   : > { %p4487_p4 = pnand %p4490_p3, %p4993_p11 }
0x2c63   : > { %p4488_p5 = pneg %p4487_p4 }
0x2c65   : > { %4840 = dma.done.wait (%p4488_p5), %s3587_s0, 16  }
0x2c66   : > { %4842 = vsyncadd (%p4488_p5), %s3587_s0, 4294967280  ;;  %s5628_s19 = sld [smem:[#allocation8_spill]]  ;;  %p31_p6 = scmp.ge.s32.totalorder %s4976_s28, 4  }
0x2c67   : > { %s5629_s0 = sld [smem:[#allocation9_spill]]  ;;  %s5630_s23 = smov %s4849_s24 }
0x2c68   : > { %s5632_s25 = smov %s4976_s28  ;;  %33 = sbr.rel (!%p31_p6) target bundleno = 20 (0x14), region = 199 }
0x2c6c   : > { %s5631_s24 = smov %s5628_s19 }
0x2c6d   :  { %3591 = vsyncpa [#allocation5], 1 }
0x2c6e   :  { %3593 = vsyncpa [#allocation5 + $0x1], 1 }

</bundles_post_ra>
